<compile_context>
chip_gen: v5e
topology: v5e:2x2
jax: 0.10.0
libtpu: 0.0.40
codegen_flags: <defaults>
</compile_context>

<pallas_src>
import jax
import jax.numpy as jnp
from jax.experimental import pallas as pl
from jax.experimental.pallas import tpu as pltpu


IMAGE_SIZE = 28
CHANNELS = 1
NUM_CLASSES = 10

D_X = CHANNELS * IMAGE_SIZE * IMAGE_SIZE        # 784  flattened image features
D_C = NUM_CLASSES                               # 10   label-embedding width
D_C_PAD = 16                                    # padded to sublane tile (zero cols inert)
H1, H2, H3 = 1024, 512, 256


def _discriminator_kernel(x_ref, c_ref,
                          w1a_ref, w1b_ref, b1_ref,
                          w2_ref, b2_ref,
                          w3_ref, b3_ref,
                          w4_ref, b4_ref,
                          o_ref):
    """Fused conditional-discriminator MLP forward for one batch tile.

    Matmuls feed the MXU with bf16 operands + f32 accumulation; LeakyReLU and
    sigmoid stay in f32.  The final 256->1 projection is an elementwise
    multiply + cross-lane reduction, written lane-dense as a (1, tb) row.
    """
    def lrelu(h):
        # One VALU max per element instead of compare+select.
        return jnp.maximum(h, 0.2 * h)

    x = x_ref[...].astype(jnp.bfloat16)      # (tb, 784)
    c = c_ref[...].astype(jnp.bfloat16)      # (tb, 16)

    # Layer 1: split weight (image part + label part) avoids shipping zero rows.
    h = (jnp.dot(x, w1a_ref[...], preferred_element_type=jnp.float32)
         + jnp.dot(c, w1b_ref[...], preferred_element_type=jnp.float32)
         + b1_ref[...])
    h = lrelu(h)
    # TODO(synk): nn.Dropout(0.3) is identity in eval mode; train-mode RNG dropout omitted.

    h = lrelu(jnp.dot(h.astype(jnp.bfloat16), w2_ref[...],
                      preferred_element_type=jnp.float32) + b2_ref[...])

    h = lrelu(jnp.dot(h.astype(jnp.bfloat16), w3_ref[...],
                      preferred_element_type=jnp.float32) + b3_ref[...])

    # Layer 4 (256 -> 1): VPU multiply + XLU lane reduction, no padded MXU work.
    w4 = w4_ref[...].astype(jnp.float32)                 # (1, 256)
    z = jnp.sum(h * w4, axis=-1) + b4_ref[...]           # (tb,) + (1,1) -> (1, tb)
    o_ref[...] = jax.nn.sigmoid(z)                       # lane-dense (1, tb) store


def _choose_batch_tile(batch):
    """Big tiles amortize per-grid-step overhead and fill the 256-row MXU on
    v6e/v7x; tiling only kicks in when it yields >= 2 grid steps (keeps both
    v7x TensorCores busy via the 'parallel' grid axis)."""
    if batch >= 1024:
        return 512
    if batch >= 512:
        return 256
    if batch >= 256:
        return 128
    return batch                                          # single block


@jax.jit
def discriminator_forward(x, labels, params):
    """x: (B, C, H, W) float32, labels: (B,) int32. Returns (B,) float32."""
    B = x.shape[0]
    x_flat = x.reshape(B, -1).astype(jnp.float32)         # (B, 784)
    cond = params["emb"][labels]                          # (B, 16); cols 10..15 zero

    tb = _choose_batch_tile(B)
    n_tiles = pl.cdiv(B, tb)
    b_pad = n_tiles * tb
    if b_pad != B:
        # Zero-pad ragged batches to a whole number of tiles; padded rows are
        # computed (cheap) and sliced off below.
        x_flat = jnp.pad(x_flat, ((0, b_pad - B), (0, 0)))
        cond = jnp.pad(cond, ((0, b_pad - B), (0, 0)))

    def row_spec(feat):
        # Per-step batch tiles: default double-buffering for DMA/compute overlap.
        return pl.BlockSpec((tb, feat), lambda i: (i, 0))

    def const_spec(shape):
        # VMEM-resident weights/biases: constant block -> single buffer.
        return pl.BlockSpec(shape, lambda i: (0,) * len(shape),
                            pipeline_mode=pl.Buffered(1))

    weight_bytes = sum(
        params[k].size * params[k].dtype.itemsize
        for k in ("w1a", "w1b", "b1", "w2", "b2", "w3", "b3", "w4", "b4"))
    cost = pl.CostEstimate(
        flops=2 * b_pad * (D_X * H1 + D_C_PAD * H1 + H1 * H2 + H2 * H3 + H3),
        transcendentals=b_pad,  # one sigmoid per row
        bytes_accessed=weight_bytes + x_flat.size * 4 + cond.size * 4 + b_pad * 4,
    )

    out = pl.pallas_call(
        _discriminator_kernel,
        out_shape=jax.ShapeDtypeStruct((1, b_pad), jnp.float32),
        grid=(n_tiles,),
        in_specs=[
            row_spec(D_X), row_spec(D_C_PAD),
            const_spec((D_X, H1)), const_spec((D_C_PAD, H1)), const_spec((1, H1)),
            const_spec((H1, H2)), const_spec((1, H2)),
            const_spec((H2, H3)), const_spec((1, H3)),
            const_spec((1, H3)), const_spec((1, 1)),
        ],
        # Lane-dense output: each grid step writes lanes [i*tb, (i+1)*tb).
        out_specs=pl.BlockSpec((1, tb), lambda i: (0, i)),
        compiler_params=pltpu.CompilerParams(dimension_semantics=("parallel",)),
        cost_estimate=cost,
    )(x_flat, cond,
      params["w1a"], params["w1b"], params["b1"],
      params["w2"], params["b2"],
      params["w3"], params["b3"],
      params["w4"], params["b4"])

    return out.reshape(-1)[:B]   # mirrors PyTorch out.squeeze() on shape (B, 1)


def init_params(key):
    """Deterministic init matching the PyTorch module's shapes.

    Linear weights are stored transposed (in_features, out_features) for the
    row-major x @ W convention, in bfloat16.  W1 is split into image/label
    parts; the label part and the embedding table are zero-padded 10 -> 16.
    """
    ks = jax.random.split(key, 9)

    def linear(kw, kb, fan_in, fan_out):
        bound = 1.0 / jnp.sqrt(jnp.float32(fan_in))
        w = jax.random.uniform(kw, (fan_in, fan_out), jnp.float32, -bound, bound)
        b = jax.random.uniform(kb, (fan_out,), jnp.float32, -bound, bound)
        return w, b

    emb = jax.random.normal(ks[0], (NUM_CLASSES, D_C), jnp.float32)
    emb = jnp.pad(emb, ((0, 0), (0, D_C_PAD - D_C)))              # (10, 16)

    w1, b1 = linear(ks[1], ks[2], D_X + D_C, H1)                  # fan_in = 794 (PyTorch bound)
    w1a = w1[:D_X].astype(jnp.bfloat16)                           # (784, 1024)
    w1b = jnp.pad(w1[D_X:], ((0, D_C_PAD - D_C), (0, 0))).astype(jnp.bfloat16)  # (16, 1024)

    w2, b2 = linear(ks[3], ks[4], H1, H2)
    w3, b3 = linear(ks[5], ks[6], H2, H3)
    w4, b4 = linear(ks[7], ks[8], H3, 1)

    return dict(
        emb=emb,
        w1a=w1a, w1b=w1b, b1=b1.reshape(1, H1),
        w2=w2.astype(jnp.bfloat16), b2=b2.reshape(1, H2),
        w3=w3.astype(jnp.bfloat16), b3=b3.reshape(1, H3),
        w4=w4.reshape(1, H3).astype(jnp.bfloat16),                # row vector (1, 256)
        b4=b4.reshape(1, 1),
    )


def reference_forward(x, labels, params):
    """Pure-JAX reference with identical mixed-precision strategy (eval mode)."""
    B = x.shape[0]
    xf = x.reshape(B, -1)
    c = params["emb"][labels]

    def mm(a, w):
        return jnp.dot(a.astype(jnp.bfloat16), w, preferred_element_type=jnp.float32)

    def lrelu(h):
        return jnp.maximum(h, 0.2 * h)

    h = lrelu(mm(xf, params["w1a"]) + mm(c, params["w1b"]) + params["b1"])
    h = lrelu(mm(h, params["w2"]) + params["b2"])
    h = lrelu(mm(h, params["w3"]) + params["b3"])
    z = jnp.sum(h * params["w4"].astype(jnp.float32), axis=-1, keepdims=True) + params["b4"]
    return jax.nn.sigmoid(z)[:, 0]


if __name__ == "__main__":
    key = jax.random.PRNGKey(0)
    k_x, k_lbl, k_p = jax.random.split(key, 3)
    params = init_params(k_p)

    # B=8 exercises the single-block path; B=300 exercises the tiled
    # (tb=128, grid=3, 'parallel') path with batch padding 300 -> 384.
    for B in (8, 300):
        kx = jax.random.fold_in(k_x, B)
        kl = jax.random.fold_in(k_lbl, B)
        x = jax.random.normal(kx, (B, CHANNELS, IMAGE_SIZE, IMAGE_SIZE), jnp.float32)
        labels = jax.random.randint(kl, (B,), 0, NUM_CLASSES, jnp.int32)

        out = jax.block_until_ready(discriminator_forward(x, labels, params))
        ref = reference_forward(x, labels, params)
        assert out.shape == (B,), out.shape
        assert jnp.allclose(out, ref, atol=1e-3, rtol=1e-3), (out, ref)

    print("KERNEL_OK")
</pallas_src>

<mosaic_0001>
module attributes {stable_mosaic.version = 11 : i64} {
  func.func @_discriminator_kernel(%arg0: i32, %arg1: memref<8x784xf32, #tpu.memory_space<vmem>>, %arg2: memref<8x16xf32, #tpu.memory_space<vmem>>, %arg3: memref<784x1024xbf16, #tpu.memory_space<vmem>>, %arg4: memref<16x1024xbf16, #tpu.memory_space<vmem>>, %arg5: memref<1x1024xf32, #tpu.memory_space<vmem>>, %arg6: memref<1024x512xbf16, #tpu.memory_space<vmem>>, %arg7: memref<1x512xf32, #tpu.memory_space<vmem>>, %arg8: memref<512x256xbf16, #tpu.memory_space<vmem>>, %arg9: memref<1x256xf32, #tpu.memory_space<vmem>>, %arg10: memref<1x256xbf16, #tpu.memory_space<vmem>>, %arg11: memref<1x1xf32, #tpu.memory_space<vmem>>, %arg12: memref<1x8xf32, #tpu.memory_space<vmem>>) attributes {dimension_semantics = [#tpu.dimension_semantics<parallel>], iteration_bounds = array<i64: 1>, scalar_prefetch = 0 : i64, scratch_operands = 0 : i64, tpu.core_type = #tpu.core_type<tc>, window_params = [{transform_indices = @transform_0, window_bounds = array<i64: 8, 784>}, {transform_indices = @transform_1, window_bounds = array<i64: 8, 16>}, {pipeline_mode = #tpu.pipeline_mode<synchronous>, transform_indices = @transform_2, window_bounds = array<i64: 784, 1024>}, {pipeline_mode = #tpu.pipeline_mode<synchronous>, transform_indices = @transform_3, window_bounds = array<i64: 16, 1024>}, {pipeline_mode = #tpu.pipeline_mode<synchronous>, transform_indices = @transform_4, window_bounds = array<i64: 1, 1024>}, {pipeline_mode = #tpu.pipeline_mode<synchronous>, transform_indices = @transform_5, window_bounds = array<i64: 1024, 512>}, {pipeline_mode = #tpu.pipeline_mode<synchronous>, transform_indices = @transform_6, window_bounds = array<i64: 1, 512>}, {pipeline_mode = #tpu.pipeline_mode<synchronous>, transform_indices = @transform_7, window_bounds = array<i64: 512, 256>}, {pipeline_mode = #tpu.pipeline_mode<synchronous>, transform_indices = @transform_8, window_bounds = array<i64: 1, 256>}, {pipeline_mode = #tpu.pipeline_mode<synchronous>, transform_indices = @transform_9, window_bounds = array<i64: 1, 256>}, {pipeline_mode = #tpu.pipeline_mode<synchronous>, transform_indices = @transform_10, window_bounds = array<i64: 1, 1>}, {transform_indices = @transform_11, window_bounds = array<i64: 1, 8>}]} {
    %c0 = arith.constant 0 : index
    %c0_0 = arith.constant 0 : index
    %0 = vector.load %arg1[%c0, %c0_0] : memref<8x784xf32, #tpu.memory_space<vmem>>, vector<8x784xf32>
    %1 = arith.truncf %0 : vector<8x784xf32> to vector<8x784xbf16>
    %c0_1 = arith.constant 0 : index
    %c0_2 = arith.constant 0 : index
    %2 = vector.load %arg2[%c0_1, %c0_2] : memref<8x16xf32, #tpu.memory_space<vmem>>, vector<8x16xf32>
    %3 = arith.truncf %2 : vector<8x16xf32> to vector<8x16xbf16>
    %c0_3 = arith.constant 0 : index
    %c0_4 = arith.constant 0 : index
    %4 = vector.load %arg3[%c0_3, %c0_4] : memref<784x1024xbf16, #tpu.memory_space<vmem>>, vector<784x1024xbf16>
    %cst = arith.constant dense<0.000000e+00> : vector<8x1024xf32>
    %5 = tpu.matmul %1, %4, %cst {dimension_numbers = #tpu.dot_dimension_numbers<[1], [0], [0], [1], [0, 0, 1, 1], [], []>} : vector<8x784xbf16>, vector<784x1024xbf16>, vector<8x1024xf32> -> vector<8x1024xf32>
    %c0_5 = arith.constant 0 : index
    %c0_6 = arith.constant 0 : index
    %6 = vector.load %arg4[%c0_5, %c0_6] : memref<16x1024xbf16, #tpu.memory_space<vmem>>, vector<16x1024xbf16>
    %cst_7 = arith.constant dense<0.000000e+00> : vector<8x1024xf32>
    %7 = tpu.matmul %3, %6, %cst_7 {dimension_numbers = #tpu.dot_dimension_numbers<[1], [0], [0], [1], [0, 0, 1, 1], [], []>} : vector<8x16xbf16>, vector<16x1024xbf16>, vector<8x1024xf32> -> vector<8x1024xf32>
    %8 = arith.addf %5, %7 : vector<8x1024xf32>
    %c0_8 = arith.constant 0 : index
    %c0_9 = arith.constant 0 : index
    %9 = vector.load %arg5[%c0_8, %c0_9] : memref<1x1024xf32, #tpu.memory_space<vmem>>, vector<1x1024xf32>
    %10 = vector.broadcast %9 : vector<1x1024xf32> to vector<8x1024xf32>
    %11 = arith.addf %8, %10 : vector<8x1024xf32>
    %cst_10 = arith.constant 2.000000e-01 : f32
    %12 = vector.broadcast %cst_10 : f32 to vector<8x1024xf32>
    %13 = arith.mulf %12, %11 : vector<8x1024xf32>
    %14 = arith.maximumf %11, %13 : vector<8x1024xf32>
    %15 = arith.truncf %14 : vector<8x1024xf32> to vector<8x1024xbf16>
    %c0_11 = arith.constant 0 : index
    %c0_12 = arith.constant 0 : index
    %16 = vector.load %arg6[%c0_11, %c0_12] : memref<1024x512xbf16, #tpu.memory_space<vmem>>, vector<1024x512xbf16>
    %cst_13 = arith.constant dense<0.000000e+00> : vector<8x512xf32>
    %17 = tpu.matmul %15, %16, %cst_13 {dimension_numbers = #tpu.dot_dimension_numbers<[1], [0], [0], [1], [0, 0, 1, 1], [], []>} : vector<8x1024xbf16>, vector<1024x512xbf16>, vector<8x512xf32> -> vector<8x512xf32>
    %c0_14 = arith.constant 0 : index
    %c0_15 = arith.constant 0 : index
    %18 = vector.load %arg7[%c0_14, %c0_15] : memref<1x512xf32, #tpu.memory_space<vmem>>, vector<1x512xf32>
    %19 = vector.broadcast %18 : vector<1x512xf32> to vector<8x512xf32>
    %20 = arith.addf %17, %19 : vector<8x512xf32>
    %cst_16 = arith.constant 2.000000e-01 : f32
    %21 = vector.broadcast %cst_16 : f32 to vector<8x512xf32>
    %22 = arith.mulf %21, %20 : vector<8x512xf32>
    %23 = arith.maximumf %20, %22 : vector<8x512xf32>
    %24 = arith.truncf %23 : vector<8x512xf32> to vector<8x512xbf16>
    %c0_17 = arith.constant 0 : index
    %c0_18 = arith.constant 0 : index
    %25 = vector.load %arg8[%c0_17, %c0_18] : memref<512x256xbf16, #tpu.memory_space<vmem>>, vector<512x256xbf16>
    %cst_19 = arith.constant dense<0.000000e+00> : vector<8x256xf32>
    %26 = tpu.matmul %24, %25, %cst_19 {dimension_numbers = #tpu.dot_dimension_numbers<[1], [0], [0], [1], [0, 0, 1, 1], [], []>} : vector<8x512xbf16>, vector<512x256xbf16>, vector<8x256xf32> -> vector<8x256xf32>
    %c0_20 = arith.constant 0 : index
    %c0_21 = arith.constant 0 : index
    %27 = vector.load %arg9[%c0_20, %c0_21] : memref<1x256xf32, #tpu.memory_space<vmem>>, vector<1x256xf32>
    %28 = vector.broadcast %27 : vector<1x256xf32> to vector<8x256xf32>
    %29 = arith.addf %26, %28 : vector<8x256xf32>
    %cst_22 = arith.constant 2.000000e-01 : f32
    %30 = vector.broadcast %cst_22 : f32 to vector<8x256xf32>
    %31 = arith.mulf %30, %29 : vector<8x256xf32>
    %32 = arith.maximumf %29, %31 : vector<8x256xf32>
    %c0_23 = arith.constant 0 : index
    %c0_24 = arith.constant 0 : index
    %33 = vector.load %arg10[%c0_23, %c0_24] : memref<1x256xbf16, #tpu.memory_space<vmem>>, vector<1x256xbf16>
    %34 = arith.extf %33 : vector<1x256xbf16> to vector<1x256xf32>
    %35 = vector.broadcast %34 : vector<1x256xf32> to vector<8x256xf32>
    %36 = arith.mulf %32, %35 : vector<8x256xf32>
    %cst_25 = arith.constant dense<0.000000e+00> : vector<8xf32>
    %37 = vector.multi_reduction <add>, %36, %cst_25 [1] : vector<8x256xf32> to vector<8xf32>
    %c0_26 = arith.constant 0 : index
    %c0_27 = arith.constant 0 : index
    %38 = vector.load %arg11[%c0_26, %c0_27] : memref<1x1xf32, #tpu.memory_space<vmem>>, vector<1x1xf32>
    %39 = vector.shape_cast %37 : vector<8xf32> to vector<1x8xf32>
    %40 = vector.broadcast %38 : vector<1x1xf32> to vector<1x8xf32>
    %41 = arith.addf %39, %40 : vector<1x8xf32>
    %42 = arith.negf %41 : vector<1x8xf32>
    %43 = math.exp %42 : vector<1x8xf32>
    %cst_28 = arith.constant 1.000000e+00 : f32
    %44 = vector.broadcast %cst_28 : f32 to vector<1x8xf32>
    %45 = arith.addf %44, %43 : vector<1x8xf32>
    %46 = arith.divf %44, %45 : vector<1x8xf32>
    %c0_29 = arith.constant 0 : index
    %c0_30 = arith.constant 0 : index
    %47 = vector.load %arg12[%c0_29, %c0_30] : memref<1x8xf32, #tpu.memory_space<vmem>>, vector<1x8xf32>
    tpu.vector_store %arg12[%c0_29, %c0_30], %46 {strides = array<i32>} : memref<1x8xf32, #tpu.memory_space<vmem>>, vector<1x8xf32>,
    return
  }
  func.func @transform_0(%arg0: i32) -> (i32, i32) {
    %c0_i32 = arith.constant 0 : i32
    %c0_i32_0 = arith.constant 0 : i32
    return %arg0, %c0_i32 : i32, i32
  }
  func.func @transform_1(%arg0: i32) -> (i32, i32) {
    %c0_i32 = arith.constant 0 : i32
    %c0_i32_0 = arith.constant 0 : i32
    return %arg0, %c0_i32 : i32, i32
  }
  func.func @transform_2(%arg0: i32) -> (i32, i32) {
    %c0_i32 = arith.constant 0 : i32
    %c0_i32_0 = arith.constant 0 : i32
    %c0_i32_1 = arith.constant 0 : i32
    return %c0_i32, %c0_i32_0 : i32, i32
  }
  func.func @transform_3(%arg0: i32) -> (i32, i32) {
    %c0_i32 = arith.constant 0 : i32
    %c0_i32_0 = arith.constant 0 : i32
    %c0_i32_1 = arith.constant 0 : i32
    return %c0_i32, %c0_i32_0 : i32, i32
  }
  func.func @transform_4(%arg0: i32) -> (i32, i32) {
    %c0_i32 = arith.constant 0 : i32
    %c0_i32_0 = arith.constant 0 : i32
    %c0_i32_1 = arith.constant 0 : i32
    return %c0_i32, %c0_i32_0 : i32, i32
  }
  func.func @transform_5(%arg0: i32) -> (i32, i32) {
    %c0_i32 = arith.constant 0 : i32
    %c0_i32_0 = arith.constant 0 : i32
    %c0_i32_1 = arith.constant 0 : i32
    return %c0_i32, %c0_i32_0 : i32, i32
  }
  func.func @transform_6(%arg0: i32) -> (i32, i32) {
    %c0_i32 = arith.constant 0 : i32
    %c0_i32_0 = arith.constant 0 : i32
    %c0_i32_1 = arith.constant 0 : i32
    return %c0_i32, %c0_i32_0 : i32, i32
  }
  func.func @transform_7(%arg0: i32) -> (i32, i32) {
    %c0_i32 = arith.constant 0 : i32
    %c0_i32_0 = arith.constant 0 : i32
    %c0_i32_1 = arith.constant 0 : i32
    return %c0_i32, %c0_i32_0 : i32, i32
  }
  func.func @transform_8(%arg0: i32) -> (i32, i32) {
    %c0_i32 = arith.constant 0 : i32
    %c0_i32_0 = arith.constant 0 : i32
    %c0_i32_1 = arith.constant 0 : i32
    return %c0_i32, %c0_i32_0 : i32, i32
  }
  func.func @transform_9(%arg0: i32) -> (i32, i32) {
    %c0_i32 = arith.constant 0 : i32
    %c0_i32_0 = arith.constant 0 : i32
    %c0_i32_1 = arith.constant 0 : i32
    return %c0_i32, %c0_i32_0 : i32, i32
  }
  func.func @transform_10(%arg0: i32) -> (i32, i32) {
    %c0_i32 = arith.constant 0 : i32
    %c0_i32_0 = arith.constant 0 : i32
    %c0_i32_1 = arith.constant 0 : i32
    return %c0_i32, %c0_i32_0 : i32, i32
  }
  func.func @transform_11(%arg0: i32) -> (i32, i32) {
    %c0_i32 = arith.constant 0 : i32
    %c0_i32_0 = arith.constant 0 : i32
    return %c0_i32, %arg0 : i32, i32
  }
}

</mosaic_0001>

<bundles_post_ra>
// kernel: discriminator_forward.1
= control target key start
LH: loop header
LB: loop body
LE: loop exit
PB: predicated region body
PF: predicated region fallthrough
CT: control target
= control target key end

     0   :  { %s10356_s0 = inlined_call_operand.vmem [shape: f32[8,784], index: 0, kind: input, shape index: {}]   ;;  %s10357_s1 = inlined_call_operand.vmem [shape: f32[8,16], index: 1, kind: input, shape index: {}]   ;;  %s10358_s2 = inlined_call_operand.hbm [shape: bf16[784,1024], index: 2, kind: input, shape index: {}]   ;;  %s10359_s3 = inlined_call_operand.hbm [shape: bf16[16,1024], index: 3, kind: input, shape index: {}]   ;;  %s10360_s4 = inlined_call_operand.hbm [shape: f32[1,1024], index: 4, kind: input, shape index: {}]   ;;  %s10361_s5 = inlined_call_operand.hbm [shape: bf16[1024,512], index: 5, kind: input, shape index: {}]   ;;  %s10362_s6 = inlined_call_operand.hbm [shape: f32[1,512], index: 6, kind: input, shape index: {}]   ;;  %s10363_s7 = inlined_call_operand.hbm [shape: bf16[512,256], index: 7, kind: input, shape index: {}]   ;;  %s10364_s8 = inlined_call_operand.hbm [shape: f32[1,256], index: 8, kind: input, shape index: {}]   ;;  %s10365_s9 = inlined_call_operand.hbm [shape: bf16[1,256], index: 9, kind: input, shape index: {}]   ;;  %s10366_s10 = inlined_call_operand.<no memory space> [shape: f32[1,1], index: 10, kind: input, shape index: {}]   ;;  %s10367_s11 = inlined_call_operand.hbm [shape: f32[1,8], index: 11, kind: output, shape index: {}]  }
   0x1   :  { %v16_v0 = vstv %s10366_s10 }
   0x2   :  { %17 = vst [vmem:[#allocation2] sm:$0x1] %v16_v0 }
   0x3   :  { %18 = vsyncpa [#allocation4], 0 }
   0x4   :  { %19 = vsyncpa [#allocation7], 0 }
   0x5   :  { %20 = vsyncpa [#allocation10], 0 }
   0x6   :  { %21 = vsyncpa [#allocation13], 0 }
   0x7   :  { %22 = vsyncpa [#allocation16], 0 }
   0x8   :  { %23 = vsyncpa [#allocation5], 0  ;;  %s45_s21 = sshll.u32 %s10359_s3, 4  ;;  %s9873_s22 = smov [#allocation6]   ;;  %s46_s21 = int_to_ptr.hbm [resolvable:$true] %s45_s21 }
   0x9   :  { %s47_s23 = sshll.u32 %s9873_s22, 4  ;;  %s69_s26 = sshll.u32 %s10361_s5, 4  ;;  %s48_s23 = int_to_ptr.vmem [resolvable:$true] %s47_s23  ;;  %s70_s26 = int_to_ptr.hbm [resolvable:$true] %s69_s26 }
   0xa   :  { %s9874_s10 = smov 512   ;;  %s9875_s27 = smov 32  }
   0xb   :  { %53 = dma.hbm_to_vmem [thread:$0]  %s46_s21, 1024, %s48_s23, [#allocation7], %s9874_s10, %s9874_s10, %s9875_s27  }
   0xc   :  { %s9876_s28 = smov [#allocation9]   ;;  %s9877_s30 = smov 256  }
   0xd   :  { %s71_s29 = sshll.u32 %s9876_s28, 4  ;;  %s9878_s12 = smov 16   ;;  %s72_s29 = int_to_ptr.vmem [resolvable:$true] %s71_s29 }
   0xe   :  { %77 = dma.hbm_to_vmem [thread:$0]  %s70_s26, 32768, %s72_s29, [#allocation10], %s9877_s30, %s9877_s30, %s9878_s12  }
   0xf   :  { %s93_s14 = sshll.u32 %s10363_s7, 4  ;;  %s9879_s15 = smov [#allocation12]   ;;  %s94_s14 = int_to_ptr.hbm [resolvable:$true] %s93_s14 }
  0x10   :  { %s95_s16 = sshll.u32 %s9879_s15, 4  ;;  %s32_s18 = sshll.u32 %s10358_s2, 4  ;;  %s96_s16 = int_to_ptr.vmem [resolvable:$true] %s95_s16  ;;  %s33_s18 = int_to_ptr.hbm [resolvable:$true] %s32_s18 }
  0x11   :  { %s9880_s19 = smov 128   ;;  %s9881_s20 = smov 8  }
  0x12   :  { %101 = dma.hbm_to_vmem [thread:$0]  %s94_s14, 8192, %s96_s16, [#allocation13], %s9880_s19, %s9880_s19, %s9881_s20  }
  0x13   :  { %s9882_s21 = smov [#allocation3]   ;;  %s59_s25 = sshll.u32 %s10360_s4, 4  ;;  %s60_s25 = int_to_ptr.hbm [resolvable:$true] %s59_s25 }
  0x14   :  { %s34_s22 = sshll.u32 %s9882_s21, 4  ;;  %s83_s28 = sshll.u32 %s10362_s6, 4  ;;  %s35_s22 = int_to_ptr.vmem [resolvable:$true] %s34_s22  ;;  %s84_s28 = int_to_ptr.hbm [resolvable:$true] %s83_s28 }
  0x15   :  { %40 = dma.hbm_to_vmem [thread:$0]  %s33_s18, 50176, %s35_s22, [#allocation4], %s9874_s10, %s9874_s10, %s9875_s27  }
  0x16   :  { %s9883_s29 = smov [#allocation8]   ;;  %s9884_s2 = smov [#allocation11]  }
  0x17   :  { %s61_s30 = sshll.u32 %s9883_s29, 4  ;;  %s85_s12 = sshll.u32 %s9884_s2, 4  ;;  %s62_s30 = int_to_ptr.vmem [resolvable:$true] %s61_s30  ;;  %s86_s12 = int_to_ptr.vmem [resolvable:$true] %s85_s12 }
  0x18   :  { %64 = dma.hbm_to_vmem [thread:$0]  %s60_s25, 128, %s62_s30, [#allocation7]  }
  0x19   :  { %s107_s14 = sshll.u32 %s10364_s8, 4  ;;  %s118_s27 = sshll.u32 %s10365_s9, 4  ;;  %s108_s14 = int_to_ptr.hbm [resolvable:$true] %s107_s14  ;;  %s119_s27 = int_to_ptr.hbm [resolvable:$true] %s118_s27 }
  0x1a   :  { %88 = dma.hbm_to_vmem [thread:$0]  %s84_s28, 64, %s86_s12, [#allocation10]  }
  0x1b   :  { %s9885_s15 = smov [#allocation14]   ;;  %s9886_s16 = smov [#allocation15]  }
  0x1c   :  { %s109_s6 = sshll.u32 %s9885_s15, 4  ;;  %s120_s17 = sshll.u32 %s9886_s16, 4  ;;  %s110_s6 = int_to_ptr.vmem [resolvable:$true] %s109_s6  ;;  %s121_s17 = int_to_ptr.vmem [resolvable:$true] %s120_s17 }
  0x1d   :  { %112 = dma.hbm_to_vmem [thread:$0]  %s108_s14, 32, %s110_s6, [#allocation13]  }
  0x1e   :  { %123 = dma.hbm_to_vmem [thread:$0]  %s119_s27, 32, %s121_s17, [#allocation16]  }
  0x1f   :  { %9861 = dma.done.wait [#allocation4], 50176  }
  0x20   :  { %9862 = vsyncadd [#allocation4], 4294917120 }
  0x21   :  { %9863 = dma.done.wait [#allocation7], 1152  }
  0x22   :  { %9864 = vsyncadd [#allocation7], 4294966144 }
  0x23   :  { %9865 = dma.done.wait [#allocation10], 32832  }
  0x24   :  { %9866 = vsyncadd [#allocation10], 4294934464 }
  0x25   :  { %9867 = dma.done.wait [#allocation13], 8224  }
  0x26   :  { %9868 = vsyncadd [#allocation13], 4294959072 }
  0x27   :  { %9869 = dma.done.wait [#allocation16], 32  }
  0x28   :  { %9870 = vsyncadd [#allocation16], 4294967264  ;;  %v6007_v1 = vld [vmem:[#allocation6] sm:$0xf]  ;;  %v9294_v3 = vld [vmem:[#allocation6 + $0x4] sm:$0xf] }
  0x29   :  { %v9298_v2 = vld [vmem:[#allocation6 + $0x1c] sm:$0xf0]  ;;  %v6009_v5 = vld [vmem:[#allocation6 + $0x20] sm:$0xf0]  ;;  %v6015_v6 = vld [vmem:[#allocation6 + $0x8] sm:$0xf] }
  0x2a   :  { %v6008_v4 = vor.u32 %v9298_v2, %v6007_v1  ;;  %v9299_v7 = vld [vmem:[#allocation6 + $0x24] sm:$0xf0]  ;;  %v6012_v8 = vor.u32 %v9294_v3, %v6009_v5  ;;  %v6023_v10 = vld [vmem:[#allocation6 + $0x10] sm:$0xf]  ;;  %v6271_v12 = vld [vmem:[#allocation3 + $0x1c0] sm:$0xf] }
  0x2b   :  { %v6016_v9 = vor.u32 %v9299_v7, %v6015_v6  ;;  %v9300_v11 = vld [vmem:[#allocation6 + $0x2c] sm:$0xf0]  ;;  %v8962_v14 = vld [vmem:[#allocation3 + $0x1dc] sm:$0xf0]  ;;  %vm615_vm0 = vcmask 130048   ;;  %s5991_s13 = sshll.u32 %s10367_s11, 4  ;;  %s5992_s13 = int_to_ptr.hbm [resolvable:$true] %s5991_s13 }
  0x2c   :  { %626 = vmatpush.bf16.msra.mxu3 %v6008_v4  ;;  %v6024_v13 = vor.u32 %v9300_v11, %v6023_v10  ;;  %v173_v15 = vld [vmem:[%s10357_s1] sm:$0xff]  ;;  %v9296_v16 = vld [vmem:[#allocation6 + $0x14] sm:$0xf]  ;;  %639 = vmatpush.bf16.msra.mxu1 %v6012_v8  ;;  %v6272_v17 = vor.u32 %v8962_v14, %v6271_v12  ;;  %v6031_v20 = vld [vmem:[#allocation6 + $0x18] sm:$0xf]  ;;  %vm5982_vm5 = vcmask 57344  }
  0x2d   :  { %652 = vmatpush.bf16.msra.mxu2 %v6016_v9  ;;  %v9979_v18 = vpack.c.bf16 %v173_v15, %v173_v15  ;;  %v6025_v19 = vld [vmem:[#allocation6 + $0x30] sm:$0xf0]  ;;  %v9301_v21 = vld [vmem:[#allocation6 + $0x34] sm:$0xf0]  ;;  %v6527_v24 = vld [vmem:[#allocation3 + $0x3c0] sm:$0xf] }
  0x2e   :  { %678 = vmatpush.bf16.msra.mxu0 %v6024_v13  ;;  %v6028_v22 = vor.u32 %v9296_v16, %v6025_v19  ;;  %v6032_v23 = vor.u32 %v9301_v21, %v6031_v20  ;;  %v9026_v25 = vld [vmem:[#allocation3 + $0x3dc] sm:$0xf0]  ;;  %v9295_v48 = vld [vmem:[#allocation6 + $0xc] sm:$0xf]  ;;  %v9297_v55 = vld [vmem:[#allocation6 + $0x1c] sm:$0xf] }
  0x2f   :  { %v6783_v26 = vld [vmem:[#allocation3 + $0x5c0] sm:$0xf]  ;;  %6037 = vmatmul.msk.bf16.vlgmr.msra.gmra.mxu3 %vm615_vm0, %v9979_v18  ;;  %v6528_v27 = vor.u32 %v9026_v25, %v6527_v24  ;;  %6038 = vmatmul.msk.bf16.vlgmr.msra.gmra.mxu1 %vm615_vm0, %v9979_v18  ;;  %v6017_v49 = vld [vmem:[#allocation6 + $0x28] sm:$0xf0]  ;;  %v6033_v59 = vld [vmem:[#allocation6 + $0x38] sm:$0xf0] }
  0x30   :  { %v9090_v28 = vld [vmem:[#allocation3 + $0x5dc] sm:$0xf0]  ;;  %6039 = vmatmul.msk.bf16.vlgmr.msra.gmra.mxu2 %vm615_vm0, %v9979_v18  ;;  %691 = vmatpush.bf16.msrb.mxu1 %v6028_v22  ;;  %v6020_v50 = vor.u32 %v9295_v48, %v6017_v49  ;;  %v6036_v62 = vor.u32 %v9297_v55, %v6033_v59 }
  0x31   :  { %v6239_v29 = vld [vmem:[#allocation3 + $0x180] sm:$0xf]  ;;  %v6784_v31 = vor.u32 %v9090_v28, %v6783_v26  ;;  %704 = vmatpush.bf16.msrb.mxu2 %v6032_v23  ;;  %6041 = vmatmul.msk.bf16.vlgmr.msra.gmra.mxu0 %vm615_vm0, %v9979_v18 }
  0x32   :  { %2686 = vmatpush.bf16.msrb.mxu0 %v6272_v17  ;;  %v8954_v30 = vld [vmem:[#allocation3 + $0x19c] sm:$0xf0]  ;;  %665 = vmatpush.bf16.msrb.mxu3 %v6020_v50 }
  0x33   :  { %v6240_v32 = vor.u32 %v8954_v30, %v6239_v29  ;;  %v6495_v33 = vld [vmem:[#allocation3 + $0x380] sm:$0xf] }
  0x34   :  { %v9018_v34 = vld [vmem:[#allocation3 + $0x39c] sm:$0xf0]  ;;  %2699 = vmatpush.bf16.msra.mxu1 %v6528_v27 }
  0x35   :  { %v6751_v35 = vld [vmem:[#allocation3 + $0x580] sm:$0xf]  ;;  %2712 = vmatpush.bf16.msra.mxu2 %v6784_v31  ;;  %v6496_v39 = vor.u32 %v9018_v34, %v6495_v33 }
  0x36   :  { %v9082_v36 = vld [vmem:[#allocation3 + $0x59c] sm:$0xf0]  ;;  %2687 = vmatpush.bf16.msrb.mxu0 %v6240_v32  ;;  %717 = vmatpush.bf16.msra.mxu3 %v6036_v62 }
  0x37   :  { %v6207_v37 = vld [vmem:[#allocation3 + $0x140] sm:$0xf]  ;;  %v6752_v40 = vor.u32 %v9082_v36, %v6751_v35 }
  0x38   :  { %v8946_v38 = vld [vmem:[#allocation3 + $0x15c] sm:$0xf0]  ;;  %2700 = vmatpush.bf16.msra.mxu1 %v6496_v39 }
  0x39   :  { %v6463_v41 = vld [vmem:[#allocation3 + $0x340] sm:$0xf]  ;;  %v6208_v43 = vor.u32 %v8946_v38, %v6207_v37  ;;  %2713 = vmatpush.bf16.msra.mxu2 %v6752_v40 }
  0x3a   :  { %v9010_v42 = vld [vmem:[#allocation3 + $0x35c] sm:$0xf0] }
  0x3b   :  { %v6719_v44 = vld [vmem:[#allocation3 + $0x540] sm:$0xf]  ;;  %v6464_v51 = vor.u32 %v9010_v42, %v6463_v41  ;;  %2688 = vmatpush.bf16.msrb.mxu0 %v6208_v43 }
  0x3c   :  { %v9074_v45 = vld [vmem:[#allocation3 + $0x55c] sm:$0xf0] }
  0x3d   :  { %v6175_v46 = vld [vmem:[#allocation3 + $0x100] sm:$0xf]  ;;  %v6720_v52 = vor.u32 %v9074_v45, %v6719_v44  ;;  %2701 = vmatpush.bf16.msra.mxu1 %v6464_v51 }
  0x3e   :  { %v8938_v47 = vld [vmem:[#allocation3 + $0x11c] sm:$0xf0] }
  0x3f   :  { %v6431_v53 = vld [vmem:[#allocation3 + $0x300] sm:$0xf]  ;;  %v6176_v56 = vor.u32 %v8938_v47, %v6175_v46  ;;  %2714 = vmatpush.bf16.msra.mxu2 %v6720_v52  ;;  %6040 = vmatmul.msk.bf16.vlgmr.msrb.gmra.mxu3 %vm615_vm0, %v9979_v18 }
  0x40   :  { %v9002_v54 = vld [vmem:[#allocation3 + $0x31c] sm:$0xf0]  ;;  %6042 = vmatmul.msk.bf16.vlgmr.msrb.gmra.mxu1 %vm615_vm0, %v9979_v18  ;;  %6043 = vmatmul.msk.bf16.vlgmr.msrb.gmra.mxu2 %vm615_vm0, %v9979_v18 }
  0x41   :  { %v6687_v57 = vld [vmem:[#allocation3 + $0x500] sm:$0xf]  ;;  %v6432_v63 = vor.u32 %v9002_v54, %v6431_v53  ;;  %2689 = vmatpush.bf16.msrb.mxu0 %v6176_v56  ;;  %v160_v56 = vld [vmem:[%s10356_s0 + $0x8] sm:$0xff] }
  0x42   :  { %v9066_v58 = vld [vmem:[#allocation3 + $0x51c] sm:$0xf0] }
  0x43   :  { %v6143_v60 = vld [vmem:[#allocation3 + $0xc0] sm:$0xf]  ;;  %v6688_v0 = vor.u32 %v9066_v58, %v6687_v57  ;;  %2702 = vmatpush.bf16.msra.mxu1 %v6432_v63 }
  0x44   :  { %v8930_v61 = vld [vmem:[#allocation3 + $0xdc] sm:$0xf0] }
  0x45   :  { %v7039_v1 = vld [vmem:[#allocation3 + $0x7c0] sm:$0xf]  ;;  %v6144_v4 = vor.u32 %v8930_v61, %v6143_v60  ;;  %2715 = vmatpush.bf16.msra.mxu2 %v6688_v0  ;;  %v161_v61 = vld [vmem:[%s10356_s0 + $0x10] sm:$0xff] }
  0x46   :  { %v9154_v2 = vld [vmem:[#allocation3 + $0x7dc] sm:$0xf0] }
  0x47   :  { %v6399_v3 = vld [vmem:[#allocation3 + $0x2c0] sm:$0xf]  ;;  %v7040_v10 = vor.u32 %v9154_v2, %v7039_v1  ;;  %2690 = vmatpush.bf16.msrb.mxu0 %v6144_v4  ;;  %v9022_v1 = vld [vmem:[#allocation3 + $0x3c4] sm:$0xf]  ;;  %v10006_v4 = vpack.c.bf16 %v160_v56, %v160_v56 }
  0x48   :  { %v8994_v5 = vld [vmem:[#allocation3 + $0x2dc] sm:$0xf0] }
  0x49   :  { %v6655_v6 = vld [vmem:[#allocation3 + $0x4c0] sm:$0xf]  ;;  %v6400_v11 = vor.u32 %v8994_v5, %v6399_v3  ;;  %2725 = vmatpush.bf16.msrb.mxu3 %v7040_v10 }
  0x4a   :  { %v9058_v7 = vld [vmem:[#allocation3 + $0x4dc] sm:$0xf0] }
  0x4b   :  { %v6111_v8 = vld [vmem:[#allocation3 + $0x80] sm:$0xf]  ;;  %v6656_v12 = vor.u32 %v9058_v7, %v6655_v6  ;;  %2703 = vmatpush.bf16.msra.mxu1 %v6400_v11  ;;  %v6529_v6 = vld [vmem:[#allocation3 + $0x3e0] sm:$0xf0] }
  0x4c   :  { %v8922_v9 = vld [vmem:[#allocation3 + $0x9c] sm:$0xf0] }
  0x4d   :  { %v7007_v13 = vld [vmem:[#allocation3 + $0x780] sm:$0xf]  ;;  %v6112_v16 = vor.u32 %v8922_v9, %v6111_v8  ;;  %2716 = vmatpush.bf16.msra.mxu2 %v6656_v12  ;;  %v10009_v9 = vpack.c.bf16 %v161_v61, %v161_v61 }
  0x4e   :  { %v9146_v14 = vld [vmem:[#allocation3 + $0x79c] sm:$0xf0] }
  0x4f   :  { %v6367_v15 = vld [vmem:[#allocation3 + $0x280] sm:$0xf]  ;;  %v7008_v23 = vor.u32 %v9146_v14, %v7007_v13  ;;  %2691 = vmatpush.bf16.msrb.mxu0 %v6112_v16  ;;  %6044 = vmatmul.msk.bf16.vlgmr.msra.gmra.mxu3 %vm615_vm0, %v9979_v18  ;;  %v6532_v14 = vor.u32 %v9022_v1, %v6529_v6  ;;  %v9014_v16 = vld [vmem:[#allocation3 + $0x384] sm:$0xf] }
  0x50   :  { %v8986_v17 = vld [vmem:[#allocation3 + $0x29c] sm:$0xf0]  ;;  %v6209_v6 = vld [vmem:[#allocation3 + $0x160] sm:$0xf0] }
  0x51   :  { %v6623_v19 = vld [vmem:[#allocation3 + $0x480] sm:$0xf]  ;;  %v6368_v24 = vor.u32 %v8986_v17, %v6367_v15  ;;  %2726 = vmatpush.bf16.msrb.mxu3 %v7008_v23 }
  0x52   :  { %v9050_v20 = vld [vmem:[#allocation3 + $0x49c] sm:$0xf0] }
  0x53   :  { %v6079_v21 = vld [vmem:[#allocation3 + $0x40] sm:$0xf]  ;;  %v6624_v25 = vor.u32 %v9050_v20, %v6623_v19  ;;  %2704 = vmatpush.bf16.msra.mxu1 %v6368_v24 }
  0x54   :  { %v8914_v22 = vld [vmem:[#allocation3 + $0x5c] sm:$0xf0] }
  0x55   :  { %v6975_v26 = vld [vmem:[#allocation3 + $0x740] sm:$0xf]  ;;  %v6080_v29 = vor.u32 %v8914_v22, %v6079_v21  ;;  %2717 = vmatpush.bf16.msra.mxu2 %v6624_v25  ;;  %v6497_v21 = vld [vmem:[#allocation3 + $0x3a0] sm:$0xf0] }
  0x56   :  { %v9138_v27 = vld [vmem:[#allocation3 + $0x75c] sm:$0xf0]  ;;  %v6500_v18 = vor.u32 %v9014_v16, %v6497_v21  ;;  %v8934_v21 = vld [vmem:[#allocation3 + $0x104] sm:$0xf] }
  0x57   :  { %v6335_v28 = vld [vmem:[#allocation3 + $0x240] sm:$0xf]  ;;  %v6976_v35 = vor.u32 %v9138_v27, %v6975_v26  ;;  %2692 = vmatpush.bf16.msrb.mxu0 %v6080_v29 }
  0x58   :  { %v8978_v30 = vld [vmem:[#allocation3 + $0x25c] sm:$0xf0] }
  0x59   :  { %v6591_v31 = vld [vmem:[#allocation3 + $0x440] sm:$0xf]  ;;  %v6336_v38 = vor.u32 %v8978_v30, %v6335_v28  ;;  %2727 = vmatpush.bf16.msrb.mxu3 %v6976_v35  ;;  %v9006_v28 = vld [vmem:[#allocation3 + $0x344] sm:$0xf] }
  0x5a   :  { %v9042_v32 = vld [vmem:[#allocation3 + $0x45c] sm:$0xf0] }
  0x5b   :  { %v6047_v33 = vld [vmem:[#allocation3] sm:$0xf]  ;;  %v6592_v39 = vor.u32 %v9042_v32, %v6591_v31  ;;  %2705 = vmatpush.bf16.msra.mxu1 %v6336_v38  ;;  %v6465_v32 = vld [vmem:[#allocation3 + $0x360] sm:$0xf0] }
  0x5c   :  { %v8906_v34 = vld [vmem:[#allocation3 + $0x1c] sm:$0xf0]  ;;  %v8958_v38 = vld [vmem:[#allocation3 + $0x1c4] sm:$0xf] }
  0x5d   :  { %v7295_v36 = vld [vmem:[#allocation3 + $0x9c0] sm:$0xf]  ;;  %v6048_v43 = vor.u32 %v8906_v34, %v6047_v33  ;;  %2718 = vmatpush.bf16.msra.mxu2 %v6592_v39  ;;  %v6273_v39 = vld [vmem:[#allocation3 + $0x1e0] sm:$0xf0] }
  0x5e   :  { %v9218_v37 = vld [vmem:[#allocation3 + $0x9dc] sm:$0xf0] }
  0x5f   :  { %v6943_v40 = vld [vmem:[#allocation3 + $0x700] sm:$0xf]  ;;  %v7296_v47 = vor.u32 %v9218_v37, %v7295_v36  ;;  %2693 = vmatpush.bf16.msrb.mxu0 %v6048_v43 }
  0x60   :  { %v9130_v41 = vld [vmem:[#allocation3 + $0x71c] sm:$0xf0] }
  0x61   :  { %v159_v42 = vld [vmem:[%s10356_s0] sm:$0xff]  ;;  %v6944_v51 = vor.u32 %v9130_v41, %v6943_v40  ;;  %v6468_v40 = vor.u32 %v9006_v28, %v6465_v32 }
  0x62   :  { %v6303_v44 = vld [vmem:[#allocation3 + $0x200] sm:$0xf]  ;;  %v9998_v54 = vpack.c.bf16 %v159_v42, %v159_v42  ;;  %v8998_v42 = vld [vmem:[#allocation3 + $0x304] sm:$0xf] }
  0x63   :  { %v8970_v45 = vld [vmem:[#allocation3 + $0x21c] sm:$0xf0]  ;;  %2738 = vmatpush.bf16.msra.mxu0 %v7296_v47  ;;  %2728 = vmatpush.bf16.msrb.mxu3 %v6944_v51 }
  0x64   :  { %v6559_v46 = vld [vmem:[#allocation3 + $0x400] sm:$0xf]  ;;  %v6304_v55 = vor.u32 %v8970_v45, %v6303_v44  ;;  %2694 = vmatmul.bf16.vlgmr.msrb.gmra.mxu0 %v9998_v54 }
  0x65   :  { %v9034_v48 = vld [vmem:[#allocation3 + $0x41c] sm:$0xf0] }
  0x66   :  { %v7551_v49 = vld [vmem:[#allocation3 + $0xbc0] sm:$0xf]  ;;  %v6560_v59 = vor.u32 %v9034_v48, %v6559_v46  ;;  %2706 = vmatpush.bf16.msra.mxu1 %v6304_v55  ;;  %v6433_v46 = vld [vmem:[#allocation3 + $0x320] sm:$0xf0]  ;;  %v165_v55 = vld [vmem:[%s10356_s0 + $0x30] sm:$0xff] }
  0x67   :  { %v9282_v50 = vld [vmem:[#allocation3 + $0xbdc] sm:$0xf0]  ;;  %v6436_v56 = vor.u32 %v8998_v42, %v6433_v46  ;;  %v8966_v42 = vld [vmem:[#allocation3 + $0x204] sm:$0xf] }
  0x68   :  { %v7263_v52 = vld [vmem:[#allocation3 + $0x980] sm:$0xf]  ;;  %v7552_v60 = vor.u32 %v9282_v50, %v7551_v49  ;;  %2719 = vmatpush.bf16.msra.mxu2 %v6560_v59  ;;  %v6276_v49 = vor.u32 %v8958_v38, %v6273_v39  ;;  %v162_v50 = vld [vmem:[%s10356_s0 + $0x18] sm:$0xff]  ;;  %v8926_v38 = vld [vmem:[#allocation3 + $0xc4] sm:$0xf] }
  0x69   :  { %v9210_v53 = vld [vmem:[#allocation3 + $0x99c] sm:$0xf0]  ;;  %2707 = vmatmul.bf16.vlgmr.msra.gmra.mxu1 %v10006_v4  ;;  %v10021_v61 = vpack.c.bf16 %v162_v50, %v162_v50  ;;  %v6145_v39 = vld [vmem:[#allocation3 + $0xe0] sm:$0xf0] }
  0x6a   :  { %v6911_v57 = vld [vmem:[#allocation3 + $0x6c0] sm:$0xf]  ;;  %v7264_v0 = vor.u32 %v9210_v53, %v7263_v52  ;;  %2751 = vmatpush.bf16.msrb.mxu1 %v7552_v60  ;;  %v8950_v52 = vld [vmem:[#allocation3 + $0x184] sm:$0xf] }
  0x6b   :  { %v9122_v58 = vld [vmem:[#allocation3 + $0x6dc] sm:$0xf0]  ;;  %2720 = vmatmul.bf16.vlgmr.msra.gmra.mxu2 %v10009_v9  ;;  %v6241_v53 = vld [vmem:[#allocation3 + $0x1a0] sm:$0xf0] }
  0x6c   :  { %v7583_v62 = vld [vmem:[#allocation3 + $0xc00] sm:$0xf]  ;;  %v6912_v5 = vor.u32 %v9122_v58, %v6911_v57  ;;  %2739 = vmatpush.bf16.msra.mxu0 %v7264_v0  ;;  %v8990_v58 = vld [vmem:[#allocation3 + $0x2c4] sm:$0xf]  ;;  %v6244_v1 = vor.u32 %v8950_v52, %v6241_v53 }
  0x6d   :  { %v9290_v63 = vld [vmem:[#allocation3 + $0xc1c] sm:$0xf0]  ;;  %v9142_v46 = vld [vmem:[#allocation3 + $0x784] sm:$0xf] }
  0x6e   :  { %v7519_v2 = vld [vmem:[#allocation3 + $0xb80] sm:$0xf]  ;;  %v7584_v12 = vor.u32 %v9290_v63, %v7583_v62  ;;  %2729 = vmatpush.bf16.msrb.mxu3 %v6912_v5  ;;  %v6401_v62 = vld [vmem:[#allocation3 + $0x2e0] sm:$0xf0] }
  0x6f   :  { %v9274_v3 = vld [vmem:[#allocation3 + $0xb9c] sm:$0xf0]  ;;  %v8942_v5 = vld [vmem:[#allocation3 + $0x144] sm:$0xf] }
  0x70   :  { %v7231_v7 = vld [vmem:[#allocation3 + $0x940] sm:$0xf]  ;;  %v7520_v13 = vor.u32 %v9274_v3, %v7519_v2  ;;  %2771 = vmatpush.bf16.msrb.mxu2 %v7584_v12  ;;  %v10023_v2 = vpack.c.bf16 %v165_v55, %v165_v55  ;;  %v6212_v16 = vor.u32 %v8942_v5, %v6209_v6  ;;  %v7553_v50 = vld [vmem:[#allocation3 + $0xbe0] sm:$0xf0] }
  0x71   :  { %v9202_v8 = vld [vmem:[#allocation3 + $0x95c] sm:$0xf0]  ;;  %v6721_v52 = vld [vmem:[#allocation3 + $0x560] sm:$0xf0] }
  0x72   :  { %v6879_v10 = vld [vmem:[#allocation3 + $0x680] sm:$0xf]  ;;  %v7232_v15 = vor.u32 %v9202_v8, %v7231_v7  ;;  %2752 = vmatpush.bf16.msrb.mxu1 %v7520_v13  ;;  %v6404_v7 = vor.u32 %v8990_v58, %v6401_v62  ;;  %v6369_v13 = vld [vmem:[#allocation3 + $0x2a0] sm:$0xf0] }
  0x73   :  { %v9114_v11 = vld [vmem:[#allocation3 + $0x69c] sm:$0xf0]  ;;  %v8918_v53 = vld [vmem:[#allocation3 + $0x84] sm:$0xf] }
  0x74   :  { %v7487_v17 = vld [vmem:[#allocation3 + $0xb40] sm:$0xf]  ;;  %v6880_v20 = vor.u32 %v9114_v11, %v6879_v10  ;;  %2790 = vmatpush.bf16.msra.mxu2 %v6532_v14  ;;  %2740 = vmatpush.bf16.msra.mxu0 %v7232_v15  ;;  %v8982_v10 = vld [vmem:[#allocation3 + $0x284] sm:$0xf] }
  0x75   :  { %v9266_v19 = vld [vmem:[#allocation3 + $0xb5c] sm:$0xf0]  ;;  %v6113_v55 = vld [vmem:[#allocation3 + $0xa0] sm:$0xf0] }
  0x76   :  { %v7199_v22 = vld [vmem:[#allocation3 + $0x900] sm:$0xf]  ;;  %v7488_v26 = vor.u32 %v9266_v19, %v7487_v17  ;;  %2730 = vmatpush.bf16.msrb.mxu3 %v6880_v20  ;;  %v9086_v17 = vld [vmem:[#allocation3 + $0x5c4] sm:$0xf] }
  0x77   :  { %v9194_v23 = vld [vmem:[#allocation3 + $0x91c] sm:$0xf0]  ;;  %v6785_v19 = vld [vmem:[#allocation3 + $0x5e0] sm:$0xf0] }
  0x78   :  { %v6847_v24 = vld [vmem:[#allocation3 + $0x640] sm:$0xf]  ;;  %v7200_v27 = vor.u32 %v9194_v23, %v7199_v22  ;;  %2753 = vmatpush.bf16.msrb.mxu1 %v7488_v26  ;;  %2791 = vmatpush.bf16.msra.mxu2 %v6500_v18  ;;  %v6177_v22 = vld [vmem:[#allocation3 + $0x120] sm:$0xf0]  ;;  %v6788_v28 = vor.u32 %v9086_v17, %v6785_v19 }
  0x79   :  { %v9106_v25 = vld [vmem:[#allocation3 + $0x65c] sm:$0xf0]  ;;  %v8974_v23 = vld [vmem:[#allocation3 + $0x244] sm:$0xf]  ;;  %v6180_v32 = vor.u32 %v8934_v21, %v6177_v22 }
  0x7a   :  { %v7455_v29 = vld [vmem:[#allocation3 + $0xb00] sm:$0xf]  ;;  %v6848_v31 = vor.u32 %v9106_v25, %v6847_v24  ;;  %2741 = vmatpush.bf16.msra.mxu0 %v7200_v27  ;;  %v6372_v24 = vor.u32 %v8982_v10, %v6369_v13  ;;  %v9134_v62 = vld [vmem:[#allocation3 + $0x744] sm:$0xf] }
  0x7b   :  { %v9258_v30 = vld [vmem:[#allocation3 + $0xb1c] sm:$0xf0]  ;;  %7613 = vmatmul.msk.bf16.vlgmr.msrb.gmra.mxu2 %vm615_vm0, %v10023_v2  ;;  %v6689_v5 = vld [vmem:[#allocation3 + $0x520] sm:$0xf0] }
  0x7c   :  { %v7167_v33 = vld [vmem:[#allocation3 + $0x8c0] sm:$0xf]  ;;  %v7456_v37 = vor.u32 %v9258_v30, %v7455_v29  ;;  %2731 = vmatpush.bf16.msrb.mxu3 %v6848_v31  ;;  %2792 = vmatpush.bf16.msra.mxu2 %v6468_v40  ;;  %v6337_v29 = vld [vmem:[#allocation3 + $0x260] sm:$0xf0] }
  0x7d   :  { %v9186_v34 = vld [vmem:[#allocation3 + $0x8dc] sm:$0xf0]  ;;  %v9150_v30 = vld [vmem:[#allocation3 + $0x7c4] sm:$0xf]  ;;  %v6340_v40 = vor.u32 %v8974_v23, %v6337_v29 }
  0x7e   :  { %v6815_v35 = vld [vmem:[#allocation3 + $0x600] sm:$0xf]  ;;  %v7168_v41 = vor.u32 %v9186_v34, %v7167_v33  ;;  %2754 = vmatpush.bf16.msrb.mxu1 %v7456_v37  ;;  %v7041_v31 = vld [vmem:[#allocation3 + $0x7e0] sm:$0xf0] }
  0x7f   :  { %v9098_v36 = vld [vmem:[#allocation3 + $0x61c] sm:$0xf0]  ;;  %v9078_v33 = vld [vmem:[#allocation3 + $0x584] sm:$0xf] }
  0x80   :  { %v7423_v43 = vld [vmem:[#allocation3 + $0xac0] sm:$0xf]  ;;  %v6816_v45 = vor.u32 %v9098_v36, %v6815_v35  ;;  %2742 = vmatpush.bf16.msra.mxu0 %v7168_v41  ;;  %2793 = vmatpush.bf16.msra.mxu2 %v6436_v56  ;;  %v6753_v34 = vld [vmem:[#allocation3 + $0x5a0] sm:$0xf0]  ;;  %v7044_v41 = vor.u32 %v9150_v30, %v7041_v31 }
  0x81   :  { %v9250_v44 = vld [vmem:[#allocation3 + $0xadc] sm:$0xf0]  ;;  %v164_v37 = vld [vmem:[%s10356_s0 + $0x28] sm:$0xff] }
  0x82   :  { %v7135_v47 = vld [vmem:[#allocation3 + $0x880] sm:$0xf]  ;;  %v7424_v51 = vor.u32 %v9250_v44, %v7423_v43  ;;  %2732 = vmatpush.bf16.msrb.mxu3 %v6816_v45  ;;  %v6305_v43 = vld [vmem:[#allocation3 + $0x220] sm:$0xf0]  ;;  %v6756_v44 = vor.u32 %v9078_v33, %v6753_v34 }
  0x83   :  { %v9178_v48 = vld [vmem:[#allocation3 + $0x89c] sm:$0xf0]  ;;  %v9278_v45 = vld [vmem:[#allocation3 + $0xbc4] sm:$0xf]  ;;  %v6308_v56 = vor.u32 %v8966_v42, %v6305_v43 }
  0x84   :  { %v7136_v57 = vor.u32 %v9178_v48, %v7135_v47  ;;  %v7391_v59 = vld [vmem:[#allocation3 + $0xa80] sm:$0xf]  ;;  %2755 = vmatpush.bf16.msrb.mxu1 %v7424_v51  ;;  %2794 = vmatpush.bf16.msra.mxu2 %v6404_v7  ;;  %v7009_v47 = vld [vmem:[#allocation3 + $0x7a0] sm:$0xf0]  ;;  %v10036_v48 = vpack.c.bf16 %v164_v37, %v164_v37  ;;  %v7556_v58 = vor.u32 %v9278_v45, %v7553_v50 }
  0x85   :  { %v9242_v60 = vld [vmem:[#allocation3 + $0xa9c] sm:$0xf0]  ;;  %2733 = vmatmul.bf16.vlgmr.msrb.gmra.mxu3 %v10021_v61  ;;  %v9070_v51 = vld [vmem:[#allocation3 + $0x544] sm:$0xf] }
  0x86   :  { %v7103_v63 = vld [vmem:[#allocation3 + $0x840] sm:$0xf]  ;;  %2777 = vmatpush.bf16.msra.mxu3 %v6276_v49  ;;  %v7392_v3 = vor.u32 %v9242_v60, %v7391_v59  ;;  %2743 = vmatpush.bf16.msra.mxu0 %v7136_v57  ;;  %v6148_v49 = vor.u32 %v8926_v38, %v6145_v39  ;;  %v7012_v57 = vor.u32 %v9142_v46, %v7009_v47  ;;  %v9270_v60 = vld [vmem:[#allocation3 + $0xb84] sm:$0xf] }
  0x87   :  { %v9170_v0 = vld [vmem:[#allocation3 + $0x85c] sm:$0xf0]  ;;  %v6724_v59 = vor.u32 %v9070_v51, %v6721_v52  ;;  %v8910_v6 = vld [vmem:[#allocation3 + $0x44] sm:$0xf] }
  0x88   :  { %v7104_v8 = vor.u32 %v9170_v0, %v7103_v63  ;;  %v7359_v11 = vld [vmem:[#allocation3 + $0xa40] sm:$0xf]  ;;  %2756 = vmatpush.bf16.msrb.mxu1 %v7392_v3  ;;  %2795 = vmatpush.bf16.msra.mxu2 %v6372_v24  ;;  %v6977_v63 = vld [vmem:[#allocation3 + $0x760] sm:$0xf0]  ;;  %v6116_v0 = vor.u32 %v8918_v53, %v6113_v55 }
  0x89   :  { %v9234_v12 = vld [vmem:[#allocation3 + $0xa5c] sm:$0xf0]  ;;  %v9062_v3 = vld [vmem:[#allocation3 + $0x504] sm:$0xf] }
  0x8a   :  { %v7071_v14 = vld [vmem:[#allocation3 + $0x800] sm:$0xf]  ;;  %2778 = vmatpush.bf16.msra.mxu3 %v6244_v1  ;;  %v7360_v20 = vor.u32 %v9234_v12, %v7359_v11  ;;  %2744 = vmatpush.bf16.msra.mxu0 %v7104_v8  ;;  %v7521_v1 = vld [vmem:[#allocation3 + $0xba0] sm:$0xf0]  ;;  %v6980_v8 = vor.u32 %v9134_v62, %v6977_v63  ;;  %v6692_v11 = vor.u32 %v9062_v3, %v6689_v5 }
  0x8b   :  { %v9162_v15 = vld [vmem:[#allocation3 + $0x81c] sm:$0xf0]  ;;  %v6081_v7 = vld [vmem:[#allocation3 + $0x60] sm:$0xf0]  ;;  %v7524_v10 = vor.u32 %v9270_v60, %v7521_v1 }
  0x8c   :  { %v7072_v25 = vor.u32 %v9162_v15, %v7071_v14  ;;  %v163_v26 = vld [vmem:[%s10356_s0 + $0x20] sm:$0xff]  ;;  %2757 = vmatpush.bf16.msrb.mxu1 %v7360_v20  ;;  %2796 = vmatpush.bf16.msra.mxu2 %v6340_v40  ;;  %v6084_v15 = vor.u32 %v8910_v6, %v6081_v7  ;;  %s9888_s0 = smov [#allocation17]  }
  0x8d   :  { %v7327_v18 = vld [vmem:[#allocation3 + $0xa00] sm:$0xf]  ;;  %v10031_v35 = vpack.c.bf16 %v163_v26, %v163_v26  ;;  %v9262_v12 = vld [vmem:[#allocation3 + $0xb44] sm:$0xf]  ;;  %s5989_s30 = sshll.u32 %s9888_s0, 4  ;;  %s5990_s30 = int_to_ptr.vmem [resolvable:$true] %s5989_s30 }
  0x8e   :  { %v9226_v27 = vld [vmem:[#allocation3 + $0xa1c] sm:$0xf0]  ;;  %2779 = vmatpush.bf16.msra.mxu3 %v6212_v16  ;;  %2745 = vmatpush.bf16.msra.mxu0 %v7072_v25  ;;  %v9126_v13 = vld [vmem:[#allocation3 + $0x704] sm:$0xf] }
  0x8f   :  { %v7328_v36 = vor.u32 %v9226_v27, %v7327_v18  ;;  %v6945_v14 = vld [vmem:[#allocation3 + $0x720] sm:$0xf0] }
  0x90   :  { %2797 = vmatpush.bf16.msra.mxu2 %v6308_v56  ;;  %v7489_v16 = vld [vmem:[#allocation3 + $0xb60] sm:$0xf0]  ;;  %v6948_v22 = vor.u32 %v9126_v13, %v6945_v14 }
  0x91   :  { %2746 = vmatmul.bf16.vlgmr.msra.gmra.mxu0 %v10031_v35  ;;  %2758 = vmatpush.bf16.msrb.mxu1 %v7328_v36  ;;  %v9054_v17 = vld [vmem:[#allocation3 + $0x4c4] sm:$0xf]  ;;  %v7492_v25 = vor.u32 %v9262_v12, %v7489_v16  ;;  %v6279_v12 = vld [vmem:[#allocation3 + $0x1c8] sm:$0xf] }
  0x92   :  { %2803 = vmatpush.bf16.msrb.mxu0 %v6788_v28  ;;  %2780 = vmatpush.bf16.msra.mxu3 %v6180_v32  ;;  %v6657_v19 = vld [vmem:[#allocation3 + $0x4e0] sm:$0xf0]  ;;  %v6791_v16 = vld [vmem:[#allocation3 + $0x5c8] sm:$0xf] }
  0x93   :  { %v8902_v20 = vld [vmem:[#allocation3 + $0x4] sm:$0xf]  ;;  %2798 = vmatmul.bf16.vlgmr.msra.gmra.mxu2 %v10006_v4  ;;  %v6660_v26 = vor.u32 %v9054_v17, %v6657_v19  ;;  %v9091_v17 = vld [vmem:[#allocation3 + $0x5e4] sm:$0xf0] }
  0x94   :  { %2759 = vmatmul.bf16.vlgmr.msrb.gmra.mxu1 %v10036_v48  ;;  %2842 = vmatpush.bf16.msrb.mxu2 %v7556_v58  ;;  %v6049_v21 = vld [vmem:[#allocation3 + $0x20] sm:$0xf0] }
  0x95   :  { %2816 = vmatpush.bf16.msra.mxu1 %v7044_v41  ;;  %v9214_v23 = vld [vmem:[#allocation3 + $0x9c4] sm:$0xf]  ;;  %v6052_v28 = vor.u32 %v8902_v20, %v6049_v21 }
  0x96   :  { %2804 = vmatpush.bf16.msrb.mxu0 %v6756_v44  ;;  %2781 = vmatpush.bf16.msra.mxu3 %v6148_v49  ;;  %v7297_v24 = vld [vmem:[#allocation3 + $0x9e0] sm:$0xf0] }
  0x97   :  { %v9118_v18 = vld [vmem:[#allocation3 + $0x6c4] sm:$0xf]  ;;  %v7300_v31 = vor.u32 %v9214_v23, %v7297_v24 }
  0x98   :  { %2843 = vmatpush.bf16.msrb.mxu2 %v7524_v10  ;;  %v6913_v27 = vld [vmem:[#allocation3 + $0x6e0] sm:$0xf0] }
  0x99   :  { %2817 = vmatpush.bf16.msra.mxu1 %v7012_v57  ;;  %v9254_v29 = vld [vmem:[#allocation3 + $0xb04] sm:$0xf]  ;;  %v6916_v34 = vor.u32 %v9118_v18, %v6913_v27  ;;  %v7047_v18 = vld [vmem:[#allocation3 + $0x7c8] sm:$0xf] }
  0x9a   :  { %2805 = vmatpush.bf16.msrb.mxu0 %v6724_v59  ;;  %2782 = vmatpush.bf16.msra.mxu3 %v6116_v0  ;;  %v7457_v30 = vld [vmem:[#allocation3 + $0xb20] sm:$0xf0]  ;;  %v9155_v27 = vld [vmem:[#allocation3 + $0x7e4] sm:$0xf0] }
  0x9b   :  { %v9046_v32 = vld [vmem:[#allocation3 + $0x484] sm:$0xf]  ;;  %v7460_v38 = vor.u32 %v9254_v29, %v7457_v30  ;;  %v6247_v29 = vld [vmem:[#allocation3 + $0x188] sm:$0xf] }
  0x9c   :  { %v6625_v33 = vld [vmem:[#allocation3 + $0x4a0] sm:$0xf0]  ;;  %2844 = vmatpush.bf16.msrb.mxu2 %v7492_v25  ;;  %v6792_v25 = vor.u32 %v9091_v17, %v6791_v16  ;;  %v8955_v30 = vld [vmem:[#allocation3 + $0x1a4] sm:$0xf0] }
  0x9d   :  { %2818 = vmatpush.bf16.msra.mxu1 %v6980_v8  ;;  %v9206_v36 = vld [vmem:[#allocation3 + $0x984] sm:$0xf]  ;;  %v6628_v41 = vor.u32 %v9046_v32, %v6625_v33  ;;  %v9083_v32 = vld [vmem:[#allocation3 + $0x5a4] sm:$0xf0] }
  0x9e   :  { %2806 = vmatpush.bf16.msrb.mxu0 %v6692_v11  ;;  %2783 = vmatpush.bf16.msra.mxu3 %v6084_v15  ;;  %v7265_v37 = vld [vmem:[#allocation3 + $0x9a0] sm:$0xf0]  ;;  %v8963_v15 = vld [vmem:[#allocation3 + $0x1e4] sm:$0xf0] }
  0x9f   :  { %v9110_v39 = vld [vmem:[#allocation3 + $0x684] sm:$0xf]  ;;  %v7268_v44 = vor.u32 %v9206_v36, %v7265_v37  ;;  %v6280_v24 = vor.u32 %v8963_v15, %v6279_v12  ;;  %v7048_v37 = vor.u32 %v9155_v27, %v7047_v18  ;;  %v8931_v12 = vld [vmem:[#allocation3 + $0xe4] sm:$0xf0] }
  0xa0   :  { %v6881_v40 = vld [vmem:[#allocation3 + $0x6a0] sm:$0xf0]  ;;  %2845 = vmatpush.bf16.msrb.mxu2 %v7460_v38  ;;  %v6248_v38 = vor.u32 %v8955_v30, %v6247_v29  ;;  %v9059_v15 = vld [vmem:[#allocation3 + $0x4e4] sm:$0xf0] }
  0xa1   :  { %2819 = vmatpush.bf16.msra.mxu1 %v6948_v22  ;;  %v9246_v42 = vld [vmem:[#allocation3 + $0xac4] sm:$0xf]  ;;  %v6884_v47 = vor.u32 %v9110_v39, %v6881_v40  ;;  %v7015_v39 = vld [vmem:[#allocation3 + $0x788] sm:$0xf] }
  0xa2   :  { %2807 = vmatpush.bf16.msrb.mxu0 %v6660_v26  ;;  %2784 = vmatpush.bf16.msra.mxu3 %v6052_v28  ;;  %v7425_v43 = vld [vmem:[#allocation3 + $0xae0] sm:$0xf0]  ;;  %v9147_v40 = vld [vmem:[#allocation3 + $0x7a4] sm:$0xf0] }
  0xa3   :  { %v9038_v45 = vld [vmem:[#allocation3 + $0x444] sm:$0xf]  ;;  %v7428_v51 = vor.u32 %v9246_v42, %v7425_v43  ;;  %v6215_v43 = vld [vmem:[#allocation3 + $0x148] sm:$0xf] }
  0xa4   :  { %v6593_v46 = vld [vmem:[#allocation3 + $0x460] sm:$0xf0]  ;;  %v6503_v16 = vld [vmem:[#allocation3 + $0x388] sm:$0xf] }
  0xa5   :  { %2820 = vmatpush.bf16.msra.mxu1 %v6916_v34  ;;  %v9198_v49 = vld [vmem:[#allocation3 + $0x944] sm:$0xf]  ;;  %2785 = vmatmul.bf16.vlgmr.msra.gmra.mxu3 %v9998_v54  ;;  %v6596_v55 = vor.u32 %v9038_v45, %v6593_v46  ;;  %v6727_v45 = vld [vmem:[#allocation3 + $0x548] sm:$0xf] }
  0xa6   :  { %2829 = vmatpush.bf16.msrb.mxu3 %v7300_v31  ;;  %v7233_v50 = vld [vmem:[#allocation3 + $0x960] sm:$0xf0]  ;;  %2808 = vmatpush.bf16.msrb.mxu0 %v6628_v41  ;;  %v6759_v31 = vld [vmem:[#allocation3 + $0x588] sm:$0xf] }
  0xa7   :  { %v9102_v52 = vld [vmem:[#allocation3 + $0x644] sm:$0xf]  ;;  %v7236_v58 = vor.u32 %v9198_v49, %v7233_v50  ;;  %2846 = vmatpush.bf16.msrb.mxu2 %v7428_v51  ;;  %v6760_v41 = vor.u32 %v9083_v32, %v6759_v31  ;;  %v9075_v46 = vld [vmem:[#allocation3 + $0x564] sm:$0xf0]  ;;  %v7016_v50 = vor.u32 %v9147_v40, %v7015_v39 }
  0xa8   :  { %v6849_v53 = vld [vmem:[#allocation3 + $0x660] sm:$0xf0]  ;;  %v9019_v17 = vld [vmem:[#allocation3 + $0x3a4] sm:$0xf0] }
  0xa9   :  { %v9238_v56 = vld [vmem:[#allocation3 + $0xa84] sm:$0xf]  ;;  %2821 = vmatpush.bf16.msra.mxu1 %v6884_v47  ;;  %v6852_v63 = vor.u32 %v9102_v52, %v6849_v53  ;;  %v6983_v52 = vld [vmem:[#allocation3 + $0x748] sm:$0xf] }
  0xaa   :  { %v7393_v57 = vld [vmem:[#allocation3 + $0xaa0] sm:$0xf0]  ;;  %2830 = vmatpush.bf16.msrb.mxu3 %v7268_v44  ;;  %2809 = vmatpush.bf16.msrb.mxu0 %v6596_v55  ;;  %v8947_v44 = vld [vmem:[#allocation3 + $0x164] sm:$0xf0]  ;;  %v6728_v55 = vor.u32 %v9075_v46, %v6727_v45 }
  0xab   :  { %v9030_v59 = vld [vmem:[#allocation3 + $0x404] sm:$0xf]  ;;  %v7396_v5 = vor.u32 %v9238_v56, %v7393_v57  ;;  %v6216_v51 = vor.u32 %v8947_v44, %v6215_v43  ;;  %v9139_v53 = vld [vmem:[#allocation3 + $0x764] sm:$0xf0] }
  0xac   :  { %v6561_v60 = vld [vmem:[#allocation3 + $0x420] sm:$0xf0]  ;;  %v6183_v57 = vld [vmem:[#allocation3 + $0x108] sm:$0xf] }
  0xad   :  { %v9190_v62 = vld [vmem:[#allocation3 + $0x904] sm:$0xf]  ;;  %v6564_v8 = vor.u32 %v9030_v59, %v6561_v60  ;;  %2822 = vmatpush.bf16.msra.mxu1 %v6852_v63  ;;  %2847 = vmatpush.bf16.msrb.mxu2 %v7396_v5  ;;  %v6695_v59 = vld [vmem:[#allocation3 + $0x508] sm:$0xf] }
  0xae   :  { %v7201_v0 = vld [vmem:[#allocation3 + $0x920] sm:$0xf0]  ;;  %2831 = vmatpush.bf16.msrb.mxu3 %v7236_v58  ;;  %v8939_v58 = vld [vmem:[#allocation3 + $0x124] sm:$0xf0] }
  0xaf   :  { %v9286_v1 = vld [vmem:[#allocation3 + $0xc04] sm:$0xf]  ;;  %v7204_v13 = vor.u32 %v9190_v62, %v7201_v0  ;;  %2810 = vmatpush.bf16.msrb.mxu0 %v6564_v8  ;;  %v9067_v60 = vld [vmem:[#allocation3 + $0x524] sm:$0xf0]  ;;  %v6184_v5 = vor.u32 %v8939_v58, %v6183_v57 }
  0xb0   :  { %v7585_v3 = vld [vmem:[#allocation3 + $0xc20] sm:$0xf0]  ;;  %v6535_v0 = vld [vmem:[#allocation3 + $0x3c8] sm:$0xf] }
  0xb1   :  { %v9094_v6 = vld [vmem:[#allocation3 + $0x604] sm:$0xf]  ;;  %v7588_v14 = vor.u32 %v9286_v1, %v7585_v3  ;;  %v9027_v1 = vld [vmem:[#allocation3 + $0x3e4] sm:$0xf0]  ;;  %v6984_v3 = vor.u32 %v9139_v53, %v6983_v52 }
  0xb2   :  { %v6817_v7 = vld [vmem:[#allocation3 + $0x620] sm:$0xf0]  ;;  %2832 = vmatpush.bf16.msrb.mxu3 %v7204_v13  ;;  %2811 = vmatmul.bf16.vlgmr.msrb.gmra.mxu0 %v10009_v9  ;;  %v6536_v13 = vor.u32 %v9027_v1, %v6535_v0  ;;  %v6631_v18 = vld [vmem:[#allocation3 + $0x488] sm:$0xf] }
  0xb3   :  { %v9230_v10 = vld [vmem:[#allocation3 + $0xa44] sm:$0xf]  ;;  %v6820_v19 = vor.u32 %v9094_v6, %v6817_v7  ;;  %2862 = vmatpush.bf16.msra.mxu0 %v7588_v14  ;;  %v6951_v6 = vld [vmem:[#allocation3 + $0x708] sm:$0xf]  ;;  %v6696_v7 = vor.u32 %v9067_v60, %v6695_v59 }
  0xb4   :  { %v7361_v11 = vld [vmem:[#allocation3 + $0xa60] sm:$0xf0]  ;;  %v6663_v14 = vld [vmem:[#allocation3 + $0x4c8] sm:$0xf] }
  0xb5   :  { %v9182_v20 = vld [vmem:[#allocation3 + $0x8c4] sm:$0xf]  ;;  %v7364_v22 = vor.u32 %v9230_v10, %v7361_v11  ;;  %2823 = vmatpush.bf16.msra.mxu1 %v6820_v19  ;;  %v9131_v10 = vld [vmem:[#allocation3 + $0x724] sm:$0xf0] }
  0xb6   :  { %v7169_v21 = vld [vmem:[#allocation3 + $0x8e0] sm:$0xf0]  ;;  %v6151_v11 = vld [vmem:[#allocation3 + $0xc8] sm:$0xf]  ;;  %v6952_v19 = vor.u32 %v9131_v10, %v6951_v6  ;;  %v8959_v6 = vld [vmem:[#allocation3 + $0x1cc] sm:$0xf] }
  0xb7   :  { %v9222_v23 = vld [vmem:[#allocation3 + $0xa04] sm:$0xf]  ;;  %v7172_v28 = vor.u32 %v9182_v20, %v7169_v21  ;;  %2848 = vmatpush.bf16.msrb.mxu2 %v7364_v22  ;;  %2894 = vmatpush.bf16.msrb.mxu0 %v6792_v25  ;;  %v6152_v20 = vor.u32 %v8931_v12, %v6151_v11  ;;  %v6919_v21 = vld [vmem:[#allocation3 + $0x6c8] sm:$0xf]  ;;  %v6664_v22 = vor.u32 %v9059_v15, %v6663_v14  ;;  %v9023_v11 = vld [vmem:[#allocation3 + $0x3cc] sm:$0xf] }
  0xb8   :  { %v7329_v26 = vld [vmem:[#allocation3 + $0xa20] sm:$0xf0]  ;;  %2824 = vmatmul.bf16.vlgmr.msra.gmra.mxu1 %v10021_v61  ;;  %v8923_v25 = vld [vmem:[#allocation3 + $0xa4] sm:$0xf0]  ;;  %v6537_v12 = vld [vmem:[#allocation3 + $0x3e8] sm:$0xf0] }
  0xb9   :  { %v9174_v33 = vld [vmem:[#allocation3 + $0x884] sm:$0xf]  ;;  %v7332_v36 = vor.u32 %v9222_v23, %v7329_v26  ;;  %2868 = vmatpush.bf16.msrb.mxu1 %v6280_v24  ;;  %2833 = vmatpush.bf16.msrb.mxu3 %v7172_v28  ;;  %v9123_v23 = vld [vmem:[#allocation3 + $0x6e4] sm:$0xf0]  ;;  %v6504_v26 = vor.u32 %v9019_v17, %v6503_v16 }
  0xba   :  { %v7137_v34 = vld [vmem:[#allocation3 + $0x8a0] sm:$0xf0]  ;;  %v6119_v24 = vld [vmem:[#allocation3 + $0x88] sm:$0xf]  ;;  %v6920_v30 = vor.u32 %v9123_v23, %v6919_v21  ;;  %v8951_v21 = vld [vmem:[#allocation3 + $0x18c] sm:$0xf] }
  0xbb   :  { %v7140_v42 = vor.u32 %v9174_v33, %v7137_v34  ;;  %v9166_v47 = vld [vmem:[#allocation3 + $0x844] sm:$0xf]  ;;  %2849 = vmatpush.bf16.msrb.mxu2 %v7332_v36  ;;  %2895 = vmatpush.bf16.msrb.mxu0 %v6760_v41  ;;  %v9051_v27 = vld [vmem:[#allocation3 + $0x4a4] sm:$0xf0]  ;;  %v6120_v31 = vor.u32 %v8923_v25, %v6119_v24  ;;  %v9015_v25 = vld [vmem:[#allocation3 + $0x38c] sm:$0xf] }
  0xbc   :  { %v7105_v49 = vld [vmem:[#allocation3 + $0x860] sm:$0xf0]  ;;  %v6471_v28 = vld [vmem:[#allocation3 + $0x348] sm:$0xf]  ;;  %v6632_v33 = vor.u32 %v9051_v27, %v6631_v18 }
  0xbd   :  { %2869 = vmatpush.bf16.msrb.mxu1 %v6248_v38  ;;  %2834 = vmatpush.bf16.msrb.mxu3 %v7140_v42  ;;  %v7108_v56 = vor.u32 %v9166_v47, %v7105_v49  ;;  %v9158_v62 = vld [vmem:[#allocation3 + $0x804] sm:$0xf]  ;;  %v9011_v29 = vld [vmem:[#allocation3 + $0x364] sm:$0xf0] }
  0xbe   :  { %v7073_v63 = vld [vmem:[#allocation3 + $0x820] sm:$0xf0]  ;;  %2850 = vmatmul.bf16.vlgmr.msrb.gmra.mxu2 %v10036_v48  ;;  %v6887_v32 = vld [vmem:[#allocation3 + $0x688] sm:$0xf]  ;;  %v6472_v38 = vor.u32 %v9011_v29, %v6471_v28 }
  0xbf   :  { %2907 = vmatpush.bf16.msra.mxu2 %v7048_v37  ;;  %2896 = vmatpush.bf16.msrb.mxu0 %v6728_v55  ;;  %v7076_v8 = vor.u32 %v9158_v62, %v7073_v63  ;;  %v9115_v34 = vld [vmem:[#allocation3 + $0x6a4] sm:$0xf0] }
  0xc0   :  { %v6087_v36 = vld [vmem:[#allocation3 + $0x48] sm:$0xf]  ;;  %v6888_v43 = vor.u32 %v9115_v34, %v6887_v32  ;;  %v8943_v32 = vld [vmem:[#allocation3 + $0x14c] sm:$0xf] }
  0xc1   :  { %2870 = vmatpush.bf16.msrb.mxu1 %v6216_v51  ;;  %2835 = vmatpush.bf16.msrb.mxu3 %v7108_v56  ;;  %v8915_v37 = vld [vmem:[#allocation3 + $0x64] sm:$0xf0] }
  0xc2   :  { %7614 = vmatmul.msk.bf16.vlgmr.msra.gmra.mxu0 %vm615_vm0, %v10023_v2  ;;  %v6599_v39 = vld [vmem:[#allocation3 + $0x448] sm:$0xf]  ;;  %v6088_v44 = vor.u32 %v8915_v37, %v6087_v36  ;;  %v9007_v37 = vld [vmem:[#allocation3 + $0x34c] sm:$0xf] }
  0xc3   :  { %2908 = vmatpush.bf16.msra.mxu2 %v7016_v50  ;;  %2897 = vmatpush.bf16.msrb.mxu0 %v6696_v7  ;;  %v9043_v40 = vld [vmem:[#allocation3 + $0x464] sm:$0xf0]  ;;  %v6281_v7 = vld [vmem:[#allocation3 + $0x1e8] sm:$0xf0] }
  0xc4   :  { %v6439_v41 = vld [vmem:[#allocation3 + $0x308] sm:$0xf]  ;;  %v6600_v49 = vor.u32 %v9043_v40, %v6599_v39  ;;  %v10050_v40 = vpop.f32.mrf.mxu1 }
  0xc5   :  { %2871 = vmatpush.bf16.msrb.mxu1 %v6184_v5  ;;  %2836 = vmatpush.bf16.msrb.mxu3 %v7076_v8  ;;  %v9003_v42 = vld [vmem:[#allocation3 + $0x324] sm:$0xf0] }
  0xc6   :  { %v6855_v45 = vld [vmem:[#allocation3 + $0x648] sm:$0xf]  ;;  %v6440_v53 = vor.u32 %v9003_v42, %v6439_v41 }
  0xc7   :  { %2909 = vmatpush.bf16.msra.mxu2 %v6984_v3  ;;  %2898 = vmatpush.bf16.msrb.mxu0 %v6664_v22  ;;  %v9107_v46 = vld [vmem:[#allocation3 + $0x664] sm:$0xf0]  ;;  %v6249_v22 = vld [vmem:[#allocation3 + $0x1a8] sm:$0xf0] }
  0xc8   :  { %2837 = vmatmul.bf16.vlgmr.msrb.gmra.mxu3 %v10031_v35  ;;  %v6055_v47 = vld [vmem:[#allocation3 + $0x8] sm:$0xf]  ;;  %v6856_v62 = vor.u32 %v9107_v46, %v6855_v45 }
  0xc9   :  { %2881 = vmatpush.bf16.msra.mxu3 %v6536_v13  ;;  %2872 = vmatpush.bf16.msrb.mxu1 %v6152_v20  ;;  %v8907_v50 = vld [vmem:[#allocation3 + $0x24] sm:$0xf0]  ;;  %v6540_v20 = vor.u32 %v9023_v11, %v6537_v12 }
  0xca   :  { %v6567_v51 = vld [vmem:[#allocation3 + $0x408] sm:$0xf]  ;;  %v6056_v63 = vor.u32 %v8907_v50, %v6055_v47 }
  0xcb   :  { %2910 = vmatpush.bf16.msra.mxu2 %v6952_v19  ;;  %2899 = vmatpush.bf16.msrb.mxu0 %v6632_v33  ;;  %v9035_v52 = vld [vmem:[#allocation3 + $0x424] sm:$0xf0]  ;;  %v6284_v19 = vor.u32 %v8959_v6, %v6281_v7  ;;  %v6217_v33 = vld [vmem:[#allocation3 + $0x168] sm:$0xf0] }
  0xcc   :  { %v7303_v55 = vld [vmem:[#allocation3 + $0x9c8] sm:$0xf]  ;;  %v6568_v1 = vor.u32 %v9035_v52, %v6567_v51  ;;  %v6220_v46 = vor.u32 %v8943_v32, %v6217_v33  ;;  %v6185_v52 = vld [vmem:[#allocation3 + $0x128] sm:$0xf0]  ;;  %v643_v11 = vpop.f32.mrf.mxu1 }
  0xcd   :  { %2882 = vmatpush.bf16.msra.mxu3 %v6504_v26  ;;  %2873 = vmatpush.bf16.msrb.mxu1 %v6120_v31  ;;  %v9219_v56 = vld [vmem:[#allocation3 + $0x9e4] sm:$0xf0]  ;;  %v6505_v26 = vld [vmem:[#allocation3 + $0x3a8] sm:$0xf0] }
  0xce   :  { %v6407_v57 = vld [vmem:[#allocation3 + $0x2c8] sm:$0xf]  ;;  %v7304_v3 = vor.u32 %v9219_v56, %v7303_v55  ;;  %v6508_v31 = vor.u32 %v9015_v25, %v6505_v26  ;;  %v6441_v55 = vld [vmem:[#allocation3 + $0x328] sm:$0xf0] }
  0xcf   :  { %2911 = vmatpush.bf16.msra.mxu2 %v6920_v30  ;;  %v8995_v58 = vld [vmem:[#allocation3 + $0x2e4] sm:$0xf0]  ;;  %2900 = vmatpush.bf16.msrb.mxu0 %v6600_v49  ;;  %v6252_v30 = vor.u32 %v8951_v21, %v6249_v22  ;;  %v8935_v49 = vld [vmem:[#allocation3 + $0x10c] sm:$0xf] }
  0xd0   :  { %v7591_v59 = vld [vmem:[#allocation3 + $0xc08] sm:$0xf]  ;;  %v6408_v8 = vor.u32 %v8995_v58, %v6407_v57  ;;  %v6153_v7 = vld [vmem:[#allocation3 + $0xe8] sm:$0xf0] }
  0xd1   :  { %2883 = vmatpush.bf16.msra.mxu3 %v6472_v38  ;;  %v9291_v60 = vld [vmem:[#allocation3 + $0xc24] sm:$0xf0]  ;;  %2874 = vmatpush.bf16.msrb.mxu1 %v6088_v44  ;;  %v6473_v38 = vld [vmem:[#allocation3 + $0x368] sm:$0xf0] }
  0xd2   :  { %v6823_v0 = vld [vmem:[#allocation3 + $0x608] sm:$0xf]  ;;  %v7592_v10 = vor.u32 %v9291_v60, %v7591_v59  ;;  %v6476_v47 = vor.u32 %v9007_v37, %v6473_v38  ;;  %v10053_v59 = vpop.f32.mrf.mxu0  ;;  %v10055_v60 = vpop.f32.mrf.mxu3  ;;  %v6121_v22 = vld [vmem:[#allocation3 + $0xa8] sm:$0xf0] }
  0xd3   :  { %2912 = vmatpush.bf16.msra.mxu2 %v6888_v43  ;;  %v9099_v5 = vld [vmem:[#allocation3 + $0x624] sm:$0xf0]  ;;  %2901 = vmatpush.bf16.msrb.mxu0 %v6568_v1  ;;  %v6188_v1 = vor.u32 %v8935_v49, %v6185_v52  ;;  %v6089_v37 = vld [vmem:[#allocation3 + $0x68] sm:$0xf0] }
  0xd4   :  { %v7271_v13 = vld [vmem:[#allocation3 + $0x988] sm:$0xf]  ;;  %v6824_v17 = vor.u32 %v9099_v5, %v6823_v0  ;;  %v10057_v0 = vpop.f32.mrf.mxu2  ;;  %v8927_v5 = vld [vmem:[#allocation3 + $0xcc] sm:$0xf] }
  0xd5   :  { %2884 = vmatpush.bf16.msra.mxu3 %v6440_v53  ;;  %v9211_v14 = vld [vmem:[#allocation3 + $0x9a4] sm:$0xf0]  ;;  %2875 = vmatpush.bf16.msrb.mxu1 %v6056_v63  ;;  %v8999_v53 = vld [vmem:[#allocation3 + $0x30c] sm:$0xf] }
  0xd6   :  { %v6375_v15 = vld [vmem:[#allocation3 + $0x288] sm:$0xf]  ;;  %v7272_v23 = vor.u32 %v9211_v14, %v7271_v13  ;;  %2902 = vmatmul.bf16.vlgmr.msrb.gmra.mxu0 %v10009_v9  ;;  %v8975_v38 = vld [vmem:[#allocation3 + $0x24c] sm:$0xf] }
  0xd7   :  { %v8987_v16 = vld [vmem:[#allocation3 + $0x2a4] sm:$0xf0]  ;;  %2913 = vmatpush.bf16.msra.mxu2 %v6856_v62  ;;  %2953 = vmatpush.bf16.msra.mxu0 %v7592_v10  ;;  %v6409_v10 = vld [vmem:[#allocation3 + $0x2e8] sm:$0xf0] }
  0xd8   :  { %v6376_v24 = vor.u32 %v8987_v16, %v6375_v15  ;;  %v7239_v18 = vld [vmem:[#allocation3 + $0x948] sm:$0xf]  ;;  %2876 = vmatmul.bf16.vlgmr.msrb.gmra.mxu1 %v9998_v54  ;;  %v8903_v52 = vld [vmem:[#allocation3 + $0xc] sm:$0xf] }
  0xd9   :  { %2920 = vmatpush.bf16.msra.mxu1 %v7304_v3  ;;  %2885 = vmatpush.bf16.msra.mxu3 %v6408_v8  ;;  %v9203_v27 = vld [vmem:[#allocation3 + $0x964] sm:$0xf0]  ;;  %v6444_v3 = vor.u32 %v8999_v53, %v6441_v55  ;;  %v8991_v8 = vld [vmem:[#allocation3 + $0x2cc] sm:$0xf] }
  0xda   :  { %v6343_v28 = vld [vmem:[#allocation3 + $0x248] sm:$0xf]  ;;  %v7240_v34 = vor.u32 %v9203_v27, %v7239_v18  ;;  %v682_v27 = vpop.f32.mrf.mxu0  ;;  %v6057_v55 = vld [vmem:[#allocation3 + $0x28] sm:$0xf0] }
  0xdb   :  { %v8979_v29 = vld [vmem:[#allocation3 + $0x264] sm:$0xf0]  ;;  %2914 = vmatpush.bf16.msra.mxu2 %v6824_v17  ;;  %2972 = vmatpush.bf16.msrb.mxu0 %v6540_v20  ;;  %v6156_v17 = vor.u32 %v8927_v5, %v6153_v7  ;;  %v8919_v20 = vld [vmem:[#allocation3 + $0x8c] sm:$0xf]  ;;  %v6060_v11 = vor.u32 %v8903_v52, %v6057_v55 }
  0xdc   :  { %v6344_v36 = vor.u32 %v8979_v29, %v6343_v28  ;;  %v7207_v39 = vld [vmem:[#allocation3 + $0x908] sm:$0xf]  ;;  %v630_v28 = vpop.f32.mrf.mxu3  ;;  %v6124_v32 = vor.u32 %v8919_v20, %v6121_v22  ;;  %v9079_v7 = vld [vmem:[#allocation3 + $0x58c] sm:$0xf] }
  0xdd   :  { %2921 = vmatpush.bf16.msra.mxu1 %v7272_v23  ;;  %2886 = vmatpush.bf16.msra.mxu3 %v6376_v24  ;;  %v9195_v41 = vld [vmem:[#allocation3 + $0x924] sm:$0xf0]  ;;  %v8983_v23 = vld [vmem:[#allocation3 + $0x28c] sm:$0xf] }
  0xde   :  { %v6311_v42 = vld [vmem:[#allocation3 + $0x208] sm:$0xf]  ;;  %2915 = vmatmul.bf16.vlgmr.msra.gmra.mxu2 %v10021_v61  ;;  %v7208_v50 = vor.u32 %v9195_v41, %v7207_v39  ;;  %v6377_v24 = vld [vmem:[#allocation3 + $0x2a8] sm:$0xf0]  ;;  %v10062_v41 = vpop.f32.mrf.mxu1 }
  0xdf   :  { %2959 = vmatpush.bf16.msrb.mxu2 %v6284_v19  ;;  %v8971_v43 = vld [vmem:[#allocation3 + $0x224] sm:$0xf0]  ;;  %2973 = vmatpush.bf16.msrb.mxu0 %v6508_v31  ;;  %v6412_v19 = vor.u32 %v8991_v8, %v6409_v10  ;;  %v656_v31 = vpop.f32.mrf.mxu2  ;;  %v6380_v33 = vor.u32 %v8983_v23, %v6377_v24  ;;  %v6345_v39 = vld [vmem:[#allocation3 + $0x268] sm:$0xf0] }
  0xe0   :  { %v7559_v44 = vld [vmem:[#allocation3 + $0xbc8] sm:$0xf]  ;;  %v6312_v51 = vor.u32 %v8971_v43, %v6311_v42  ;;  %v6761_v8 = vld [vmem:[#allocation3 + $0x5a8] sm:$0xf0] }
  0xe1   :  { %v9283_v45 = vld [vmem:[#allocation3 + $0xbe4] sm:$0xf0]  ;;  %2922 = vmatpush.bf16.msra.mxu1 %v7240_v34  ;;  %2887 = vmatpush.bf16.msra.mxu3 %v6344_v36  ;;  %v8911_v34 = vld [vmem:[#allocation3 + $0x4c] sm:$0xf] }
  0xe2   :  { %v7560_v56 = vor.u32 %v9283_v45, %v7559_v44  ;;  %v7175_v57 = vld [vmem:[#allocation3 + $0x8c8] sm:$0xf]  ;;  %v9087_v45 = vld [vmem:[#allocation3 + $0x5cc] sm:$0xf] }
  0xe3   :  { %2960 = vmatpush.bf16.msrb.mxu2 %v6252_v30  ;;  %v9187_v58 = vld [vmem:[#allocation3 + $0x8e4] sm:$0xf0]  ;;  %2974 = vmatpush.bf16.msrb.mxu0 %v6476_v47  ;;  %v9207_v20 = vld [vmem:[#allocation3 + $0x98c] sm:$0xf] }
  0xe4   :  { %v7527_v62 = vld [vmem:[#allocation3 + $0xb88] sm:$0xf]  ;;  %v7176_v6 = vor.u32 %v9187_v58, %v7175_v57  ;;  %v6313_v57 = vld [vmem:[#allocation3 + $0x228] sm:$0xf0]  ;;  %v10064_v5 = vpop.f32.mrf.mxu3 }
  0xe5   :  { %v9275_v63 = vld [vmem:[#allocation3 + $0xba4] sm:$0xf0]  ;;  %2923 = vmatpush.bf16.msra.mxu1 %v7208_v50  ;;  %2888 = vmatpush.bf16.msra.mxu3 %v6312_v51  ;;  %v6092_v50 = vor.u32 %v8911_v34, %v6089_v37  ;;  %v6348_v51 = vor.u32 %v8975_v38, %v6345_v39  ;;  %v9271_v22 = vld [vmem:[#allocation3 + $0xb8c] sm:$0xf] }
  0xe6   :  { %v7528_v12 = vor.u32 %v9275_v63, %v7527_v62  ;;  %v7143_v13 = vld [vmem:[#allocation3 + $0x888] sm:$0xf]  ;;  %7615 = vmatmul.msk.bf16.vlgmr.msra.gmra.mxu0 %vm615_vm0, %v10023_v2  ;;  %v9215_v63 = vld [vmem:[#allocation3 + $0x9cc] sm:$0xf] }
  0xe7   :  { %2961 = vmatpush.bf16.msrb.mxu2 %v6220_v46  ;;  %v9179_v14 = vld [vmem:[#allocation3 + $0x8a4] sm:$0xf0]  ;;  %2975 = vmatpush.bf16.msrb.mxu0 %v6444_v3  ;;  %v6793_v46 = vld [vmem:[#allocation3 + $0x5e8] sm:$0xf0]  ;;  %v10066_v10 = vpop.f32.mrf.mxu2 }
  0xe8   :  { %v7495_v15 = vld [vmem:[#allocation3 + $0xb48] sm:$0xf]  ;;  %2889 = vmatmul.bf16.vlgmr.msra.gmra.mxu3 %v10006_v4  ;;  %v7144_v21 = vor.u32 %v9179_v14, %v7143_v13  ;;  %v6796_v58 = vor.u32 %v9087_v45, %v6793_v46  ;;  %v9279_v3 = vld [vmem:[#allocation3 + $0xbcc] sm:$0xf] }
  0xe9   :  { %2933 = vmatpush.bf16.msrb.mxu3 %v7560_v56  ;;  %v9267_v16 = vld [vmem:[#allocation3 + $0xb64] sm:$0xf0]  ;;  %2924 = vmatpush.bf16.msra.mxu1 %v7176_v6  ;;  %v8967_v56 = vld [vmem:[#allocation3 + $0x20c] sm:$0xf] }
  0xea   :  { %v7496_v25 = vor.u32 %v9267_v16, %v7495_v15  ;;  %v7111_v26 = vld [vmem:[#allocation3 + $0x848] sm:$0xf]  ;;  %v7561_v6 = vld [vmem:[#allocation3 + $0xbe8] sm:$0xf0]  ;;  %v6316_v14 = vor.u32 %v8967_v56, %v6313_v57  ;;  %v695_v16 = vpop.f32.mrf.mxu1 }
  0xeb   :  { %2962 = vmatpush.bf16.msrb.mxu2 %v6188_v1  ;;  %v9171_v18 = vld [vmem:[#allocation3 + $0x864] sm:$0xf0]  ;;  %2976 = vmatpush.bf16.msrb.mxu0 %v6412_v19  ;;  %v7305_v1 = vld [vmem:[#allocation3 + $0x9e8] sm:$0xf0]  ;;  %v6764_v19 = vor.u32 %v9079_v7, %v6761_v8 }
  0xec   :  { %v7463_v29 = vld [vmem:[#allocation3 + $0xb08] sm:$0xf]  ;;  %v7112_v36 = vor.u32 %v9171_v18, %v7111_v26  ;;  %v7308_v15 = vor.u32 %v9215_v63, %v7305_v1  ;;  %v7529_v24 = vld [vmem:[#allocation3 + $0xba8] sm:$0xf0]  ;;  %v669_v34 = vpop.f32.mrf.mxu3 }
  0xed   :  { %2934 = vmatpush.bf16.msrb.mxu3 %v7528_v12  ;;  %v9259_v30 = vld [vmem:[#allocation3 + $0xb24] sm:$0xf0]  ;;  %2925 = vmatpush.bf16.msra.mxu1 %v7144_v21  ;;  %v7273_v21 = vld [vmem:[#allocation3 + $0x9a8] sm:$0xf0] }
  0xee   :  { %v7464_v42 = vor.u32 %v9259_v30, %v7463_v29  ;;  %v7079_v43 = vld [vmem:[#allocation3 + $0x808] sm:$0xf]  ;;  %v6729_v26 = vld [vmem:[#allocation3 + $0x568] sm:$0xf0]  ;;  %v7276_v28 = vor.u32 %v9207_v20, %v7273_v21  ;;  %v7532_v29 = vor.u32 %v9271_v22, %v7529_v24 }
  0xef   :  { %2963 = vmatpush.bf16.msrb.mxu2 %v6156_v17  ;;  %v9163_v44 = vld [vmem:[#allocation3 + $0x824] sm:$0xf0]  ;;  %2977 = vmatpush.bf16.msrb.mxu0 %v6380_v33  ;;  %v7564_v17 = vor.u32 %v9279_v3, %v7561_v6  ;;  %v9199_v31 = vld [vmem:[#allocation3 + $0x94c] sm:$0xf] }
  0xf0   :  { %v7431_v47 = vld [vmem:[#allocation3 + $0xac8] sm:$0xf]  ;;  %v7080_v53 = vor.u32 %v9163_v44, %v7079_v43  ;;  %v9263_v33 = vld [vmem:[#allocation3 + $0xb4c] sm:$0xf]  ;;  %v708_v43 = vpop.f32.mrf.mxu2 }
  0xf1   :  { %2935 = vmatpush.bf16.msrb.mxu3 %v7496_v25  ;;  %v9251_v49 = vld [vmem:[#allocation3 + $0xae4] sm:$0xf0]  ;;  %2926 = vmatpush.bf16.msra.mxu1 %v7112_v36  ;;  %v9071_v25 = vld [vmem:[#allocation3 + $0x54c] sm:$0xf] }
  0xf2   :  { %v7432_v62 = vor.u32 %v9251_v49, %v7431_v47  ;;  %v7399_v12 = vld [vmem:[#allocation3 + $0xa88] sm:$0xf]  ;;  %v6732_v30 = vor.u32 %v9071_v25, %v6729_v26  ;;  %v7497_v37 = vld [vmem:[#allocation3 + $0xb68] sm:$0xf0]  ;;  %v2708_v57 = vpop.f32.mrf.mxu1 }
  0xf3   :  { %2964 = vmatpush.bf16.msrb.mxu2 %v6124_v32  ;;  %2978 = vmatpush.bf16.msrb.mxu0 %v6348_v51  ;;  %v9243_v13 = vld [vmem:[#allocation3 + $0xaa4] sm:$0xf0]  ;;  %v7241_v32 = vld [vmem:[#allocation3 + $0x968] sm:$0xf0]  ;;  %v7500_v51 = vor.u32 %v9263_v33, %v7497_v37 }
  0xf4   :  { %v7400_v23 = vor.u32 %v9243_v13, %v7399_v12  ;;  %v7367_v18 = vld [vmem:[#allocation3 + $0xa48] sm:$0xf]  ;;  %v9063_v38 = vld [vmem:[#allocation3 + $0x50c] sm:$0xf]  ;;  %v7244_v47 = vor.u32 %v9199_v31, %v7241_v32  ;;  %v10072_v20 = vpop.f32.mrf.mxu3 }
  0xf5   :  { %2936 = vmatpush.bf16.msrb.mxu3 %v7464_v42  ;;  %2927 = vmatpush.bf16.msra.mxu1 %v7080_v53  ;;  %v9235_v27 = vld [vmem:[#allocation3 + $0xa64] sm:$0xf0]  ;;  %v6697_v39 = vld [vmem:[#allocation3 + $0x528] sm:$0xf0]  ;;  %v2695_v42 = vpop.f32.mrf.mxu0 }
  0xf6   :  { %v7368_v36 = vor.u32 %v9235_v27, %v7367_v18  ;;  %v7335_v44 = vld [vmem:[#allocation3 + $0xa08] sm:$0xf]  ;;  %v2696_v46 = vadd.f32 %v2695_v42, %v10055_v60  ;;  %v9151_v49 = vld [vmem:[#allocation3 + $0x7cc] sm:$0xf]  ;;  %v6700_v52 = vor.u32 %v9063_v38, %v6697_v39 }
  0xf7   :  { %2965 = vmatpush.bf16.msrb.mxu2 %v6092_v50  ;;  %2979 = vmatpush.bf16.msrb.mxu0 %v6316_v14  ;;  %v9227_v45 = vld [vmem:[#allocation3 + $0xa24] sm:$0xf0]  ;;  %v7049_v50 = vld [vmem:[#allocation3 + $0x7e8] sm:$0xf0] }
  0xf8   :  { %2928 = vmatmul.bf16.vlgmr.msra.gmra.mxu1 %v10031_v35  ;;  %v9191_v53 = vld [vmem:[#allocation3 + $0x90c] sm:$0xf]  ;;  %v2709_v3 = vadd.f32 %v2708_v57, %v2696_v46  ;;  %v7052_v6 = vor.u32 %v9151_v49, %v7049_v50  ;;  %v2721_v26 = vpop.f32.mrf.mxu2 }
  0xf9   :  { %2985 = vmatpush.bf16.msrb.mxu1 %v6796_v58  ;;  %2937 = vmatpush.bf16.msrb.mxu3 %v7432_v62  ;;  %v7209_v55 = vld [vmem:[#allocation3 + $0x928] sm:$0xf0]  ;;  %v7336_v58 = vor.u32 %v9227_v45, %v7335_v44 }
  0xfa   :  { %2980 = vmatmul.bf16.vlgmr.msrb.gmra.mxu0 %v10006_v4  ;;  %v9255_v56 = vld [vmem:[#allocation3 + $0xb0c] sm:$0xf]  ;;  %v7212_v60 = vor.u32 %v9191_v53, %v7209_v55  ;;  %v10074_v31 = vadd.f32 %v2721_v26, %v2709_v3 }
  0xfb   :  { %2966 = vmatpush.bf16.msrb.mxu2 %v6060_v11  ;;  %3024 = vmatpush.bf16.msra.mxu0 %v7564_v17  ;;  %v7465_v62 = vld [vmem:[#allocation3 + $0xb28] sm:$0xf0] }
  0xfc   :  { %v9055_v63 = vld [vmem:[#allocation3 + $0x4cc] sm:$0xf]  ;;  %v7468_v11 = vor.u32 %v9255_v56, %v7465_v62 }
  0xfd   :  { %2986 = vmatpush.bf16.msrb.mxu1 %v6764_v19  ;;  %2938 = vmatpush.bf16.msrb.mxu3 %v7400_v23  ;;  %v6665_v1 = vld [vmem:[#allocation3 + $0x4e8] sm:$0xf0]  ;;  %v2697_v22 = vpop.f32.mrf.mxu0 }
  0xfe   :  { %2967 = vmatmul.bf16.vlgmr.msrb.gmra.mxu2 %v9998_v54  ;;  %v9143_v7 = vld [vmem:[#allocation3 + $0x78c] sm:$0xf]  ;;  %v6668_v12 = vor.u32 %v9055_v63, %v6665_v1 }
  0xff   :  { %3011 = vmatpush.bf16.msra.mxu2 %v7308_v15  ;;  %3025 = vmatpush.bf16.msra.mxu0 %v7532_v29  ;;  %v7017_v8 = vld [vmem:[#allocation3 + $0x7a8] sm:$0xf0] }
 0x100   :  { %v9183_v13 = vld [vmem:[#allocation3 + $0x8cc] sm:$0xf]  ;;  %v7020_v21 = vor.u32 %v9143_v7, %v7017_v8  ;;  %v2723_v8 = vpop.f32.mrf.mxu2 }
 0x101   :  { %2987 = vmatpush.bf16.msrb.mxu1 %v6732_v30  ;;  %2939 = vmatpush.bf16.msrb.mxu3 %v7368_v36  ;;  %v7177_v14 = vld [vmem:[#allocation3 + $0x8e8] sm:$0xf0]  ;;  %v2710_v36 = vpop.f32.mrf.mxu1 }
 0x102   :  { %v9247_v15 = vld [vmem:[#allocation3 + $0xacc] sm:$0xf]  ;;  %v7180_v23 = vor.u32 %v9183_v13, %v7177_v14  ;;  %v9028_v13 = vld [vmem:[#allocation3 + $0x3ec] sm:$0xf0] }
 0x103   :  { %3012 = vmatpush.bf16.msra.mxu2 %v7276_v28  ;;  %3026 = vmatpush.bf16.msra.mxu0 %v7500_v51  ;;  %v7433_v16 = vld [vmem:[#allocation3 + $0xae8] sm:$0xf0]  ;;  %v6799_v14 = vld [vmem:[#allocation3 + $0x5d0] sm:$0xf] }
 0x104   :  { %v9047_v17 = vld [vmem:[#allocation3 + $0x48c] sm:$0xf]  ;;  %v7436_v18 = vor.u32 %v9247_v15, %v7433_v16  ;;  %v9092_v16 = vld [vmem:[#allocation3 + $0x5ec] sm:$0xf0] }
 0x105   :  { %2988 = vmatpush.bf16.msrb.mxu1 %v6700_v52  ;;  %2940 = vmatpush.bf16.msrb.mxu3 %v7336_v58  ;;  %v6633_v19 = vld [vmem:[#allocation3 + $0x4a8] sm:$0xf0]  ;;  %v721_v52 = vpop.f32.mrf.mxu3  ;;  %v6800_v26 = vor.u32 %v9092_v16, %v6799_v14  ;;  %v9132_v14 = vld [vmem:[#allocation3 + $0x72c] sm:$0xf0] }
 0x106   :  { %v9135_v24 = vld [vmem:[#allocation3 + $0x74c] sm:$0xf]  ;;  %v6636_v27 = vor.u32 %v9047_v17, %v6633_v19  ;;  %v7055_v17 = vld [vmem:[#allocation3 + $0x7d0] sm:$0xf] }
 0x107   :  { %3013 = vmatpush.bf16.msra.mxu2 %v7244_v47  ;;  %v6985_v25 = vld [vmem:[#allocation3 + $0x768] sm:$0xf0]  ;;  %3027 = vmatpush.bf16.msra.mxu0 %v7468_v11  ;;  %v9156_v19 = vld [vmem:[#allocation3 + $0x7ec] sm:$0xf0] }
 0x108   :  { %v9175_v28 = vld [vmem:[#allocation3 + $0x88c] sm:$0xf]  ;;  %2941 = vmatmul.bf16.vlgmr.msrb.gmra.mxu3 %v10036_v48  ;;  %v6988_v37 = vor.u32 %v9135_v24, %v6985_v25  ;;  %v6991_v52 = vld [vmem:[#allocation3 + $0x750] sm:$0xf] }
 0x109   :  { %2998 = vmatpush.bf16.msra.mxu3 %v7052_v6  ;;  %2989 = vmatpush.bf16.msrb.mxu1 %v6668_v12  ;;  %v7145_v29 = vld [vmem:[#allocation3 + $0x8a8] sm:$0xf0]  ;;  %v6543_v12 = vld [vmem:[#allocation3 + $0x3d0] sm:$0xf] }
 0x10a   :  { %v9239_v30 = vld [vmem:[#allocation3 + $0xa8c] sm:$0xf]  ;;  %v7148_v38 = vor.u32 %v9175_v28, %v7145_v29  ;;  %v6544_v25 = vor.u32 %v9028_v13, %v6543_v12  ;;  %v9020_v28 = vld [vmem:[#allocation3 + $0x3ac] sm:$0xf0] }
 0x10b   :  { %3014 = vmatpush.bf16.msra.mxu2 %v7212_v60  ;;  %v7401_v32 = vld [vmem:[#allocation3 + $0xaa8] sm:$0xf0]  ;;  %3028 = vmatpush.bf16.msra.mxu0 %v7436_v18  ;;  %v7056_v18 = vor.u32 %v9156_v19, %v7055_v17  ;;  %v6767_v29 = vld [vmem:[#allocation3 + $0x590] sm:$0xf] }
 0x10c   :  { %v9039_v33 = vld [vmem:[#allocation3 + $0x44c] sm:$0xf]  ;;  %v7404_v43 = vor.u32 %v9239_v30, %v7401_v32  ;;  %v9084_v32 = vld [vmem:[#allocation3 + $0x5ac] sm:$0xf0] }
 0x10d   :  { %v6601_v34 = vld [vmem:[#allocation3 + $0x468] sm:$0xf0]  ;;  %2999 = vmatpush.bf16.msra.mxu3 %v7020_v21  ;;  %2990 = vmatpush.bf16.msrb.mxu1 %v6636_v27  ;;  %v6511_v27 = vld [vmem:[#allocation3 + $0x390] sm:$0xf]  ;;  %v2734_v36 = vpop.f32.mrf.mxu3 }
 0x10e   :  { %v9127_v39 = vld [vmem:[#allocation3 + $0x70c] sm:$0xf]  ;;  %v6604_v44 = vor.u32 %v9039_v33, %v6601_v34  ;;  %v7023_v33 = vld [vmem:[#allocation3 + $0x790] sm:$0xf] }
 0x10f   :  { %3015 = vmatpush.bf16.msra.mxu2 %v7180_v23  ;;  %v6953_v42 = vld [vmem:[#allocation3 + $0x728] sm:$0xf0]  ;;  %3029 = vmatpush.bf16.msra.mxu0 %v7404_v43  ;;  %v9148_v34 = vld [vmem:[#allocation3 + $0x7ac] sm:$0xf0]  ;;  %v2773_v43 = vpop.f32.mrf.mxu2 }
 0x110   :  { %v9167_v45 = vld [vmem:[#allocation3 + $0x84c] sm:$0xf]  ;;  %v6956_v53 = vor.u32 %v9127_v39, %v6953_v42  ;;  %v2735_v39 = vadd.f32 %v2734_v36, %v10074_v31  ;;  %v6512_v42 = vor.u32 %v9020_v28, %v6511_v27  ;;  %v9068_v12 = vld [vmem:[#allocation3 + $0x52c] sm:$0xf0] }
 0x111   :  { %v7113_v46 = vld [vmem:[#allocation3 + $0x868] sm:$0xf0]  ;;  %3000 = vmatpush.bf16.msra.mxu3 %v6988_v37  ;;  %2991 = vmatpush.bf16.msrb.mxu1 %v6604_v44  ;;  %v6768_v44 = vor.u32 %v9084_v32, %v6767_v29  ;;  %v2760_v8 = vpop.f32.mrf.mxu1  ;;  %v6959_v13 = vld [vmem:[#allocation3 + $0x710] sm:$0xf] }
 0x112   :  { %v9231_v47 = vld [vmem:[#allocation3 + $0xa4c] sm:$0xf]  ;;  %v7116_v57 = vor.u32 %v9167_v45, %v7113_v46  ;;  %v7024_v45 = vor.u32 %v9148_v34, %v7023_v33  ;;  %v6479_v46 = vld [vmem:[#allocation3 + $0x350] sm:$0xf] }
 0x113   :  { %v7369_v49 = vld [vmem:[#allocation3 + $0xa68] sm:$0xf0]  ;;  %3016 = vmatpush.bf16.msra.mxu2 %v7148_v38  ;;  %v8996_v27 = vld [vmem:[#allocation3 + $0x2ec] sm:$0xf0] }
 0x114   :  { %v9031_v50 = vld [vmem:[#allocation3 + $0x40c] sm:$0xf]  ;;  %v7372_v1 = vor.u32 %v9231_v47, %v7369_v49  ;;  %v9012_v47 = vld [vmem:[#allocation3 + $0x36c] sm:$0xf0] }
 0x115   :  { %v6569_v51 = vld [vmem:[#allocation3 + $0x428] sm:$0xf0]  ;;  %3001 = vmatpush.bf16.msra.mxu3 %v6956_v53  ;;  %v6735_v49 = vld [vmem:[#allocation3 + $0x550] sm:$0xf]  ;;  %v2736_v17 = vpop.f32.mrf.mxu3 }
 0x116   :  { %v9287_v55 = vld [vmem:[#allocation3 + $0xc0c] sm:$0xf]  ;;  %v6572_v3 = vor.u32 %v9031_v50, %v6569_v51  ;;  %3030 = vmatpush.bf16.msra.mxu0 %v7372_v1  ;;  %v9076_v51 = vld [vmem:[#allocation3 + $0x56c] sm:$0xf0] }
 0x117   :  { %v7593_v56 = vld [vmem:[#allocation3 + $0xc28] sm:$0xf0]  ;;  %3017 = vmatpush.bf16.msra.mxu2 %v7116_v57  ;;  %v9140_v53 = vld [vmem:[#allocation3 + $0x76c] sm:$0xf0]  ;;  %v6736_v1 = vor.u32 %v9076_v51, %v6735_v49 }
 0x118   :  { %v9119_v58 = vld [vmem:[#allocation3 + $0x6cc] sm:$0xf]  ;;  %v7596_v11 = vor.u32 %v9287_v55, %v7593_v56  ;;  %2992 = vmatpush.bf16.msrb.mxu1 %v6572_v3  ;;  %v2747_v55 = vpop.f32.mrf.mxu0  ;;  %v6992_v3 = vor.u32 %v9140_v53, %v6991_v52  ;;  %v6671_v28 = vld [vmem:[#allocation3 + $0x4d0] sm:$0xf] }
 0x119   :  { %v6921_v62 = vld [vmem:[#allocation3 + $0x6e8] sm:$0xf0]  ;;  %v2748_v31 = vadd.f32 %v2747_v55, %v2735_v39  ;;  %v9060_v29 = vld [vmem:[#allocation3 + $0x4ec] sm:$0xf0] }
 0x11a   :  { %v9159_v63 = vld [vmem:[#allocation3 + $0x80c] sm:$0xf]  ;;  %v6924_v15 = vor.u32 %v9119_v58, %v6921_v62  ;;  %v6480_v58 = vor.u32 %v9012_v47, %v6479_v46  ;;  %v6287_v62 = vld [vmem:[#allocation3 + $0x1d0] sm:$0xf]  ;;  %v6672_v39 = vor.u32 %v9060_v29, %v6671_v28 }
 0x11b   :  { %v7081_v6 = vld [vmem:[#allocation3 + $0x828] sm:$0xf0]  ;;  %2993 = vmatmul.bf16.vlgmr.msrb.gmra.mxu1 %v10009_v9  ;;  %v9124_v32 = vld [vmem:[#allocation3 + $0x6ec] sm:$0xf0] }
 0x11c   :  { %v9223_v60 = vld [vmem:[#allocation3 + $0xa0c] sm:$0xf]  ;;  %v7084_v21 = vor.u32 %v9159_v63, %v7081_v6  ;;  %3044 = vmatpush.bf16.msra.mxu1 %v7596_v11  ;;  %3002 = vmatpush.bf16.msra.mxu3 %v6924_v15  ;;  %v8964_v63 = vld [vmem:[#allocation3 + $0x1ec] sm:$0xf0]  ;;  %v2761_v15 = vadd.f32 %v2760_v8, %v2748_v31 }
 0x11d   :  { %v7337_v7 = vld [vmem:[#allocation3 + $0xa28] sm:$0xf0]  ;;  %v6447_v6 = vld [vmem:[#allocation3 + $0x310] sm:$0xf]  ;;  %v6288_v16 = vor.u32 %v8964_v63, %v6287_v62 }
 0x11e   :  { %v9111_v22 = vld [vmem:[#allocation3 + $0x68c] sm:$0xf]  ;;  %v7340_v24 = vor.u32 %v9223_v60, %v7337_v7  ;;  %3018 = vmatpush.bf16.msra.mxu2 %v7084_v21  ;;  %v9004_v60 = vld [vmem:[#allocation3 + $0x32c] sm:$0xf0] }
 0x11f   :  { %v6889_v23 = vld [vmem:[#allocation3 + $0x6a8] sm:$0xf0]  ;;  %v6703_v7 = vld [vmem:[#allocation3 + $0x510] sm:$0xf]  ;;  %v6448_v19 = vor.u32 %v9004_v60, %v6447_v6 }
 0x120   :  { %v6892_v30 = vor.u32 %v9111_v22, %v6889_v23  ;;  %v9103_v37 = vld [vmem:[#allocation3 + $0x64c] sm:$0xf]  ;;  %3031 = vmatpush.bf16.msra.mxu0 %v7340_v24  ;;  %3063 = vmatpush.bf16.msrb.mxu1 %v6544_v25  ;;  %v6255_v21 = vld [vmem:[#allocation3 + $0x190] sm:$0xf]  ;;  %v2775_v23 = vpop.f32.mrf.mxu2  ;;  %v10081_v24 = vadd.f32 %v2773_v43, %v2761_v15  ;;  %v6704_v25 = vor.u32 %v9068_v12, %v6703_v7  ;;  %v2749_v34 = vpop.f32.mrf.mxu0 }
 0x121   :  { %v6857_v38 = vld [vmem:[#allocation3 + $0x668] sm:$0xf0]  ;;  %3019 = vmatmul.bf16.vlgmr.msra.gmra.mxu2 %v10031_v35  ;;  %v8956_v22 = vld [vmem:[#allocation3 + $0x1ac] sm:$0xf0] }
 0x122   :  { %3076 = vmatpush.bf16.msrb.mxu2 %v6800_v26  ;;  %3003 = vmatpush.bf16.msra.mxu3 %v6892_v30  ;;  %v6860_v50 = vor.u32 %v9103_v37, %v6857_v38  ;;  %v9095_v56 = vld [vmem:[#allocation3 + $0x60c] sm:$0xf]  ;;  %v6960_v26 = vor.u32 %v9132_v14, %v6959_v13  ;;  %v6927_v30 = vld [vmem:[#allocation3 + $0x6d0] sm:$0xf]  ;;  %v6256_v33 = vor.u32 %v8956_v22, %v6255_v21 }
 0x123   :  { %v6825_v57 = vld [vmem:[#allocation3 + $0x628] sm:$0xf0]  ;;  %3032 = vmatmul.bf16.vlgmr.msra.gmra.mxu0 %v10036_v48  ;;  %v6223_v37 = vld [vmem:[#allocation3 + $0x150] sm:$0xf] }
 0x124   :  { %3089 = vmatpush.bf16.msrb.mxu0 %v7056_v18  ;;  %3064 = vmatpush.bf16.msrb.mxu1 %v6512_v42  ;;  %v6828_v11 = vor.u32 %v9095_v56, %v6825_v57  ;;  %v6415_v18 = vld [vmem:[#allocation3 + $0x2d0] sm:$0xf]  ;;  %v6928_v42 = vor.u32 %v9124_v32, %v6927_v30 }
 0x125   :  { %v6416_v36 = vor.u32 %v8996_v27, %v6415_v18  ;;  %v8948_v38 = vld [vmem:[#allocation3 + $0x16c] sm:$0xf0]  ;;  %v6289_v18 = vld [vmem:[#allocation3 + $0x1f0] sm:$0xf0] }
 0x126   :  { %3077 = vmatpush.bf16.msrb.mxu2 %v6768_v44  ;;  %3004 = vmatpush.bf16.msra.mxu3 %v6860_v50  ;;  %v6383_v43 = vld [vmem:[#allocation3 + $0x290] sm:$0xf]  ;;  %v2762_v50 = vpop.f32.mrf.mxu1  ;;  %v6224_v51 = vor.u32 %v8948_v38, %v6223_v37 }
 0x127   :  { %v8988_v44 = vld [vmem:[#allocation3 + $0x2ac] sm:$0xf0]  ;;  %v6257_v50 = vld [vmem:[#allocation3 + $0x1b0] sm:$0xf0] }
 0x128   :  { %3090 = vmatpush.bf16.msrb.mxu0 %v7024_v45  ;;  %3065 = vmatpush.bf16.msrb.mxu1 %v6480_v58  ;;  %v6639_v45 = vld [vmem:[#allocation3 + $0x490] sm:$0xf]  ;;  %v6384_v52 = vor.u32 %v8988_v44, %v6383_v43  ;;  %v2799_v63 = vpop.f32.mrf.mxu2  ;;  %v2786_v44 = vpop.f32.mrf.mxu3 }
 0x129   :  { %v9052_v46 = vld [vmem:[#allocation3 + $0x4ac] sm:$0xf0] }
 0x12a   :  { %3078 = vmatpush.bf16.msrb.mxu2 %v6736_v1  ;;  %3005 = vmatpush.bf16.msra.mxu3 %v6828_v11  ;;  %v6895_v47 = vld [vmem:[#allocation3 + $0x690] sm:$0xf]  ;;  %v6640_v56 = vor.u32 %v9052_v46, %v6639_v45 }
 0x12b   :  { %v9116_v49 = vld [vmem:[#allocation3 + $0x6ac] sm:$0xf0]  ;;  %7616 = vmatmul.msk.bf16.vlgmr.msra.gmra.mxu1 %vm615_vm0, %v10023_v2 }
 0x12c   :  { %3091 = vmatpush.bf16.msrb.mxu0 %v6992_v3  ;;  %3066 = vmatpush.bf16.msrb.mxu1 %v6448_v19  ;;  %v6191_v53 = vld [vmem:[#allocation3 + $0x110] sm:$0xf]  ;;  %v6896_v57 = vor.u32 %v9116_v49, %v6895_v47  ;;  %v8952_v49 = vld [vmem:[#allocation3 + $0x194] sm:$0xf] }
 0x12d   :  { %3006 = vmatmul.bf16.vlgmr.msra.gmra.mxu3 %v10021_v61  ;;  %v8940_v55 = vld [vmem:[#allocation3 + $0x12c] sm:$0xf0] }
 0x12e   :  { %3050 = vmatpush.bf16.msrb.mxu3 %v6288_v16  ;;  %3079 = vmatpush.bf16.msrb.mxu2 %v6704_v25  ;;  %v6351_v31 = vld [vmem:[#allocation3 + $0x250] sm:$0xf]  ;;  %v6192_v60 = vor.u32 %v8940_v55, %v6191_v53 }
 0x12f   :  { %v8980_v58 = vld [vmem:[#allocation3 + $0x26c] sm:$0xf0] }
 0x130   :  { %3092 = vmatpush.bf16.msrb.mxu0 %v6960_v26  ;;  %3067 = vmatpush.bf16.msrb.mxu1 %v6416_v36  ;;  %v6607_v62 = vld [vmem:[#allocation3 + $0x450] sm:$0xf]  ;;  %v6352_v8 = vor.u32 %v8980_v58, %v6351_v31  ;;  %v8960_v26 = vld [vmem:[#allocation3 + $0x1d4] sm:$0xf]  ;;  %v2801_v36 = vpop.f32.mrf.mxu2  ;;  %v6260_v31 = vor.u32 %v8952_v49, %v6257_v50 }
 0x131   :  { %v9044_v1 = vld [vmem:[#allocation3 + $0x46c] sm:$0xf0]  ;;  %v6292_v38 = vor.u32 %v8960_v26, %v6289_v18  ;;  %v9016_v58 = vld [vmem:[#allocation3 + $0x394] sm:$0xf] }
 0x132   :  { %3051 = vmatpush.bf16.msrb.mxu3 %v6256_v33  ;;  %3080 = vmatpush.bf16.msrb.mxu2 %v6672_v39  ;;  %v6863_v3 = vld [vmem:[#allocation3 + $0x650] sm:$0xf]  ;;  %v6608_v14 = vor.u32 %v9044_v1, %v6607_v62  ;;  %v9024_v39 = vld [vmem:[#allocation3 + $0x3d4] sm:$0xf] }
 0x133   :  { %v9108_v6 = vld [vmem:[#allocation3 + $0x66c] sm:$0xf0]  ;;  %v6513_v62 = vld [vmem:[#allocation3 + $0x3b0] sm:$0xf0] }
 0x134   :  { %3093 = vmatpush.bf16.msrb.mxu0 %v6928_v42  ;;  %v6159_v7 = vld [vmem:[#allocation3 + $0xd0] sm:$0xf]  ;;  %3068 = vmatpush.bf16.msrb.mxu1 %v6384_v52  ;;  %v6864_v15 = vor.u32 %v9108_v6, %v6863_v3  ;;  %v6545_v42 = vld [vmem:[#allocation3 + $0x3f0] sm:$0xf0] }
 0x135   :  { %v8932_v11 = vld [vmem:[#allocation3 + $0xec] sm:$0xf0]  ;;  %v6548_v55 = vor.u32 %v9024_v39, %v6545_v42  ;;  %v8936_v26 = vld [vmem:[#allocation3 + $0x114] sm:$0xf] }
 0x136   :  { %3052 = vmatpush.bf16.msrb.mxu3 %v6224_v51  ;;  %v6319_v12 = vld [vmem:[#allocation3 + $0x210] sm:$0xf]  ;;  %3081 = vmatpush.bf16.msrb.mxu2 %v6640_v56  ;;  %v6160_v25 = vor.u32 %v8932_v11, %v6159_v7  ;;  %v2787_v51 = vadd.f32 %v2786_v44, %v10050_v40  ;;  %v6225_v7 = vld [vmem:[#allocation3 + $0x170] sm:$0xf0]  ;;  %v2812_v11 = vpop.f32.mrf.mxu0 }
 0x137   :  { %v8972_v13 = vld [vmem:[#allocation3 + $0x22c] sm:$0xf0]  ;;  %v6193_v18 = vld [vmem:[#allocation3 + $0x130] sm:$0xf0] }
 0x138   :  { %3094 = vmatpush.bf16.msrb.mxu0 %v6896_v57  ;;  %v6575_v16 = vld [vmem:[#allocation3 + $0x410] sm:$0xf]  ;;  %3069 = vmatpush.bf16.msrb.mxu1 %v6352_v8  ;;  %v6320_v28 = vor.u32 %v8972_v13, %v6319_v12  ;;  %v2800_v56 = vadd.f32 %v2799_v63, %v2787_v51  ;;  %v6516_v63 = vor.u32 %v9016_v58, %v6513_v62  ;;  %v6161_v44 = vld [vmem:[#allocation3 + $0xf0] sm:$0xf0] }
 0x139   :  { %v9036_v17 = vld [vmem:[#allocation3 + $0x42c] sm:$0xf0]  ;;  %v6196_v36 = vor.u32 %v8936_v26, %v6193_v18  ;;  %v6129_v58 = vld [vmem:[#allocation3 + $0xb0] sm:$0xf0] }
 0x13a   :  { %v6831_v19 = vld [vmem:[#allocation3 + $0x610] sm:$0xf]  ;;  %3053 = vmatpush.bf16.msrb.mxu3 %v6192_v60  ;;  %3082 = vmatpush.bf16.msrb.mxu2 %v6608_v14  ;;  %v6576_v33 = vor.u32 %v9036_v17, %v6575_v16  ;;  %v8944_v60 = vld [vmem:[#allocation3 + $0x154] sm:$0xf]  ;;  %v2813_v14 = vadd.f32 %v2812_v11, %v2800_v56 }
 0x13b   :  { %v9100_v21 = vld [vmem:[#allocation3 + $0x62c] sm:$0xf0]  ;;  %v6228_v16 = vor.u32 %v8944_v60, %v6225_v7  ;;  %v9008_v17 = vld [vmem:[#allocation3 + $0x354] sm:$0xf] }
 0x13c   :  { %v7567_v22 = vld [vmem:[#allocation3 + $0xbd0] sm:$0xf]  ;;  %3095 = vmatpush.bf16.msrb.mxu0 %v6864_v15  ;;  %v6832_v34 = vor.u32 %v9100_v21, %v6831_v19  ;;  %3070 = vmatpush.bf16.msrb.mxu1 %v6320_v28  ;;  %v6481_v19 = vld [vmem:[#allocation3 + $0x370] sm:$0xf0] }
 0x13d   :  { %v9284_v23 = vld [vmem:[#allocation3 + $0xbec] sm:$0xf0]  ;;  %v6385_v11 = vld [vmem:[#allocation3 + $0x2b0] sm:$0xf0] }
 0x13e   :  { %v7599_v27 = vld [vmem:[#allocation3 + $0xc10] sm:$0xf]  ;;  %v7568_v37 = vor.u32 %v9284_v23, %v7567_v22  ;;  %3054 = vmatpush.bf16.msrb.mxu3 %v6160_v25  ;;  %3083 = vmatpush.bf16.msrb.mxu2 %v6576_v33  ;;  %v2825_v22 = vpop.f32.mrf.mxu1  ;;  %v2814_v50 = vpop.f32.mrf.mxu0  ;;  %v6353_v18 = vld [vmem:[#allocation3 + $0x270] sm:$0xf0] }
 0x13f   :  { %v9292_v29 = vld [vmem:[#allocation3 + $0xc2c] sm:$0xf0]  ;;  %3071 = vmatmul.bf16.vlgmr.msrb.gmra.mxu1 %v10006_v4  ;;  %v10090_v28 = vadd.f32 %v2825_v22, %v2813_v14  ;;  %v8912_v14 = vld [vmem:[#allocation3 + $0x54] sm:$0xf] }
 0x140   :  { %v6127_v30 = vld [vmem:[#allocation3 + $0x90] sm:$0xf]  ;;  %v7600_v45 = vor.u32 %v9292_v29, %v7599_v27  ;;  %3096 = vmatpush.bf16.msrb.mxu0 %v6832_v34  ;;  %3115 = vmatpush.bf16.msra.mxu1 %v7568_v37  ;;  %v2788_v27 = vpop.f32.mrf.mxu3  ;;  %v9000_v37 = vld [vmem:[#allocation3 + $0x314] sm:$0xf] }
 0x141   :  { %v8924_v32 = vld [vmem:[#allocation3 + $0xac] sm:$0xf0]  ;;  %3084 = vmatmul.bf16.vlgmr.msrb.gmra.mxu2 %v10009_v9 }
 0x142   :  { %v7535_v43 = vld [vmem:[#allocation3 + $0xb90] sm:$0xf]  ;;  %v6128_v46 = vor.u32 %v8924_v32, %v6127_v30  ;;  %3135 = vmatpush.bf16.msra.mxu2 %v7600_v45  ;;  %v6484_v30 = vor.u32 %v9008_v17, %v6481_v19  ;;  %v8976_v19 = vld [vmem:[#allocation3 + $0x254] sm:$0xf] }
 0x143   :  { %v9276_v47 = vld [vmem:[#allocation3 + $0xbac] sm:$0xf0]  ;;  %3097 = vmatmul.bf16.vlgmr.msrb.gmra.mxu0 %v10021_v61 }
 0x144   :  { %v6095_v52 = vld [vmem:[#allocation3 + $0x50] sm:$0xf]  ;;  %3141 = vmatpush.bf16.msra.mxu0 %v6292_v38  ;;  %v7536_v57 = vor.u32 %v9276_v47, %v7535_v43  ;;  %3055 = vmatpush.bf16.msrb.mxu3 %v6128_v46  ;;  %v6449_v38 = vld [vmem:[#allocation3 + $0x330] sm:$0xf0] }
 0x145   :  { %v8916_v53 = vld [vmem:[#allocation3 + $0x6c] sm:$0xf0]  ;;  %v8928_v43 = vld [vmem:[#allocation3 + $0xd4] sm:$0xf]  ;;  %v6452_v46 = vor.u32 %v9000_v37, %v6449_v38 }
 0x146   :  { %v7503_v1 = vld [vmem:[#allocation3 + $0xb50] sm:$0xf]  ;;  %v6096_v3 = vor.u32 %v8916_v53, %v6095_v52  ;;  %3154 = vmatpush.bf16.msrb.mxu2 %v6548_v55  ;;  %3116 = vmatpush.bf16.msra.mxu1 %v7536_v57  ;;  %v6164_v52 = vor.u32 %v8928_v43, %v6161_v44  ;;  %v8992_v53 = vld [vmem:[#allocation3 + $0x2d4] sm:$0xf]  ;;  %v2827_v62 = vpop.f32.mrf.mxu1 }
 0x147   :  { %v9268_v6 = vld [vmem:[#allocation3 + $0xb6c] sm:$0xf0]  ;;  %v6417_v55 = vld [vmem:[#allocation3 + $0x2f0] sm:$0xf0] }
 0x148   :  { %v6063_v40 = vld [vmem:[#allocation3 + $0x10] sm:$0xf]  ;;  %3142 = vmatpush.bf16.msra.mxu0 %v6260_v31  ;;  %v7504_v15 = vor.u32 %v9268_v6, %v7503_v1  ;;  %3056 = vmatpush.bf16.msrb.mxu3 %v6096_v3  ;;  %v8920_v31 = vld [vmem:[#allocation3 + $0x94] sm:$0xf]  ;;  %v6420_v3 = vor.u32 %v8992_v53, %v6417_v55 }
 0x149   :  { %v8908_v8 = vld [vmem:[#allocation3 + $0x2c] sm:$0xf0]  ;;  %v9216_v37 = vld [vmem:[#allocation3 + $0x9d4] sm:$0xf] }
 0x14a   :  { %v7311_v12 = vld [vmem:[#allocation3 + $0x9d0] sm:$0xf]  ;;  %v6064_v23 = vor.u32 %v8908_v8, %v6063_v40  ;;  %3155 = vmatpush.bf16.msrb.mxu2 %v6516_v63  ;;  %3117 = vmatpush.bf16.msra.mxu1 %v7504_v15  ;;  %v6132_v40 = vor.u32 %v8920_v31, %v6129_v58  ;;  %v8984_v8 = vld [vmem:[#allocation3 + $0x294] sm:$0xf] }
 0x14b   :  { %v9220_v13 = vld [vmem:[#allocation3 + $0x9ec] sm:$0xf0]  ;;  %v6097_v15 = vld [vmem:[#allocation3 + $0x70] sm:$0xf0]  ;;  %v6388_v17 = vor.u32 %v8984_v8, %v6385_v11  ;;  %v2838_v62 = vpop.f32.mrf.mxu3 }
 0x14c   :  { %v7471_v21 = vld [vmem:[#allocation3 + $0xb10] sm:$0xf]  ;;  %v7312_v29 = vor.u32 %v9220_v13, %v7311_v12  ;;  %3143 = vmatpush.bf16.msra.mxu0 %v6228_v16  ;;  %3057 = vmatpush.bf16.msrb.mxu3 %v6064_v23  ;;  %v10093_v12 = vpop.f32.mrf.mxu2  ;;  %v10097_v23 = vpop.f32.mrf.mxu0  ;;  %v6100_v26 = vor.u32 %v8912_v14, %v6097_v15  ;;  %v7313_v38 = vld [vmem:[#allocation3 + $0x9f0] sm:$0xf0] }
 0x14d   :  { %v9260_v25 = vld [vmem:[#allocation3 + $0xb2c] sm:$0xf0]  ;;  %v7569_v53 = vld [vmem:[#allocation3 + $0xbf0] sm:$0xf0] }
 0x14e   :  { %v7279_v32 = vld [vmem:[#allocation3 + $0x990] sm:$0xf]  ;;  %v7472_v34 = vor.u32 %v9260_v25, %v7471_v21  ;;  %3156 = vmatpush.bf16.msrb.mxu2 %v6484_v30  ;;  %v8904_v30 = vld [vmem:[#allocation3 + $0x14] sm:$0xf] }
 0x14f   :  { %v9212_v33 = vld [vmem:[#allocation3 + $0x9ac] sm:$0xf0]  ;;  %3058 = vmatmul.bf16.vlgmr.msrb.gmra.mxu3 %v9998_v54  ;;  %v9144_v55 = vld [vmem:[#allocation3 + $0x794] sm:$0xf] }
 0x150   :  { %v7439_v39 = vld [vmem:[#allocation3 + $0xad0] sm:$0xf]  ;;  %3102 = vmatpush.bf16.msra.mxu3 %v7312_v29  ;;  %v7280_v45 = vor.u32 %v9212_v33, %v7279_v32  ;;  %3118 = vmatpush.bf16.msra.mxu1 %v7472_v34  ;;  %v6065_v32 = vld [vmem:[#allocation3 + $0x30] sm:$0xf0] }
 0x151   :  { %v9252_v42 = vld [vmem:[#allocation3 + $0xaec] sm:$0xf0]  ;;  %3144 = vmatpush.bf16.msra.mxu0 %v6196_v36  ;;  %7617 = vmatmul.msk.bf16.vlgmr.msra.gmra.mxu2 %vm615_vm0, %v10023_v2  ;;  %v9152_v33 = vld [vmem:[#allocation3 + $0x7d4] sm:$0xf] }
 0x152   :  { %v7247_v47 = vld [vmem:[#allocation3 + $0x950] sm:$0xf]  ;;  %v7440_v51 = vor.u32 %v9252_v42, %v7439_v39  ;;  %3157 = vmatpush.bf16.msrb.mxu2 %v6452_v46  ;;  %v7057_v36 = vld [vmem:[#allocation3 + $0x7f0] sm:$0xf0]  ;;  %v6356_v39 = vor.u32 %v8976_v19, %v6353_v18 }
 0x153   :  { %v9204_v49 = vld [vmem:[#allocation3 + $0x96c] sm:$0xf0]  ;;  %v8968_v46 = vld [vmem:[#allocation3 + $0x214] sm:$0xf]  ;;  %v7060_v50 = vor.u32 %v9152_v33, %v7057_v36 }
 0x154   :  { %v7407_v56 = vld [vmem:[#allocation3 + $0xa90] sm:$0xf]  ;;  %3103 = vmatpush.bf16.msra.mxu3 %v7280_v45  ;;  %v7248_v1 = vor.u32 %v9204_v49, %v7247_v47  ;;  %3119 = vmatpush.bf16.msra.mxu1 %v7440_v51  ;;  %v6068_v45 = vor.u32 %v8904_v30, %v6065_v32  ;;  %v6321_v47 = vld [vmem:[#allocation3 + $0x230] sm:$0xf0]  ;;  %v2853_v49 = vpop.f32.mrf.mxu2  ;;  %v7316_v51 = vor.u32 %v9216_v37, %v7313_v38 }
 0x155   :  { %v9244_v57 = vld [vmem:[#allocation3 + $0xaac] sm:$0xf0]  ;;  %3145 = vmatpush.bf16.msra.mxu0 %v6164_v52  ;;  %v9280_v52 = vld [vmem:[#allocation3 + $0xbd4] sm:$0xf]  ;;  %v10107_v38 = vpop.f32.mrf.mxu1 }
 0x156   :  { %v7215_v6 = vld [vmem:[#allocation3 + $0x910] sm:$0xf]  ;;  %v7408_v7 = vor.u32 %v9244_v57, %v7407_v56  ;;  %3158 = vmatpush.bf16.msrb.mxu2 %v6420_v3  ;;  %v7025_v57 = vld [vmem:[#allocation3 + $0x7b0] sm:$0xf0] }
 0x157   :  { %v9196_v60 = vld [vmem:[#allocation3 + $0x92c] sm:$0xf0]  ;;  %v9208_v31 = vld [vmem:[#allocation3 + $0x994] sm:$0xf]  ;;  %v7028_v8 = vor.u32 %v9144_v55, %v7025_v57 }
 0x158   :  { %v7375_v63 = vld [vmem:[#allocation3 + $0xa50] sm:$0xf]  ;;  %3104 = vmatpush.bf16.msra.mxu3 %v7248_v1  ;;  %v7216_v16 = vor.u32 %v9196_v60, %v7215_v6  ;;  %3120 = vmatpush.bf16.msra.mxu1 %v7408_v7  ;;  %v7281_v58 = vld [vmem:[#allocation3 + $0x9b0] sm:$0xf0]  ;;  %v6324_v1 = vor.u32 %v8968_v46, %v6321_v47  ;;  %v2866_v60 = vpop.f32.mrf.mxu0  ;;  %v2839_v7 = vadd.f32 %v2838_v62, %v10090_v28 }
 0x159   :  { %v9236_v13 = vld [vmem:[#allocation3 + $0xa6c] sm:$0xf0]  ;;  %3146 = vmatpush.bf16.msra.mxu0 %v6132_v40  ;;  %v7572_v40 = vor.u32 %v9280_v52, %v7569_v53  ;;  %v7284_v11 = vor.u32 %v9208_v31, %v7281_v58  ;;  %v9136_v14 = vld [vmem:[#allocation3 + $0x754] sm:$0xf] }
 0x15a   :  { %v7183_v21 = vld [vmem:[#allocation3 + $0x8d0] sm:$0xf]  ;;  %v7376_v25 = vor.u32 %v9236_v13, %v7375_v63  ;;  %3159 = vmatpush.bf16.msrb.mxu2 %v6388_v17  ;;  %v9272_v63 = vld [vmem:[#allocation3 + $0xb94] sm:$0xf]  ;;  %v2852_v15 = vadd.f32 %v10093_v12, %v2839_v7 }
 0x15b   :  { %v9188_v22 = vld [vmem:[#allocation3 + $0x8ec] sm:$0xf0]  ;;  %v7537_v13 = vld [vmem:[#allocation3 + $0xbb0] sm:$0xf0] }
 0x15c   :  { %v7343_v27 = vld [vmem:[#allocation3 + $0xa10] sm:$0xf]  ;;  %3105 = vmatpush.bf16.msra.mxu3 %v7216_v16  ;;  %v7184_v34 = vor.u32 %v9188_v22, %v7183_v21  ;;  %3121 = vmatpush.bf16.msra.mxu1 %v7376_v25  ;;  %v6993_v17 = vld [vmem:[#allocation3 + $0x770] sm:$0xf0]  ;;  %v10103_v25 = vadd.f32 %v10097_v23, %v2852_v15 }
 0x15d   :  { %v9228_v29 = vld [vmem:[#allocation3 + $0xa2c] sm:$0xf0]  ;;  %3147 = vmatpush.bf16.msra.mxu0 %v6100_v26  ;;  %v9200_v19 = vld [vmem:[#allocation3 + $0x954] sm:$0xf]  ;;  %v7540_v26 = vor.u32 %v9272_v63, %v7537_v13  ;;  %v6996_v12 = vor.u32 %v9136_v14, %v6993_v17  ;;  %v2879_v13 = vpop.f32.mrf.mxu1 }
 0x15e   :  { %v7151_v42 = vld [vmem:[#allocation3 + $0x890] sm:$0xf]  ;;  %v7344_v44 = vor.u32 %v9228_v29, %v7343_v27  ;;  %3160 = vmatpush.bf16.msrb.mxu2 %v6356_v39  ;;  %v7249_v21 = vld [vmem:[#allocation3 + $0x970] sm:$0xf0]  ;;  %v8957_v13 = vld [vmem:[#allocation3 + $0x1b4] sm:$0xf0] }
 0x15f   :  { %v9180_v43 = vld [vmem:[#allocation3 + $0x8ac] sm:$0xf0]  ;;  %v9088_v18 = vld [vmem:[#allocation3 + $0x5d4] sm:$0xf]  ;;  %v7252_v29 = vor.u32 %v9200_v19, %v7249_v21 }
 0x160   :  { %3106 = vmatpush.bf16.msra.mxu3 %v7184_v34  ;;  %v7152_v56 = vor.u32 %v9180_v43, %v7151_v42  ;;  %v7119_v3 = vld [vmem:[#allocation3 + $0x850] sm:$0xf]  ;;  %3122 = vmatpush.bf16.msra.mxu1 %v7344_v44  ;;  %v6801_v27 = vld [vmem:[#allocation3 + $0x5f0] sm:$0xf0]  ;;  %v2840_v42 = vpop.f32.mrf.mxu3  ;;  %v10109_v44 = vpop.f32.mrf.mxu0 }
 0x161   :  { %v9172_v6 = vld [vmem:[#allocation3 + $0x86c] sm:$0xf0]  ;;  %3148 = vmatpush.bf16.msra.mxu0 %v6068_v45  ;;  %v9264_v30 = vld [vmem:[#allocation3 + $0xb54] sm:$0xf]  ;;  %v6804_v39 = vor.u32 %v9088_v18, %v6801_v27  ;;  %v10112_v18 = vpop.f32.mrf.mxu2 }
 0x162   :  { %v7120_v16 = vor.u32 %v9172_v6, %v7119_v3  ;;  %3161 = vmatpush.bf16.msrb.mxu2 %v6324_v1  ;;  %v7087_v22 = vld [vmem:[#allocation3 + $0x810] sm:$0xf]  ;;  %v7505_v32 = vld [vmem:[#allocation3 + $0xb70] sm:$0xf0] }
 0x163   :  { %v9164_v28 = vld [vmem:[#allocation3 + $0x82c] sm:$0xf0]  ;;  %3123 = vmatmul.bf16.vlgmr.msra.gmra.mxu1 %v10036_v48  ;;  %v9128_v33 = vld [vmem:[#allocation3 + $0x714] sm:$0xf]  ;;  %v7508_v43 = vor.u32 %v9264_v30, %v7505_v32 }
 0x164   :  { %3180 = vmatpush.bf16.msrb.mxu1 %v7060_v50  ;;  %3107 = vmatpush.bf16.msra.mxu3 %v7152_v56  ;;  %v7088_v34 = vor.u32 %v9164_v28, %v7087_v22  ;;  %v6961_v36 = vld [vmem:[#allocation3 + $0x730] sm:$0xf0] }
 0x165   :  { %3193 = vmatpush.bf16.msrb.mxu0 %v7316_v51  ;;  %3162 = vmatmul.bf16.vlgmr.msrb.gmra.mxu2 %v10006_v4  ;;  %v9192_v23 = vld [vmem:[#allocation3 + $0x914] sm:$0xf]  ;;  %v6964_v47 = vor.u32 %v9128_v33, %v6961_v36 }
 0x166   :  { %3149 = vmatmul.bf16.vlgmr.msra.gmra.mxu0 %v9998_v54  ;;  %3206 = vmatpush.bf16.msra.mxu2 %v7572_v40  ;;  %v7217_v37 = vld [vmem:[#allocation3 + $0x930] sm:$0xf0] }
 0x167   :  { %v9080_v45 = vld [vmem:[#allocation3 + $0x594] sm:$0xf]  ;;  %v7220_v49 = vor.u32 %v9192_v23, %v7217_v37 }
 0x168   :  { %3181 = vmatpush.bf16.msrb.mxu1 %v7028_v8  ;;  %3108 = vmatpush.bf16.msra.mxu3 %v7120_v16  ;;  %v6769_v46 = vld [vmem:[#allocation3 + $0x5b0] sm:$0xf0]  ;;  %v2905_v15 = vpop.f32.mrf.mxu0 }
 0x169   :  { %3194 = vmatpush.bf16.msrb.mxu0 %v7284_v11  ;;  %v9256_v50 = vld [vmem:[#allocation3 + $0xb14] sm:$0xf]  ;;  %v6772_v57 = vor.u32 %v9080_v45, %v6769_v46  ;;  %v9085_v15 = vld [vmem:[#allocation3 + $0x5b4] sm:$0xf0] }
 0x16a   :  { %3207 = vmatpush.bf16.msra.mxu2 %v7540_v26  ;;  %v7473_v51 = vld [vmem:[#allocation3 + $0xb30] sm:$0xf0] }
 0x16b   :  { %v9120_v52 = vld [vmem:[#allocation3 + $0x6d4] sm:$0xf]  ;;  %v7476_v31 = vor.u32 %v9256_v50, %v7473_v51  ;;  %v8965_v50 = vld [vmem:[#allocation3 + $0x1f4] sm:$0xf0] }
 0x16c   :  { %3182 = vmatpush.bf16.msrb.mxu1 %v6996_v12  ;;  %3109 = vmatpush.bf16.msra.mxu3 %v7088_v34  ;;  %v6929_v53 = vld [vmem:[#allocation3 + $0x6f0] sm:$0xf0]  ;;  %v6807_v51 = vld [vmem:[#allocation3 + $0x5d8] sm:$0xf] }
 0x16d   :  { %3195 = vmatpush.bf16.msrb.mxu0 %v7252_v29  ;;  %v9184_v55 = vld [vmem:[#allocation3 + $0x8d4] sm:$0xf]  ;;  %v6932_v1 = vor.u32 %v9120_v52, %v6929_v53  ;;  %v9093_v52 = vld [vmem:[#allocation3 + $0x5f4] sm:$0xf0] }
 0x16e   :  { %v7185_v56 = vld [vmem:[#allocation3 + $0x8f0] sm:$0xf0]  ;;  %3208 = vmatpush.bf16.msra.mxu2 %v7508_v43 }
 0x16f   :  { %v9072_v58 = vld [vmem:[#allocation3 + $0x554] sm:$0xf]  ;;  %v7188_v3 = vor.u32 %v9184_v55, %v7185_v56  ;;  %3110 = vmatmul.bf16.vlgmr.msra.gmra.mxu3 %v10031_v35 }
 0x170   :  { %3167 = vmatpush.bf16.msrb.mxu3 %v6804_v39  ;;  %v6737_v62 = vld [vmem:[#allocation3 + $0x570] sm:$0xf0]  ;;  %3183 = vmatpush.bf16.msrb.mxu1 %v6964_v47  ;;  %v6295_v47 = vld [vmem:[#allocation3 + $0x1d8] sm:$0xf]  ;;  %v10114_v55 = vpop.f32.mrf.mxu0 }
 0x171   :  { %3196 = vmatpush.bf16.msrb.mxu0 %v7220_v49  ;;  %v9248_v6 = vld [vmem:[#allocation3 + $0xad4] sm:$0xf]  ;;  %v6740_v63 = vor.u32 %v9072_v58, %v6737_v62 }
 0x172   :  { %v7441_v60 = vld [vmem:[#allocation3 + $0xaf0] sm:$0xf0]  ;;  %3209 = vmatpush.bf16.msra.mxu2 %v7476_v31 }
 0x173   :  { %v9112_v7 = vld [vmem:[#allocation3 + $0x694] sm:$0xf]  ;;  %v7444_v14 = vor.u32 %v9248_v6, %v7441_v60  ;;  %v6296_v6 = vor.u32 %v8965_v50, %v6295_v47  ;;  %v6808_v60 = vor.u32 %v9093_v52, %v6807_v51  ;;  %v6999_v47 = vld [vmem:[#allocation3 + $0x758] sm:$0xf] }
 0x174   :  { %v6897_v40 = vld [vmem:[#allocation3 + $0x6b0] sm:$0xf0]  ;;  %3168 = vmatpush.bf16.msrb.mxu3 %v6772_v57  ;;  %3184 = vmatpush.bf16.msrb.mxu1 %v6932_v1  ;;  %v6199_v50 = vld [vmem:[#allocation3 + $0x118] sm:$0xf] }
 0x175   :  { %v9176_v8 = vld [vmem:[#allocation3 + $0x894] sm:$0xf]  ;;  %3197 = vmatpush.bf16.msrb.mxu0 %v7188_v3  ;;  %v6900_v19 = vor.u32 %v9112_v7, %v6897_v40  ;;  %v2918_v3 = vpop.f32.mrf.mxu2  ;;  %v7063_v7 = vld [vmem:[#allocation3 + $0x7d8] sm:$0xf] }
 0x176   :  { %v7153_v11 = vld [vmem:[#allocation3 + $0x8b0] sm:$0xf0]  ;;  %3210 = vmatpush.bf16.msra.mxu2 %v7444_v14  ;;  %v9157_v40 = vld [vmem:[#allocation3 + $0x7f4] sm:$0xf0] }
 0x177   :  { %v9064_v16 = vld [vmem:[#allocation3 + $0x514] sm:$0xf]  ;;  %v7156_v21 = vor.u32 %v9176_v8, %v7153_v11  ;;  %v6263_v8 = vld [vmem:[#allocation3 + $0x198] sm:$0xf]  ;;  %v2878_v11 = vadd.f32 %v10107_v38, %v10057_v0 }
 0x178   :  { %v6705_v17 = vld [vmem:[#allocation3 + $0x530] sm:$0xf0]  ;;  %3169 = vmatpush.bf16.msrb.mxu3 %v6740_v63  ;;  %3185 = vmatpush.bf16.msrb.mxu1 %v6900_v19  ;;  %v6775_v14 = vld [vmem:[#allocation3 + $0x598] sm:$0xf] }
 0x179   :  { %v9240_v22 = vld [vmem:[#allocation3 + $0xa94] sm:$0xf]  ;;  %v6708_v30 = vor.u32 %v9064_v16, %v6705_v17  ;;  %3198 = vmatpush.bf16.msrb.mxu0 %v7156_v21  ;;  %v2890_v16 = vpop.f32.mrf.mxu3  ;;  %v9149_v0 = vld [vmem:[#allocation3 + $0x7b4] sm:$0xf0] }
 0x17a   :  { %v7409_v28 = vld [vmem:[#allocation3 + $0xab0] sm:$0xf0]  ;;  %v6231_v38 = vld [vmem:[#allocation3 + $0x158] sm:$0xf] }
 0x17b   :  { %v9104_v26 = vld [vmem:[#allocation3 + $0x654] sm:$0xf]  ;;  %v7412_v32 = vor.u32 %v9240_v22, %v7409_v28  ;;  %v2891_v22 = vadd.f32 %v2890_v16, %v2878_v11  ;;  %v7064_v28 = vor.u32 %v9157_v40, %v7063_v7  ;;  %v8941_v52 = vld [vmem:[#allocation3 + $0x134] sm:$0xf0] }
 0x17c   :  { %v6865_v27 = vld [vmem:[#allocation3 + $0x670] sm:$0xf0]  ;;  %3170 = vmatpush.bf16.msrb.mxu3 %v6708_v30  ;;  %v6967_v7 = vld [vmem:[#allocation3 + $0x718] sm:$0xf] }
 0x17d   :  { %v9168_v12 = vld [vmem:[#allocation3 + $0x854] sm:$0xf]  ;;  %v6868_v23 = vor.u32 %v9104_v26, %v6865_v27  ;;  %3211 = vmatpush.bf16.msra.mxu2 %v7412_v32  ;;  %v6264_v26 = vor.u32 %v8957_v13, %v6263_v8  ;;  %v6776_v27 = vor.u32 %v9085_v15, %v6775_v14  ;;  %v8949_v32 = vld [vmem:[#allocation3 + $0x174] sm:$0xf0] }
 0x17e   :  { %v7121_v29 = vld [vmem:[#allocation3 + $0x870] sm:$0xf0]  ;;  %v9133_v40 = vld [vmem:[#allocation3 + $0x734] sm:$0xf0] }
 0x17f   :  { %v9232_v33 = vld [vmem:[#allocation3 + $0xa54] sm:$0xf]  ;;  %v7124_v37 = vor.u32 %v9168_v12, %v7121_v29  ;;  %3186 = vmatpush.bf16.msrb.mxu1 %v6868_v23  ;;  %v7031_v12 = vld [vmem:[#allocation3 + $0x798] sm:$0xf]  ;;  %v2904_v29 = vadd.f32 %v10109_v44, %v2891_v22  ;;  %v6232_v44 = vor.u32 %v8949_v32, %v6231_v38  ;;  %v6968_v15 = vor.u32 %v9133_v40, %v6967_v7 }
 0x180   :  { %v9056_v34 = vld [vmem:[#allocation3 + $0x4d4] sm:$0xf]  ;;  %v6167_v8 = vld [vmem:[#allocation3 + $0xd8] sm:$0xf] }
 0x181   :  { %v6673_v36 = vld [vmem:[#allocation3 + $0x4f0] sm:$0xf0]  ;;  %3199 = vmatpush.bf16.msrb.mxu0 %v7124_v37  ;;  %v8933_v11 = vld [vmem:[#allocation3 + $0xf4] sm:$0xf0] }
 0x182   :  { %v7377_v39 = vld [vmem:[#allocation3 + $0xa70] sm:$0xf0]  ;;  %v6676_v49 = vor.u32 %v9056_v34, %v6673_v36  ;;  %v9077_v34 = vld [vmem:[#allocation3 + $0x574] sm:$0xf0]  ;;  %v2957_v36 = vpop.f32.mrf.mxu0 }
 0x183   :  { %v9096_v42 = vld [vmem:[#allocation3 + $0x614] sm:$0xf]  ;;  %v7380_v53 = vor.u32 %v9232_v33, %v7377_v39  ;;  %v6743_v33 = vld [vmem:[#allocation3 + $0x558] sm:$0xf]  ;;  %v2917_v39 = vadd.f32 %v10112_v18, %v2904_v29  ;;  %v2968_v36 = vpop.f32.mrf.mxu2 }
 0x184   :  { %v6833_v43 = vld [vmem:[#allocation3 + $0x630] sm:$0xf0]  ;;  %3171 = vmatpush.bf16.msrb.mxu3 %v6676_v49  ;;  %v9141_v49 = vld [vmem:[#allocation3 + $0x774] sm:$0xf0] }
 0x185   :  { %v9160_v45 = vld [vmem:[#allocation3 + $0x814] sm:$0xf]  ;;  %v6836_v31 = vor.u32 %v9096_v42, %v6833_v43  ;;  %3212 = vmatpush.bf16.msra.mxu2 %v7380_v53  ;;  %v7032_v42 = vor.u32 %v9149_v0, %v7031_v12  ;;  %v6711_v53 = vld [vmem:[#allocation3 + $0x518] sm:$0xf] }
 0x186   :  { %v7089_v46 = vld [vmem:[#allocation3 + $0x830] sm:$0xf0]  ;;  %v9061_v13 = vld [vmem:[#allocation3 + $0x4f4] sm:$0xf0] }
 0x187   :  { %v9048_v56 = vld [vmem:[#allocation3 + $0x494] sm:$0xf]  ;;  %v7092_v58 = vor.u32 %v9160_v45, %v7089_v46  ;;  %3187 = vmatpush.bf16.msrb.mxu1 %v6836_v31  ;;  %v6744_v46 = vor.u32 %v9077_v34, %v6743_v33  ;;  %v2929_v31 = vpop.f32.mrf.mxu1  ;;  %v8925_v12 = vld [vmem:[#allocation3 + $0xb4] sm:$0xf0] }
 0x188   :  { %v6641_v57 = vld [vmem:[#allocation3 + $0x4b0] sm:$0xf0]  ;;  %v10123_v3 = vadd.f32 %v2929_v31, %v2917_v39  ;;  %v6647_v0 = vld [vmem:[#allocation3 + $0x498] sm:$0xf] }
 0x189   :  { %v9224_v62 = vld [vmem:[#allocation3 + $0xa14] sm:$0xf]  ;;  %v6644_v63 = vor.u32 %v9048_v56, %v6641_v57  ;;  %3200 = vmatpush.bf16.msrb.mxu0 %v7092_v58  ;;  %v9069_v56 = vld [vmem:[#allocation3 + $0x534] sm:$0xf0]  ;;  %v2892_v57 = vpop.f32.mrf.mxu3  ;;  %v7000_v58 = vor.u32 %v9141_v49, %v6999_v47 }
 0x18a   :  { %v7345_v1 = vld [vmem:[#allocation3 + $0xa30] sm:$0xf0]  ;;  %3188 = vmatmul.bf16.vlgmr.msrb.gmra.mxu1 %v10021_v61  ;;  %v2981_v16 = vpop.f32.mrf.mxu0  ;;  %v9053_v38 = vld [vmem:[#allocation3 + $0x4b4] sm:$0xf0] }
 0x18b   :  { %v7348_v17 = vor.u32 %v9224_v62, %v7345_v1  ;;  %v9040_v19 = vld [vmem:[#allocation3 + $0x454] sm:$0xf]  ;;  %3232 = vmatpush.bf16.msra.mxu1 %v6296_v6  ;;  %3172 = vmatpush.bf16.msrb.mxu3 %v6644_v63  ;;  %v6551_v62 = vld [vmem:[#allocation3 + $0x3d8] sm:$0xf]  ;;  %v6200_v6 = vor.u32 %v8941_v52, %v6199_v50 }
 0x18c   :  { %v6609_v21 = vld [vmem:[#allocation3 + $0x470] sm:$0xf0]  ;;  %3201 = vmatmul.bf16.vlgmr.msrb.gmra.mxu0 %v10031_v35  ;;  %v9029_v1 = vld [vmem:[#allocation3 + $0x3f4] sm:$0xf0] }
 0x18d   :  { %3258 = vmatpush.bf16.msra.mxu0 %v6808_v60  ;;  %v6612_v30 = vor.u32 %v9040_v19, %v6609_v21  ;;  %3213 = vmatpush.bf16.msra.mxu2 %v7348_v17  ;;  %v9032_v23 = vld [vmem:[#allocation3 + $0x414] sm:$0xf]  ;;  %v6712_v60 = vor.u32 %v9069_v56, %v6711_v53  ;;  %v6679_v63 = vld [vmem:[#allocation3 + $0x4d8] sm:$0xf]  ;;  %v6552_v14 = vor.u32 %v9029_v1, %v6551_v62 }
 0x18e   :  { %v6577_v37 = vld [vmem:[#allocation3 + $0x430] sm:$0xf0]  ;;  %v6519_v17 = vld [vmem:[#allocation3 + $0x398] sm:$0xf]  ;;  %v6168_v21 = vor.u32 %v8933_v11, %v6167_v8  ;;  %v6680_v22 = vor.u32 %v9061_v13, %v6679_v63 }
 0x18f   :  { %v9288_v43 = vld [vmem:[#allocation3 + $0xc14] sm:$0xf]  ;;  %3233 = vmatpush.bf16.msra.mxu1 %v6264_v26  ;;  %3173 = vmatpush.bf16.msrb.mxu3 %v6612_v30  ;;  %v6580_v51 = vor.u32 %v9032_v23, %v6577_v37  ;;  %v9021_v19 = vld [vmem:[#allocation3 + $0x3b4] sm:$0xf0]  ;;  %v2931_v34 = vpop.f32.mrf.mxu1  ;;  %v6648_v37 = vor.u32 %v9053_v38, %v6647_v0  ;;  %v6553_v38 = vld [vmem:[#allocation3 + $0x3f8] sm:$0xf0] }
 0x190   :  { %v7601_v45 = vld [vmem:[#allocation3 + $0xc30] sm:$0xf0]  ;;  %3214 = vmatmul.bf16.vlgmr.msra.gmra.mxu2 %v10036_v48  ;;  %v9125_v26 = vld [vmem:[#allocation3 + $0x6f4] sm:$0xf0]  ;;  %v6520_v29 = vor.u32 %v9021_v19, %v6519_v17 }
 0x191   :  { %3271 = vmatpush.bf16.msrb.mxu2 %v7064_v28  ;;  %3259 = vmatpush.bf16.msra.mxu0 %v6776_v27  ;;  %v7604_v18 = vor.u32 %v9288_v43, %v7601_v45  ;;  %v6935_v28 = vld [vmem:[#allocation3 + $0x6d8] sm:$0xf]  ;;  %v2969_v45 = vadd.f32 %v2968_v36, %v10064_v5  ;;  %v2942_v36 = vpop.f32.mrf.mxu3 }
 0x192   :  { %v6135_v27 = vld [vmem:[#allocation3 + $0x98] sm:$0xf]  ;;  %v6936_v30 = vor.u32 %v9125_v26, %v6935_v28  ;;  %v2983_v56 = vpop.f32.mrf.mxu0  ;;  %v8961_v28 = vld [vmem:[#allocation3 + $0x1dc] sm:$0xf] }
 0x193   :  { %3234 = vmatpush.bf16.msra.mxu1 %v6232_v44  ;;  %3174 = vmatpush.bf16.msrb.mxu3 %v6580_v51  ;;  %v6487_v32 = vld [vmem:[#allocation3 + $0x358] sm:$0xf]  ;;  %v6136_v23 = vor.u32 %v8925_v12, %v6135_v27  ;;  %v10127_v50 = vadd.f32 %v2981_v16, %v2969_v45  ;;  %v6297_v26 = vld [vmem:[#allocation3 + $0x1f8] sm:$0xf0] }
 0x194   :  { %v9013_v33 = vld [vmem:[#allocation3 + $0x374] sm:$0xf0]  ;;  %v9025_v27 = vld [vmem:[#allocation3 + $0x3dc] sm:$0xf] }
 0x195   :  { %3272 = vmatpush.bf16.msrb.mxu2 %v7032_v42  ;;  %3260 = vmatpush.bf16.msra.mxu0 %v6744_v46  ;;  %v6903_v39 = vld [vmem:[#allocation3 + $0x698] sm:$0xf]  ;;  %v6488_v49 = vor.u32 %v9013_v33, %v6487_v32  ;;  %v6265_v45 = vld [vmem:[#allocation3 + $0x1b8] sm:$0xf0] }
 0x196   :  { %3175 = vmatmul.bf16.vlgmr.msrb.gmra.mxu3 %v10009_v9  ;;  %v9117_v42 = vld [vmem:[#allocation3 + $0x6b4] sm:$0xf0] }
 0x197   :  { %3226 = vmatpush.bf16.msra.mxu3 %v7604_v18  ;;  %3235 = vmatpush.bf16.msra.mxu1 %v6200_v6  ;;  %v6103_v43 = vld [vmem:[#allocation3 + $0x58] sm:$0xf]  ;;  %v6904_v51 = vor.u32 %v9117_v42, %v6903_v39  ;;  %v6556_v39 = vor.u32 %v9025_v27, %v6553_v38 }
 0x198   :  { %v8917_v44 = vld [vmem:[#allocation3 + $0x74] sm:$0xf0] }
 0x199   :  { %3273 = vmatpush.bf16.msrb.mxu2 %v7000_v58  ;;  %3261 = vmatpush.bf16.msra.mxu0 %v6712_v60  ;;  %v6615_v46 = vld [vmem:[#allocation3 + $0x458] sm:$0xf]  ;;  %v6104_v18 = vor.u32 %v8917_v44, %v6103_v43  ;;  %v8953_v43 = vld [vmem:[#allocation3 + $0x19c] sm:$0xf] }
 0x19a   :  { %v9045_v47 = vld [vmem:[#allocation3 + $0x474] sm:$0xf0]  ;;  %v9017_v44 = vld [vmem:[#allocation3 + $0x39c] sm:$0xf]  ;;  %v6268_v56 = vor.u32 %v8953_v43, %v6265_v45 }
 0x19b   :  { %3245 = vmatpush.bf16.msrb.mxu3 %v6552_v14  ;;  %3236 = vmatpush.bf16.msra.mxu1 %v6168_v21  ;;  %v6455_v52 = vld [vmem:[#allocation3 + $0x318] sm:$0xf]  ;;  %v6616_v57 = vor.u32 %v9045_v47, %v6615_v46  ;;  %v2970_v21 = vpop.f32.mrf.mxu2  ;;  %v6521_v47 = vld [vmem:[#allocation3 + $0x3b8] sm:$0xf0] }
 0x19c   :  { %v9005_v53 = vld [vmem:[#allocation3 + $0x334] sm:$0xf0]  ;;  %v9001_v21 = vld [vmem:[#allocation3 + $0x31c] sm:$0xf] }
 0x19d   :  { %3274 = vmatpush.bf16.msrb.mxu2 %v6968_v15  ;;  %3262 = vmatpush.bf16.msra.mxu0 %v6680_v22  ;;  %v6871_v31 = vld [vmem:[#allocation3 + $0x658] sm:$0xf]  ;;  %v6456_v60 = vor.u32 %v9005_v53, %v6455_v52 }
 0x19e   :  { %v9109_v58 = vld [vmem:[#allocation3 + $0x674] sm:$0xf0] }
 0x19f   :  { %3246 = vmatpush.bf16.msrb.mxu3 %v6520_v29  ;;  %3237 = vmatpush.bf16.msra.mxu1 %v6136_v23  ;;  %v6071_v62 = vld [vmem:[#allocation3 + $0x18] sm:$0xf]  ;;  %v6872_v11 = vor.u32 %v9109_v58, %v6871_v31  ;;  %v6300_v23 = vor.u32 %v8961_v28, %v6297_v26  ;;  %v8945_v31 = vld [vmem:[#allocation3 + $0x15c] sm:$0xf] }
 0x1a0   :  { %v8909_v5 = vld [vmem:[#allocation3 + $0x34] sm:$0xf0]  ;;  %v6233_v58 = vld [vmem:[#allocation3 + $0x178] sm:$0xf0] }
 0x1a1   :  { %3275 = vmatpush.bf16.msrb.mxu2 %v6936_v30  ;;  %3263 = vmatpush.bf16.msra.mxu0 %v6648_v37  ;;  %v6583_v1 = vld [vmem:[#allocation3 + $0x418] sm:$0xf]  ;;  %v6072_v15 = vor.u32 %v8909_v5, %v6071_v62  ;;  %v2943_v37 = vadd.f32 %v2942_v36, %v10123_v3  ;;  %v9009_v62 = vld [vmem:[#allocation3 + $0x35c] sm:$0xf] }
 0x1a2   :  { %v9037_v6 = vld [vmem:[#allocation3 + $0x434] sm:$0xf0]  ;;  %v6457_v28 = vld [vmem:[#allocation3 + $0x338] sm:$0xf0] }
 0x1a3   :  { %3247 = vmatpush.bf16.msrb.mxu3 %v6488_v49  ;;  %v7319_v7 = vld [vmem:[#allocation3 + $0x9d8] sm:$0xf]  ;;  %3238 = vmatpush.bf16.msra.mxu1 %v6104_v18  ;;  %v6584_v16 = vor.u32 %v9037_v6, %v6583_v1  ;;  %v10133_v52 = vadd.f32 %v10114_v55, %v2943_v37  ;;  %v6524_v18 = vor.u32 %v9017_v44, %v6521_v47  ;;  %v6489_v55 = vld [vmem:[#allocation3 + $0x378] sm:$0xf0] }
 0x1a4   :  { %v9221_v40 = vld [vmem:[#allocation3 + $0x9f4] sm:$0xf0]  ;;  %v8993_v36 = vld [vmem:[#allocation3 + $0x2dc] sm:$0xf] }
 0x1a5   :  { %v6423_v8 = vld [vmem:[#allocation3 + $0x2d8] sm:$0xf]  ;;  %3276 = vmatpush.bf16.msrb.mxu2 %v6904_v51  ;;  %3264 = vmatpush.bf16.msra.mxu0 %v6616_v57  ;;  %v7320_v22 = vor.u32 %v9221_v40, %v7319_v7  ;;  %v2994_v40 = vpop.f32.mrf.mxu1 }
 0x1a6   :  { %v8997_v63 = vld [vmem:[#allocation3 + $0x2f4] sm:$0xf0]  ;;  %7618 = vmatmul.msk.bf16.vlgmr.msra.gmra.mxu3 %vm615_vm0, %v10023_v2 }
 0x1a7   :  { %v7607_v13 = vld [vmem:[#allocation3 + $0xc18] sm:$0xf]  ;;  %3248 = vmatpush.bf16.msrb.mxu3 %v6456_v60  ;;  %v6424_v12 = vor.u32 %v8997_v63, %v6423_v8  ;;  %3239 = vmatpush.bf16.msra.mxu1 %v6072_v15  ;;  %v6236_v8 = vor.u32 %v8945_v31, %v6233_v58  ;;  %v6492_v15 = vor.u32 %v9009_v62, %v6489_v55 }
 0x1a8   :  { %v9293_v14 = vld [vmem:[#allocation3 + $0xc34] sm:$0xf0] }
 0x1a9   :  { %v6839_v17 = vld [vmem:[#allocation3 + $0x618] sm:$0xf]  ;;  %v7608_v0 = vor.u32 %v9293_v14, %v7607_v13  ;;  %3277 = vmatpush.bf16.msrb.mxu2 %v6872_v11  ;;  %3265 = vmatpush.bf16.msra.mxu0 %v6584_v16  ;;  %v2944_v13 = vpop.f32.mrf.mxu3  ;;  %v10139_v14 = vadd.f32 %v2994_v40, %v10127_v50  ;;  %v6460_v50 = vor.u32 %v9001_v21, %v6457_v28  ;;  %v6105_v40 = vld [vmem:[#allocation3 + $0x78] sm:$0xf0] }
 0x1aa   :  { %v9101_v19 = vld [vmem:[#allocation3 + $0x634] sm:$0xf0]  ;;  %3240 = vmatmul.bf16.vlgmr.msra.gmra.mxu1 %v9998_v54  ;;  %v8905_v28 = vld [vmem:[#allocation3 + $0x1c] sm:$0xf] }
 0x1ab   :  { %v7287_v29 = vld [vmem:[#allocation3 + $0x998] sm:$0xf]  ;;  %v6840_v32 = vor.u32 %v9101_v19, %v6839_v17  ;;  %3284 = vmatpush.bf16.msrb.mxu1 %v7320_v22  ;;  %3249 = vmatpush.bf16.msrb.mxu3 %v6424_v12  ;;  %v8937_v17 = vld [vmem:[#allocation3 + $0x11c] sm:$0xf] }
 0x1ac   :  { %v9213_v30 = vld [vmem:[#allocation3 + $0x9b4] sm:$0xf0]  ;;  %3266 = vmatmul.bf16.vlgmr.msra.gmra.mxu0 %v10009_v9  ;;  %v6201_v19 = vld [vmem:[#allocation3 + $0x138] sm:$0xf0] }
 0x1ad   :  { %v6391_v33 = vld [vmem:[#allocation3 + $0x298] sm:$0xf]  ;;  %v7288_v42 = vor.u32 %v9213_v30, %v7287_v29  ;;  %3317 = vmatpush.bf16.msrb.mxu0 %v7608_v0  ;;  %3278 = vmatpush.bf16.msrb.mxu2 %v6840_v32  ;;  %v6204_v0 = vor.u32 %v8937_v17, %v6201_v19  ;;  %v10141_v30 = vpop.f32.mrf.mxu0  ;;  %v2996_v45 = vpop.f32.mrf.mxu1  ;;  %v6809_v17 = vld [vmem:[#allocation3 + $0x5f8] sm:$0xf0] }
 0x1ae   :  { %v8989_v34 = vld [vmem:[#allocation3 + $0x2b4] sm:$0xf0] }
 0x1af   :  { %v6392_v46 = vor.u32 %v8989_v34, %v6391_v33  ;;  %v7255_v49 = vld [vmem:[#allocation3 + $0x958] sm:$0xf]  ;;  %3285 = vmatpush.bf16.msrb.mxu1 %v7288_v42  ;;  %v8929_v33 = vld [vmem:[#allocation3 + $0xdc] sm:$0xf] }
 0x1b0   :  { %v9205_v51 = vld [vmem:[#allocation3 + $0x974] sm:$0xf0]  ;;  %3279 = vmatmul.bf16.vlgmr.msrb.gmra.mxu2 %v10021_v61  ;;  %v6169_v34 = vld [vmem:[#allocation3 + $0xf8] sm:$0xf0] }
 0x1b1   :  { %v6359_v3 = vld [vmem:[#allocation3 + $0x258] sm:$0xf]  ;;  %3323 = vmatpush.bf16.msra.mxu2 %v6300_v23  ;;  %3336 = vmatpush.bf16.msra.mxu0 %v6556_v39  ;;  %v7256_v57 = vor.u32 %v9205_v51, %v7255_v49  ;;  %v6425_v23 = vld [vmem:[#allocation3 + $0x2f8] sm:$0xf0]  ;;  %v6172_v43 = vor.u32 %v8929_v33, %v6169_v34 }
 0x1b2   :  { %v8981_v53 = vld [vmem:[#allocation3 + $0x274] sm:$0xf0]  ;;  %3250 = vmatpush.bf16.msrb.mxu3 %v6392_v46  ;;  %v6428_v47 = vor.u32 %v8993_v36, %v6425_v23  ;;  %v8921_v51 = vld [vmem:[#allocation3 + $0x9c] sm:$0xf] }
 0x1b3   :  { %v6360_v5 = vor.u32 %v8981_v53, %v6359_v3  ;;  %v7223_v1 = vld [vmem:[#allocation3 + $0x918] sm:$0xf]  ;;  %3286 = vmatpush.bf16.msrb.mxu1 %v7256_v57  ;;  %v6137_v3 = vld [vmem:[#allocation3 + $0xb8] sm:$0xf0] }
 0x1b4   :  { %v9197_v6 = vld [vmem:[#allocation3 + $0x934] sm:$0xf0]  ;;  %v8985_v53 = vld [vmem:[#allocation3 + $0x29c] sm:$0xf]  ;;  %v6140_v62 = vor.u32 %v8921_v51, %v6137_v3 }
 0x1b5   :  { %v6327_v60 = vld [vmem:[#allocation3 + $0x218] sm:$0xf]  ;;  %3324 = vmatpush.bf16.msra.mxu2 %v6268_v56  ;;  %3337 = vmatpush.bf16.msra.mxu0 %v6524_v18  ;;  %v7224_v16 = vor.u32 %v9197_v6, %v7223_v1  ;;  %v10143_v56 = vpop.f32.mrf.mxu2  ;;  %v6393_v18 = vld [vmem:[#allocation3 + $0x2b8] sm:$0xf0]  ;;  %v3035_v1 = vpop.f32.mrf.mxu0 }
 0x1b6   :  { %v8973_v7 = vld [vmem:[#allocation3 + $0x234] sm:$0xf0]  ;;  %3251 = vmatpush.bf16.msrb.mxu3 %v6360_v5  ;;  %v6396_v6 = vor.u32 %v8985_v53, %v6393_v18  ;;  %v9217_v33 = vld [vmem:[#allocation3 + $0x9dc] sm:$0xf] }
 0x1b7   :  { %v7575_v11 = vld [vmem:[#allocation3 + $0xbd8] sm:$0xf]  ;;  %v6328_v22 = vor.u32 %v8973_v7, %v6327_v60  ;;  %3287 = vmatpush.bf16.msrb.mxu1 %v7224_v16  ;;  %v8913_v7 = vld [vmem:[#allocation3 + $0x5c] sm:$0xf] }
 0x1b8   :  { %v9285_v63 = vld [vmem:[#allocation3 + $0xbf4] sm:$0xf0]  ;;  %v9089_v16 = vld [vmem:[#allocation3 + $0x5dc] sm:$0xf]  ;;  %v6108_v19 = vor.u32 %v8913_v7, %v6105_v40 }
 0x1b9   :  { %v7191_v26 = vld [vmem:[#allocation3 + $0x8d8] sm:$0xf]  ;;  %v7576_v12 = vor.u32 %v9285_v63, %v7575_v11  ;;  %3325 = vmatpush.bf16.msra.mxu2 %v6236_v8  ;;  %3338 = vmatpush.bf16.msra.mxu0 %v6492_v15  ;;  %v8977_v8 = vld [vmem:[#allocation3 + $0x25c] sm:$0xf] }
 0x1ba   :  { %v9189_v27 = vld [vmem:[#allocation3 + $0x8f4] sm:$0xf0]  ;;  %3252 = vmatpush.bf16.msrb.mxu3 %v6328_v22  ;;  %v6361_v11 = vld [vmem:[#allocation3 + $0x278] sm:$0xf0] }
 0x1bb   :  { %v7543_v38 = vld [vmem:[#allocation3 + $0xb98] sm:$0xf]  ;;  %v7192_v32 = vor.u32 %v9189_v27, %v7191_v26  ;;  %v10148_v26 = vpop.f32.mrf.mxu1  ;;  %v6364_v27 = vor.u32 %v8977_v8, %v6361_v11  ;;  %v7321_v34 = vld [vmem:[#allocation3 + $0x9f8] sm:$0xf0] }
 0x1bc   :  { %v9277_v29 = vld [vmem:[#allocation3 + $0xbb4] sm:$0xf0]  ;;  %7619 = vmatmul.msk.bf16.vlgmr.msrb.gmra.mxu0 %vm615_vm0, %v10023_v2  ;;  %v9281_v36 = vld [vmem:[#allocation3 + $0xbdc] sm:$0xf] }
 0x1bd   :  { %v7159_v37 = vld [vmem:[#allocation3 + $0x898] sm:$0xf]  ;;  %v7544_v42 = vor.u32 %v9277_v29, %v7543_v38  ;;  %3326 = vmatpush.bf16.msra.mxu2 %v6204_v0  ;;  %3339 = vmatpush.bf16.msra.mxu0 %v6460_v50  ;;  %v6073_v0 = vld [vmem:[#allocation3 + $0x38] sm:$0xf0]  ;;  %v3022_v50 = vpop.f32.mrf.mxu2 }
 0x1be   :  { %v9181_v39 = vld [vmem:[#allocation3 + $0x8b4] sm:$0xf0]  ;;  %3297 = vmatpush.bf16.msra.mxu3 %v7576_v12  ;;  %3288 = vmatpush.bf16.msrb.mxu1 %v7192_v32  ;;  %v8969_v38 = vld [vmem:[#allocation3 + $0x21c] sm:$0xf]  ;;  %v6812_v32 = vor.u32 %v9089_v16, %v6809_v17 }
 0x1bf   :  { %v7511_v44 = vld [vmem:[#allocation3 + $0xb58] sm:$0xf]  ;;  %v7160_v49 = vor.u32 %v9181_v39, %v7159_v37  ;;  %3253 = vmatmul.bf16.vlgmr.msrb.gmra.mxu3 %v10006_v4  ;;  %v6329_v29 = vld [vmem:[#allocation3 + $0x238] sm:$0xf0] }
 0x1c0   :  { %v9269_v46 = vld [vmem:[#allocation3 + $0xb74] sm:$0xf0]  ;;  %v7577_v37 = vld [vmem:[#allocation3 + $0xbf8] sm:$0xf0] }
 0x1c1   :  { %v7127_v57 = vld [vmem:[#allocation3 + $0x858] sm:$0xf]  ;;  %v7512_v58 = vor.u32 %v9269_v46, %v7511_v44  ;;  %3327 = vmatpush.bf16.msra.mxu2 %v6172_v43  ;;  %3340 = vmatpush.bf16.msra.mxu0 %v6428_v47  ;;  %v9081_v39 = vld [vmem:[#allocation3 + $0x59c] sm:$0xf]  ;;  %v6076_v43 = vor.u32 %v8905_v28, %v6073_v0  ;;  %v3007_v46 = vpop.f32.mrf.mxu3  ;;  %v6332_v47 = vor.u32 %v8969_v38, %v6329_v29 }
 0x1c2   :  { %v9173_v31 = vld [vmem:[#allocation3 + $0x874] sm:$0xf0]  ;;  %3298 = vmatpush.bf16.msra.mxu3 %v7544_v42  ;;  %3289 = vmatpush.bf16.msrb.mxu1 %v7160_v49  ;;  %v6777_v42 = vld [vmem:[#allocation3 + $0x5b8] sm:$0xf0]  ;;  %v7324_v49 = vor.u32 %v9217_v33, %v7321_v34  ;;  %v3008_v51 = vadd.f32 %v3007_v46, %v10139_v14  ;;  %v7580_v3 = vor.u32 %v9281_v36, %v7577_v37 }
 0x1c3   :  { %v7479_v5 = vld [vmem:[#allocation3 + $0xb18] sm:$0xf]  ;;  %v7128_v60 = vor.u32 %v9173_v31, %v7127_v57  ;;  %v6780_v53 = vor.u32 %v9081_v39, %v6777_v42  ;;  %v9209_v18 = vld [vmem:[#allocation3 + $0x99c] sm:$0xf]  ;;  %v3048_v7 = vpop.f32.mrf.mxu1  ;;  %v10158_v42 = vpop.f32.mrf.mxu0 }
 0x1c4   :  { %v9261_v55 = vld [vmem:[#allocation3 + $0xb34] sm:$0xf0]  ;;  %v7289_v57 = vld [vmem:[#allocation3 + $0x9b8] sm:$0xf0]  ;;  %v3021_v1 = vadd.f32 %v10143_v56, %v3008_v51 }
 0x1c5   :  { %v7095_v63 = vld [vmem:[#allocation3 + $0x818] sm:$0xf]  ;;  %v7480_v15 = vor.u32 %v9261_v55, %v7479_v5  ;;  %3328 = vmatpush.bf16.msra.mxu2 %v6140_v62  ;;  %3341 = vmatpush.bf16.msra.mxu0 %v6396_v6  ;;  %v9273_v31 = vld [vmem:[#allocation3 + $0xb9c] sm:$0xf]  ;;  %v7292_v14 = vor.u32 %v9209_v18, %v7289_v57 }
 0x1c6   :  { %v9165_v13 = vld [vmem:[#allocation3 + $0x834] sm:$0xf0]  ;;  %3299 = vmatpush.bf16.msra.mxu3 %v7512_v58  ;;  %3290 = vmatpush.bf16.msrb.mxu1 %v7128_v60  ;;  %v7545_v62 = vld [vmem:[#allocation3 + $0xbb8] sm:$0xf0]  ;;  %v10154_v40 = vadd.f32 %v10141_v30, %v3021_v1 }
 0x1c7   :  { %v7447_v21 = vld [vmem:[#allocation3 + $0xad8] sm:$0xf]  ;;  %v7096_v12 = vor.u32 %v9165_v13, %v7095_v63  ;;  %v9073_v5 = vld [vmem:[#allocation3 + $0x55c] sm:$0xf]  ;;  %v7548_v8 = vor.u32 %v9273_v31, %v7545_v62 }
 0x1c8   :  { %v9253_v22 = vld [vmem:[#allocation3 + $0xaf4] sm:$0xf0]  ;;  %v6745_v55 = vld [vmem:[#allocation3 + $0x578] sm:$0xf0] }
 0x1c9   :  { %v7448_v23 = vor.u32 %v9253_v22, %v7447_v21  ;;  %3329 = vmatpush.bf16.msra.mxu2 %v6108_v19  ;;  %v7415_v45 = vld [vmem:[#allocation3 + $0xa98] sm:$0xf]  ;;  %3342 = vmatpush.bf16.msra.mxu0 %v6364_v27  ;;  %v6748_v11 = vor.u32 %v9073_v5, %v6745_v55  ;;  %v9201_v63 = vld [vmem:[#allocation3 + $0x95c] sm:$0xf] }
 0x1ca   :  { %3300 = vmatpush.bf16.msra.mxu3 %v7480_v15  ;;  %v9245_v44 = vld [vmem:[#allocation3 + $0xab4] sm:$0xf0]  ;;  %3291 = vmatpush.bf16.msrb.mxu1 %v7096_v12  ;;  %v7257_v13 = vld [vmem:[#allocation3 + $0x978] sm:$0xf0]  ;;  %v3009_v12 = vpop.f32.mrf.mxu3 }
 0x1cb   :  { %v7416_v58 = vor.u32 %v9245_v44, %v7415_v45  ;;  %v7383_v6 = vld [vmem:[#allocation3 + $0xa58] sm:$0xf]  ;;  %v9265_v15 = vld [vmem:[#allocation3 + $0xb5c] sm:$0xf]  ;;  %v7260_v30 = vor.u32 %v9201_v63, %v7257_v13 }
 0x1cc   :  { %v9237_v60 = vld [vmem:[#allocation3 + $0xa74] sm:$0xf0]  ;;  %v7513_v16 = vld [vmem:[#allocation3 + $0xb78] sm:$0xf0] }
 0x1cd   :  { %3292 = vmatmul.bf16.vlgmr.msrb.gmra.mxu1 %v10031_v35  ;;  %3330 = vmatpush.bf16.msra.mxu2 %v6076_v43  ;;  %v7384_v56 = vor.u32 %v9237_v60, %v7383_v6  ;;  %v9065_v17 = vld [vmem:[#allocation3 + $0x51c] sm:$0xf]  ;;  %v7351_v21 = vld [vmem:[#allocation3 + $0xa18] sm:$0xf]  ;;  %v7516_v0 = vor.u32 %v9265_v15, %v7513_v16  ;;  %v10162_v60 = vpop.f32.mrf.mxu2 }
 0x1ce   :  { %3349 = vmatpush.bf16.msra.mxu1 %v6812_v32  ;;  %3301 = vmatpush.bf16.msra.mxu3 %v7448_v23  ;;  %v6713_v19 = vld [vmem:[#allocation3 + $0x538] sm:$0xf0]  ;;  %v9229_v22 = vld [vmem:[#allocation3 + $0xa34] sm:$0xf0] }
 0x1cf   :  { %3343 = vmatpush.bf16.msra.mxu0 %v6332_v47  ;;  %v9153_v28 = vld [vmem:[#allocation3 + $0x7dc] sm:$0xf]  ;;  %v6716_v38 = vor.u32 %v9065_v17, %v6713_v19  ;;  %v7352_v32 = vor.u32 %v9229_v22, %v7351_v21 }
 0x1d0   :  { %3331 = vmatmul.bf16.vlgmr.msra.gmra.mxu2 %v9998_v54  ;;  %v7065_v27 = vld [vmem:[#allocation3 + $0x7f8] sm:$0xf0] }
 0x1d1   :  { %3375 = vmatpush.bf16.msrb.mxu2 %v7324_v49  ;;  %v9193_v29 = vld [vmem:[#allocation3 + $0x91c] sm:$0xf]  ;;  %v10160_v49 = vpop.f32.mrf.mxu1 }
 0x1d2   :  { %3350 = vmatpush.bf16.msra.mxu1 %v6780_v53  ;;  %3302 = vmatpush.bf16.msra.mxu3 %v7416_v58  ;;  %v7225_v54 = vld [vmem:[#allocation3 + $0x938] sm:$0xf0] }
 0x1d3   :  { %3388 = vmatpush.bf16.msrb.mxu0 %v7580_v3  ;;  %v9257_v50 = vld [vmem:[#allocation3 + $0xb1c] sm:$0xf]  ;;  %v7228_v23 = vor.u32 %v9193_v29, %v7225_v54 }
 0x1d4   :  { %3344 = vmatmul.bf16.vlgmr.msra.gmra.mxu0 %v10006_v4  ;;  %v7481_v33 = vld [vmem:[#allocation3 + $0xb38] sm:$0xf0]  ;;  %v7068_v4 = vor.u32 %v9153_v28, %v7065_v27 }
 0x1d5   :  { %3376 = vmatpush.bf16.msrb.mxu2 %v7292_v14  ;;  %v9057_v34 = vld [vmem:[#allocation3 + $0x4dc] sm:$0xf]  ;;  %v7484_v43 = vor.u32 %v9257_v50, %v7481_v33 }
 0x1d6   :  { %3351 = vmatpush.bf16.msra.mxu1 %v6748_v11  ;;  %3303 = vmatpush.bf16.msra.mxu3 %v7384_v56  ;;  %v6681_v36 = vld [vmem:[#allocation3 + $0x4f8] sm:$0xf0]  ;;  %v3100_v56 = vpop.f32.mrf.mxu0 }
 0x1d7   :  { %3389 = vmatpush.bf16.msrb.mxu0 %v7548_v8  ;;  %v9145_v37 = vld [vmem:[#allocation3 + $0x79c] sm:$0xf]  ;;  %v6684_v45 = vor.u32 %v9057_v34, %v6681_v36 }
 0x1d8   :  { %v7033_v39 = vld [vmem:[#allocation3 + $0x7b8] sm:$0xf0] }
 0x1d9   :  { %3377 = vmatpush.bf16.msrb.mxu2 %v7260_v30  ;;  %v9185_v44 = vld [vmem:[#allocation3 + $0x8dc] sm:$0xf]  ;;  %v7036_v18 = vor.u32 %v9145_v37, %v7033_v39  ;;  %v3074_v30 = vpop.f32.mrf.mxu1  ;;  %v3087_v39 = vpop.f32.mrf.mxu2 }
 0x1da   :  { %3352 = vmatpush.bf16.msra.mxu1 %v6716_v38  ;;  %v7193_v46 = vld [vmem:[#allocation3 + $0x8f8] sm:$0xf0]  ;;  %3304 = vmatpush.bf16.msra.mxu3 %v7352_v32 }
 0x1db   :  { %3390 = vmatpush.bf16.msrb.mxu0 %v7516_v0  ;;  %v9249_v47 = vld [vmem:[#allocation3 + $0xadc] sm:$0xf]  ;;  %v7196_v57 = vor.u32 %v9185_v44, %v7193_v46  ;;  %v9364_v44 = vld [vmem:[#allocation9 + $0x1ec] sm:$0xf0]  ;;  %v7991_v46 = vld [vmem:[#allocation9 + $0x2e0] sm:$0xf] }
 0x1dc   :  { %v7449_v51 = vld [vmem:[#allocation3 + $0xaf8] sm:$0xf0] }
 0x1dd   :  { %v9049_v3 = vld [vmem:[#allocation3 + $0x49c] sm:$0xf]  ;;  %3378 = vmatpush.bf16.msrb.mxu2 %v7228_v23  ;;  %v7452_v62 = vor.u32 %v9249_v47, %v7449_v51  ;;  %3305 = vmatmul.bf16.vlgmr.msra.gmra.mxu3 %v10036_v48  ;;  %v9396_v51 = vld [vmem:[#allocation9 + $0x2ec] sm:$0xf0] }
 0x1de   :  { %v6649_v53 = vld [vmem:[#allocation3 + $0x4b8] sm:$0xf0]  ;;  %3362 = vmatpush.bf16.msrb.mxu3 %v7068_v4  ;;  %3353 = vmatpush.bf16.msra.mxu1 %v6684_v45  ;;  %v7863_v45 = vld [vmem:[#allocation9 + $0x1e0] sm:$0xf] }
 0x1df   :  { %v9137_v31 = vld [vmem:[#allocation3 + $0x75c] sm:$0xf]  ;;  %3391 = vmatpush.bf16.msrb.mxu0 %v7484_v43  ;;  %v6652_v5 = vor.u32 %v9049_v3, %v6649_v53  ;;  %v8119_v3 = vld [vmem:[#allocation9 + $0x3e0] sm:$0xf]  ;;  %v9428_v53 = vld [vmem:[#allocation9 + $0x3ec] sm:$0xf0] }
 0x1e0   :  { %v7001_v58 = vld [vmem:[#allocation3 + $0x778] sm:$0xf0] }
 0x1e1   :  { %v9177_v55 = vld [vmem:[#allocation3 + $0x89c] sm:$0xf]  ;;  %v7004_v11 = vor.u32 %v9137_v31, %v7001_v58  ;;  %3379 = vmatpush.bf16.msrb.mxu2 %v7196_v57  ;;  %v3059_v58 = vpop.f32.mrf.mxu3 }
 0x1e2   :  { %v7161_v1 = vld [vmem:[#allocation3 + $0x8b8] sm:$0xf0]  ;;  %3363 = vmatpush.bf16.msrb.mxu3 %v7036_v18  ;;  %3354 = vmatpush.bf16.msra.mxu1 %v6652_v5  ;;  %v7864_v5 = vor.u32 %v9364_v44, %v7863_v45  ;;  %v8071_v45 = vld [vmem:[#allocation9 + $0x380] sm:$0xf] }
 0x1e3   :  { %v9241_v6 = vld [vmem:[#allocation3 + $0xa9c] sm:$0xf]  ;;  %v7164_v63 = vor.u32 %v9177_v55, %v7161_v1  ;;  %3392 = vmatpush.bf16.msrb.mxu0 %v7452_v62  ;;  %v3060_v55 = vadd.f32 %v3059_v58, %v10053_v59  ;;  %v7992_v1 = vor.u32 %v9396_v51, %v7991_v46  ;;  %v10178_v46 = vpop.f32.mrf.mxu0  ;;  %v7719_v51 = vld [vmem:[#allocation9 + $0xc0] sm:$0xf]  ;;  %v9348_v58 = vld [vmem:[#allocation9 + $0x16c] sm:$0xf0] }
 0x1e4   :  { %v7417_v7 = vld [vmem:[#allocation3 + $0xab8] sm:$0xf0] }
 0x1e5   :  { %v9041_v14 = vld [vmem:[#allocation3 + $0x45c] sm:$0xf]  ;;  %v7420_v16 = vor.u32 %v9241_v6, %v7417_v7  ;;  %3380 = vmatpush.bf16.msrb.mxu2 %v7164_v63  ;;  %v8120_v6 = vor.u32 %v9428_v53, %v8119_v3  ;;  %v7847_v7 = vld [vmem:[#allocation9 + $0x1c0] sm:$0xf]  ;;  %v9392_v63 = vld [vmem:[#allocation9 + $0x2cc] sm:$0xf0]  ;;  %v3073_v56 = vadd.f32 %v10160_v49, %v3060_v55 }
 0x1e6   :  { %v6617_v8 = vld [vmem:[#allocation3 + $0x478] sm:$0xf0]  ;;  %3364 = vmatpush.bf16.msrb.mxu3 %v7004_v11  ;;  %v9328_v3 = vld [vmem:[#allocation9 + $0xcc] sm:$0xf0] }
 0x1e7   :  { %v9129_v13 = vld [vmem:[#allocation3 + $0x71c] sm:$0xf]  ;;  %v6620_v17 = vor.u32 %v9041_v14, %v6617_v8  ;;  %3393 = vmatpush.bf16.msrb.mxu0 %v7420_v16  ;;  %v9360_v14 = vld [vmem:[#allocation9 + $0x1cc] sm:$0xf0]  ;;  %v7975_v8 = vld [vmem:[#allocation9 + $0x2c0] sm:$0xf] }
 0x1e8   :  { %v6969_v15 = vld [vmem:[#allocation3 + $0x738] sm:$0xf0]  ;;  %v7848_v59 = vor.u32 %v9360_v14, %v7847_v7  ;;  %v9380_v55 = vld [vmem:[#allocation9 + $0x26c] sm:$0xf0] }
 0x1e9   :  { %v9169_v19 = vld [vmem:[#allocation3 + $0x85c] sm:$0xf]  ;;  %v6972_v0 = vor.u32 %v9129_v13, %v6969_v15  ;;  %3355 = vmatpush.bf16.msra.mxu1 %v6620_v17  ;;  %v8103_v13 = vld [vmem:[#allocation9 + $0x3c0] sm:$0xf]  ;;  %v9424_v15 = vld [vmem:[#allocation9 + $0x3cc] sm:$0xf0] }
 0x1ea   :  { %v7129_v21 = vld [vmem:[#allocation3 + $0x878] sm:$0xf0]  ;;  %v8104_v30 = vor.u32 %v9424_v15, %v8103_v13  ;;  %v7703_v15 = vld [vmem:[#allocation9 + $0xa0] sm:$0xf] }
 0x1eb   :  { %v9233_v22 = vld [vmem:[#allocation3 + $0xa5c] sm:$0xf]  ;;  %v7132_v54 = vor.u32 %v9169_v19, %v7129_v21  ;;  %3365 = vmatpush.bf16.msrb.mxu3 %v6972_v0  ;;  %v3086_v19 = vadd.f32 %v10162_v60, %v3073_v56  ;;  %v10169_v21 = vpop.f32.mrf.mxu2  ;;  %v8087_v0 = vld [vmem:[#allocation9 + $0x3a0] sm:$0xf]  ;;  %v9324_v56 = vld [vmem:[#allocation9 + $0xac] sm:$0xf0] }
 0x1ec   :  { %v7385_v28 = vld [vmem:[#allocation3 + $0xa78] sm:$0xf0] }
 0x1ed   :  { %v9033_v27 = vld [vmem:[#allocation3 + $0x41c] sm:$0xf]  ;;  %v7388_v34 = vor.u32 %v9233_v22, %v7385_v28  ;;  %3381 = vmatpush.bf16.msrb.mxu2 %v7132_v54  ;;  %v7976_v22 = vor.u32 %v9392_v63, %v7975_v8  ;;  %v7831_v28 = vld [vmem:[#allocation9 + $0x1a0] sm:$0xf]  ;;  %v10174_v60 = vadd.f32 %v10158_v42, %v3086_v19  ;;  %v10176_v42 = vld [vmem:[#allocation8] sm:$0xff]  ;;  %v7720_v8 = vor.u32 %v9328_v3, %v7719_v51 }
 0x1ee   :  { %v6585_v12 = vld [vmem:[#allocation3 + $0x438] sm:$0xf0]  ;;  %v3417_v7 = vperm.slane %v10176_v42, 1  ;;  %v3418_v14 = vperm.slane %v10176_v42, 2  ;;  %v3419_v63 = vperm.slane %v10176_v42, 3 }
 0x1ef   :  { %v9289_v38 = vld [vmem:[#allocation3 + $0xc1c] sm:$0xf]  ;;  %v6588_v36 = vor.u32 %v9033_v27, %v6585_v12  ;;  %3394 = vmatpush.bf16.msrb.mxu0 %v7388_v34  ;;  %v9356_v27 = vld [vmem:[#allocation9 + $0x1ac] sm:$0xf0]  ;;  %v7959_v12 = vld [vmem:[#allocation9 + $0x2a0] sm:$0xf]  ;;  %v3061_v34 = vpop.f32.mrf.mxu3 }
 0x1f0   :  { %v7609_v29 = vld [vmem:[#allocation3 + $0xc38] sm:$0xf0]  ;;  %v9344_v19 = vld [vmem:[#allocation9 + $0x14c] sm:$0xf0]  ;;  %v7879_v3 = vld [vmem:[#allocation9 + $0x200] sm:$0xf] }
 0x1f1   :  { %v9121_v50 = vld [vmem:[#allocation3 + $0x6dc] sm:$0xf]  ;;  %v7612_v43 = vor.u32 %v9289_v38, %v7609_v29  ;;  %3356 = vmatpush.bf16.msra.mxu1 %v6588_v36  ;;  %v9420_v38 = vld [vmem:[#allocation9 + $0x3ac] sm:$0xf0] }
 0x1f2   :  { %v6937_v32 = vld [vmem:[#allocation3 + $0x6f8] sm:$0xf0]  ;;  %v9372_v34 = vld [vmem:[#allocation9 + $0x22c] sm:$0xf0] }
 0x1f3   :  { %v9161_v33 = vld [vmem:[#allocation3 + $0x81c] sm:$0xf]  ;;  %v6940_v47 = vor.u32 %v9121_v50, %v6937_v32  ;;  %v7832_v50 = vor.u32 %v9356_v27, %v7831_v28  ;;  %v7735_v32 = vld [vmem:[#allocation9 + $0xe0] sm:$0xf]  ;;  %v3139_v53 = vpop.f32.mrf.mxu2  ;;  %v9408_v27 = vld [vmem:[#allocation9 + $0x34c] sm:$0xf0] }
 0x1f4   :  { %v7097_v4 = vld [vmem:[#allocation3 + $0x838] sm:$0xf0]  ;;  %3357 = vmatmul.bf16.vlgmr.msra.gmra.mxu1 %v10009_v9  ;;  %v9388_v9 = vld [vmem:[#allocation9 + $0x2ac] sm:$0xf0]  ;;  %v8039_v28 = vld [vmem:[#allocation9 + $0x340] sm:$0xf] }
 0x1f5   :  { %v9225_v23 = vld [vmem:[#allocation3 + $0xa1c] sm:$0xf]  ;;  %v7100_v18 = vor.u32 %v9161_v33, %v7097_v4  ;;  %3408 = vmatpush.bf16.msrb.mxu1 %v7612_v43  ;;  %3366 = vmatpush.bf16.msrb.mxu3 %v6940_v47  ;;  %v9332_v33 = vld [vmem:[#allocation9 + $0xec] sm:$0xf0]  ;;  %v7960_v36 = vor.u32 %v9388_v9, %v7959_v12  ;;  %v8088_v4 = vor.u32 %v9420_v38, %v8087_v0  ;;  %v7687_v0 = vld [vmem:[#allocation9 + $0x80] sm:$0xf] }
 0x1f6   :  { %v7353_v37 = vld [vmem:[#allocation3 + $0xa38] sm:$0xf0]  ;;  %v9384_v43 = vld [vmem:[#allocation9 + $0x28c] sm:$0xf0]  ;;  %v7736_v44 = vor.u32 %v9332_v33, %v7735_v32  ;;  %v7704_v12 = vor.u32 %v9324_v56, %v7703_v15 }
 0x1f7   :  { %v9113_v57 = vld [vmem:[#allocation3 + $0x69c] sm:$0xf]  ;;  %v7356_v62 = vor.u32 %v9225_v23, %v7353_v37  ;;  %3382 = vmatpush.bf16.msrb.mxu2 %v7100_v18  ;;  %v9352_v23 = vld [vmem:[#allocation9 + $0x18c] sm:$0xf0]  ;;  %v7943_v37 = vld [vmem:[#allocation9 + $0x280] sm:$0xf] }
 0x1f8   :  { %v6905_v31 = vld [vmem:[#allocation3 + $0x6b8] sm:$0xf0]  ;;  %v7944_v18 = vor.u32 %v9384_v43, %v7943_v37  ;;  %v9320_v38 = vld [vmem:[#allocation9 + $0x8c] sm:$0xf0]  ;;  %v7671_v43 = vld [vmem:[#allocation9 + $0x60] sm:$0xf] }
 0x1f9   :  { %v6908_v11 = vor.u32 %v9113_v57, %v6905_v31  ;;  %v9105_v16 = vld [vmem:[#allocation3 + $0x65c] sm:$0xf]  ;;  %3395 = vmatpush.bf16.msrb.mxu0 %v7356_v62  ;;  %5023 = vmatpush.bf16.msra.mxu1 %v7864_v5  ;;  %v7799_v31 = vld [vmem:[#allocation9 + $0x160] sm:$0xf]  ;;  %v10180_v5 = vpop.f32.mrf.mxu1  ;;  %v9340_v32 = vld [vmem:[#allocation9 + $0x12c] sm:$0xf0] }
 0x1fa   :  { %v6873_v17 = vld [vmem:[#allocation3 + $0x678] sm:$0xf0]  ;;  %3383 = vmatmul.bf16.vlgmr.msrb.gmra.mxu2 %v10031_v35  ;;  %v7815_v35 = vld [vmem:[#allocation9 + $0x180] sm:$0xf]  ;;  %v7800_v13 = vor.u32 %v9348_v58, %v7799_v31  ;;  %v9336_v51 = vld [vmem:[#allocation9 + $0x10c] sm:$0xf0] }
 0x1fb   :  { %5036 = vmatpush.bf16.msra.mxu2 %v7992_v1  ;;  %3367 = vmatpush.bf16.msrb.mxu3 %v6908_v11  ;;  %v6876_v49 = vor.u32 %v9105_v16, %v6873_v17  ;;  %v9097_v29 = vld [vmem:[#allocation3 + $0x61c] sm:$0xf]  ;;  %v7816_v47 = vor.u32 %v9352_v23, %v7815_v35  ;;  %v7927_v62 = vld [vmem:[#allocation9 + $0x260] sm:$0xf]  ;;  %v3047_v11 = vadd.f32 %v10148_v26, %v10154_v40  ;;  %v9368_v53 = vld [vmem:[#allocation9 + $0x20c] sm:$0xf0] }
 0x1fc   :  { %v6841_v54 = vld [vmem:[#allocation3 + $0x638] sm:$0xf0]  ;;  %3396 = vmatmul.bf16.vlgmr.msrb.gmra.mxu0 %v10036_v48  ;;  %v9416_v48 = vld [vmem:[#allocation9 + $0x38c] sm:$0xf0]  ;;  %v8055_v1 = vld [vmem:[#allocation9 + $0x360] sm:$0xf]  ;;  %v7928_v16 = vor.u32 %v9380_v55, %v7927_v62  ;;  %v3433_v26 = vadd.f32 %v3417_v7, %v10103_v25  ;;  %v3434_v40 = vadd.f32 %v3418_v14, %v10133_v52  ;;  %v7688_v23 = vor.u32 %v9320_v38, %v7687_v0 }
 0x1fd   :  { %5049 = vmatpush.bf16.msra.mxu0 %v8120_v6  ;;  %5024 = vmatpush.bf16.msra.mxu1 %v7848_v59  ;;  %v6844_v39 = vor.u32 %v9097_v29, %v6841_v54  ;;  %v8072_v57 = vor.u32 %v9416_v48, %v8071_v45  ;;  %v9412_v6 = vld [vmem:[#allocation9 + $0x36c] sm:$0xf0]  ;;  %v7783_v59 = vld [vmem:[#allocation9 + $0x140] sm:$0xf]  ;;  %v3152_v29 = vpop.f32.mrf.mxu0  ;;  %v3416_v55 = vperm.slane %v10176_v42, 0 }
 0x1fe   :  { %v8056_v17 = vor.u32 %v9412_v6, %v8055_v1  ;;  %v7784_v9 = vor.u32 %v9344_v19, %v7783_v59  ;;  %v7767_v25 = vld [vmem:[#allocation9 + $0x120] sm:$0xf]  ;;  %v3442_v35 = vmul.f32 0.2, %v3434_v40  ;;  %v9316_v45 = vld [vmem:[#allocation9 + $0x6c] sm:$0xf0] }
 0x1ff   :  { %5037 = vmatpush.bf16.msra.mxu2 %v7976_v22  ;;  %3368 = vmatpush.bf16.msrb.mxu3 %v6876_v49  ;;  %v7911_v22 = vld [vmem:[#allocation9 + $0x240] sm:$0xf]  ;;  %v3435_v49 = vadd.f32 %v3419_v63, %v3047_v11  ;;  %v7672_v31 = vor.u32 %v9316_v45, %v7671_v43  ;;  %v9492_v62 = vld [vmem:[#allocation9 + $0x5ec] sm:$0xf0]  ;;  %v7880_v11 = vor.u32 %v9368_v53, %v7879_v3 }
 0x200   :  { %v7895_v52 = vld [vmem:[#allocation9 + $0x220] sm:$0xf]  ;;  %v9312_v7 = vld [vmem:[#allocation9 + $0x4c] sm:$0xf0]  ;;  %v3450_v15 = vmax.f32 %v3434_v40, %v3442_v35 }
 0x201   :  { %5050 = vmatpush.bf16.msra.mxu0 %v8104_v30  ;;  %5025 = vmatpush.bf16.msra.mxu1 %v7832_v50  ;;  %v9376_v30 = vld [vmem:[#allocation9 + $0x24c] sm:$0xf0]  ;;  %v8040_v50 = vor.u32 %v9408_v27, %v8039_v28  ;;  %v3126_v33 = vpop.f32.mrf.mxu1  ;;  %v3443_v37 = vmul.f32 0.2, %v3435_v49  ;;  %v7896_v48 = vor.u32 %v9372_v34, %v7895_v52  ;;  %v8375_v58 = vld [vmem:[#allocation9 + $0x5e0] sm:$0xf] }
 0x202   :  { %v7912_v54 = vor.u32 %v9376_v30, %v7911_v22  ;;  %v7655_v6 = vld [vmem:[#allocation9 + $0x40] sm:$0xf]  ;;  %v9488_v19 = vld [vmem:[#allocation9 + $0x5cc] sm:$0xf0]  ;;  %v3432_v22 = vadd.f32 %v3416_v55, %v10081_v24 }
 0x203   :  { %5038 = vmatpush.bf16.msra.mxu2 %v7960_v36  ;;  %3369 = vmatpush.bf16.msrb.mxu3 %v6844_v39  ;;  %v9404_v36 = vld [vmem:[#allocation9 + $0x32c] sm:$0xf0]  ;;  %v7768_v39 = vor.u32 %v9340_v32, %v7767_v25  ;;  %v3451_v56 = vmax.f32 %v3435_v49, %v3443_v37  ;;  %v8359_v59 = vld [vmem:[#allocation9 + $0x5c0] sm:$0xf] }
 0x204   :  { %7620 = vmatmul.msk.bf16.vlgmr.msrb.gmra.mxu1 %vm615_vm0, %v10023_v2  ;;  %v8023_v2 = vld [vmem:[#allocation9 + $0x320] sm:$0xf]  ;;  %v9308_v28 = vld [vmem:[#allocation9 + $0x2c] sm:$0xf0]  ;;  %v8360_v40 = vor.u32 %v9488_v19, %v8359_v59  ;;  %v3440_v24 = vmul.f32 0.2, %v3432_v22 }
 0x205   :  { %5051 = vmatpush.bf16.msra.mxu0 %v8088_v4  ;;  %5026 = vmatpush.bf16.msra.mxu1 %v7816_v47  ;;  %v3441_v4 = vmul.f32 0.2, %v3433_v26  ;;  %v7751_v47 = vld [vmem:[#allocation9 + $0x100] sm:$0xf]  ;;  %v9484_v0 = vld [vmem:[#allocation9 + $0x5ac] sm:$0xf0] }
 0x206   :  { %3370 = vmatmul.bf16.vlgmr.msrb.gmra.mxu3 %v10021_v61  ;;  %v10192_v61 = vpop.f32.mrf.mxu2  ;;  %v7752_v1 = vor.u32 %v9336_v51, %v7751_v47  ;;  %v7639_v30 = vld [vmem:[#allocation9 + $0x20] sm:$0xf]  ;;  %v9304_v29 = vld [vmem:[#allocation9 + $0xc] sm:$0xf0] }
 0x207   :  { %5010 = vmatpush.bf16.msra.mxu3 %v7736_v44  ;;  %5039 = vmatpush.bf16.msra.mxu2 %v7944_v18  ;;  %v8024_v44 = vor.u32 %v9404_v36, %v8023_v2  ;;  %v8007_v18 = vld [vmem:[#allocation9 + $0x300] sm:$0xf]  ;;  %v3449_v14 = vmax.f32 %v3433_v26, %v3441_v4  ;;  %v10200_v26 = vpack.c.bf16 %v3450_v15, %v3450_v15  ;;  %v9460_v25 = vld [vmem:[#allocation9 + $0x4ec] sm:$0xf0] }
 0x208   :  { %v7640_v49 = vor.u32 %v9308_v28, %v7639_v30  ;;  %v7623_v38 = vld [vmem:[#allocation9] sm:$0xf]  ;;  %v9480_v34 = vld [vmem:[#allocation9 + $0x58c] sm:$0xf0]  ;;  %v3448_v2 = vmax.f32 %v3432_v22, %v3440_v24  ;;  %v3420_v24 = vperm.slane %v10176_v42, 4 }
 0x209   :  { %5052 = vmatpush.bf16.msra.mxu0 %v8072_v57  ;;  %5027 = vmatpush.bf16.msra.mxu1 %v7800_v13  ;;  %v9400_v57 = vld [vmem:[#allocation9 + $0x30c] sm:$0xf0]  ;;  %v10198_v27 = vpack.c.bf16 %v3449_v14, %v3449_v14  ;;  %v7624_v52 = vor.u32 %v9304_v29, %v7623_v38  ;;  %v8327_v33 = vld [vmem:[#allocation9 + $0x580] sm:$0xf]  ;;  %v10209_v45 = vpop.f32.mrf.mxu0 }
 0x20a   :  { %v8008_v63 = vor.u32 %v9400_v57, %v8007_v18  ;;  %v8231_v4 = vld [vmem:[#allocation9 + $0x4c0] sm:$0xf]  ;;  %v9456_v35 = vld [vmem:[#allocation9 + $0x4cc] sm:$0xf0]  ;;  %v8328_v43 = vor.u32 %v9480_v34, %v8327_v33  ;;  %v10211_v51 = vpack.c.bf16 %v3448_v2, %v3448_v2 }
 0x20b   :  { %5011 = vmatpush.bf16.msra.mxu3 %v7720_v8  ;;  %5040 = vmatpush.bf16.msra.mxu2 %v7928_v16  ;;  %v10195_v8 = vpop.f32.mrf.mxu3  ;;  %v8376_v16 = vor.u32 %v9492_v62, %v8375_v58  ;;  %v8503_v37 = vld [vmem:[#allocation9 + $0x6e0] sm:$0xf]  ;;  %v9476_v47 = vld [vmem:[#allocation9 + $0x56c] sm:$0xf0]  ;;  %v8232_v3 = vor.u32 %v9456_v35, %v8231_v4 }
 0x20c   :  { %v8215_v53 = vld [vmem:[#allocation9 + $0x4a0] sm:$0xf]  ;;  %v9452_v18 = vld [vmem:[#allocation9 + $0x4ac] sm:$0xf0] }
 0x20d   :  { %5053 = vmatpush.bf16.msra.mxu0 %v8056_v17  ;;  %5028 = vmatpush.bf16.msra.mxu1 %v7784_v9  ;;  %v7656_v17 = vor.u32 %v9312_v7, %v7655_v6  ;;  %v8343_v9 = vld [vmem:[#allocation9 + $0x5a0] sm:$0xf]  ;;  %v3112_v6 = vadd.f32 %v10195_v8, %v10174_v60  ;;  %v8216_v7 = vor.u32 %v9452_v18, %v8215_v53  ;;  %v9516_v15 = vld [vmem:[#allocation9 + $0x6ac] sm:$0xf0] }
 0x20e   :  { %v3165_v13 = vpop.f32.mrf.mxu2  ;;  %v8344_v32 = vor.u32 %v9484_v0, %v8343_v9  ;;  %v8487_v57 = vld [vmem:[#allocation9 + $0x6c0] sm:$0xf]  ;;  %v9468_v22 = vld [vmem:[#allocation9 + $0x52c] sm:$0xf0] }
 0x20f   :  { %5012 = vmatpush.bf16.msra.mxu3 %v7704_v12  ;;  %5041 = vmatpush.bf16.msra.mxu2 %v7912_v54  ;;  %v10202_v12 = vpack.c.bf16 %v3451_v56, %v3451_v56  ;;  %v8295_v55 = vld [vmem:[#allocation9 + $0x540] sm:$0xf]  ;;  %v3125_v30 = vadd.f32 %v10180_v5, %v3112_v6  ;;  %v9444_v28 = vld [vmem:[#allocation9 + $0x46c] sm:$0xf0]  ;;  %v7865_v5 = vld [vmem:[#allocation9 + $0x1f0] sm:$0xf0] }
 0x210   :  { %v8199_v14 = vld [vmem:[#allocation9 + $0x480] sm:$0xf]  ;;  %v9464_v29 = vld [vmem:[#allocation9 + $0x50c] sm:$0xf0] }
 0x211   :  { %5054 = vmatpush.bf16.msra.mxu0 %v8040_v50  ;;  %5029 = vmatpush.bf16.msra.mxu1 %v7768_v39  ;;  %v8247_v50 = vld [vmem:[#allocation9 + $0x4e0] sm:$0xf]  ;;  %v9524_v39 = vld [vmem:[#allocation9 + $0x6ec] sm:$0xf0] }
 0x212   :  { %v8248_v36 = vor.u32 %v9460_v25, %v8247_v50  ;;  %v8471_v13 = vld [vmem:[#allocation9 + $0x6a0] sm:$0xf]  ;;  %v9362_v25 = vld [vmem:[#allocation9 + $0x1e4] sm:$0xf]  ;;  %v9440_v33 = vld [vmem:[#allocation9 + $0x44c] sm:$0xf0] }
 0x213   :  { %5013 = vmatpush.bf16.msra.mxu3 %v7688_v23  ;;  %5042 = vmatpush.bf16.msra.mxu2 %v7896_v48  ;;  %v3113_v54 = vpop.f32.mrf.mxu3  ;;  %v10207_v23 = vpop.f32.mrf.mxu1  ;;  %v8504_v48 = vor.u32 %v9524_v39, %v8503_v37  ;;  %v8472_v59 = vor.u32 %v9516_v15, %v8471_v13  ;;  %v8279_v19 = vld [vmem:[#allocation9 + $0x520] sm:$0xf]  ;;  %v9508_v2 = vld [vmem:[#allocation9 + $0x66c] sm:$0xf0]  ;;  %v9330_v13 = vld [vmem:[#allocation9 + $0xe4] sm:$0xf] }
 0x214   :  { %v8183_v8 = vld [vmem:[#allocation9 + $0x460] sm:$0xf]  ;;  %v8280_v9 = vor.u32 %v9468_v22, %v8279_v19  ;;  %v3138_v54 = vadd.f32 %v10169_v21, %v3125_v30  ;;  %v7868_v21 = vor.u32 %v9362_v25, %v7865_v5  ;;  %v9504_v18 = vld [vmem:[#allocation9 + $0x64c] sm:$0xf0]  ;;  %v7737_v15 = vld [vmem:[#allocation9 + $0xf0] sm:$0xf0] }
 0x215   :  { %5055 = vmatpush.bf16.msra.mxu0 %v8024_v44  ;;  %5030 = vmatpush.bf16.msra.mxu1 %v7752_v1  ;;  %v8311_v44 = vld [vmem:[#allocation9 + $0x560] sm:$0xf]  ;;  %v9472_v1 = vld [vmem:[#allocation9 + $0x54c] sm:$0xf0]  ;;  %v8184_v50 = vor.u32 %v9444_v28, %v8183_v8  ;;  %v9350_v19 = vld [vmem:[#allocation9 + $0x184] sm:$0xf]  ;;  %v7740_v8 = vor.u32 %v9330_v13, %v7737_v15 }
 0x216   :  { %v8312_v58 = vor.u32 %v9476_v47, %v8311_v44  ;;  %v8296_v56 = vor.u32 %v9472_v1, %v8295_v55  ;;  %v8263_v38 = vld [vmem:[#allocation9 + $0x500] sm:$0xf]  ;;  %v9358_v44 = vld [vmem:[#allocation9 + $0x1c4] sm:$0xf]  ;;  %v7849_v47 = vld [vmem:[#allocation9 + $0x1d0] sm:$0xf0] }
 0x217   :  { %5014 = vmatpush.bf16.msra.mxu3 %v7672_v31  ;;  %5043 = vmatpush.bf16.msra.mxu2 %v7880_v11  ;;  %v9520_v31 = vld [vmem:[#allocation9 + $0x6cc] sm:$0xf0]  ;;  %v8439_v34 = vld [vmem:[#allocation9 + $0x660] sm:$0xf]  ;;  %v8264_v4 = vor.u32 %v9464_v29, %v8263_v38  ;;  %v7833_v55 = vld [vmem:[#allocation9 + $0x1b0] sm:$0xf0] }
 0x218   :  { %5031 = vmatmul.bf16.vlgmr.msra.gmra.mxu1 %v10198_v27  ;;  %v8488_v62 = vor.u32 %v9520_v31, %v8487_v57  ;;  %v9448_v11 = vld [vmem:[#allocation9 + $0x48c] sm:$0xf0]  ;;  %v8440_v37 = vor.u32 %v9508_v2, %v8439_v34  ;;  %v7852_v31 = vor.u32 %v9358_v44, %v7849_v47  ;;  %v8135_v1 = vld [vmem:[#allocation9 + $0x400] sm:$0xf]  ;;  %v7817_v22 = vld [vmem:[#allocation9 + $0x190] sm:$0xf0] }
 0x219   :  { %5056 = vmatpush.bf16.msra.mxu0 %v8008_v63  ;;  %5075 = vmatpush.bf16.msrb.mxu1 %v8376_v16  ;;  %v10216_v16 = vpop.f32.mrf.mxu2  ;;  %v8200_v60 = vor.u32 %v9448_v11, %v8199_v14  ;;  %v8407_v14 = vld [vmem:[#allocation9 + $0x620] sm:$0xf]  ;;  %v9500_v11 = vld [vmem:[#allocation9 + $0x62c] sm:$0xf0]  ;;  %v9394_v29 = vld [vmem:[#allocation9 + $0x2e4] sm:$0xf] }
 0x21a   :  { %5044 = vmatmul.bf16.vlgmr.msra.gmra.mxu2 %v10200_v26  ;;  %v8391_v28 = vld [vmem:[#allocation9 + $0x600] sm:$0xf]  ;;  %v7801_v25 = vld [vmem:[#allocation9 + $0x170] sm:$0xf0]  ;;  %v9322_v34 = vld [vmem:[#allocation9 + $0xa4] sm:$0xf] }
 0x21b   :  { %5015 = vmatpush.bf16.msra.mxu3 %v7656_v17  ;;  %5088 = vmatpush.bf16.msrb.mxu2 %v8504_v48  ;;  %v3191_v63 = vpop.f32.mrf.mxu1  ;;  %v3204_v17 = vpop.f32.mrf.mxu0  ;;  %v7705_v2 = vld [vmem:[#allocation9 + $0xb0] sm:$0xf0]  ;;  %v9342_v44 = vld [vmem:[#allocation9 + $0x144] sm:$0xf] }
 0x21c   :  { %5057 = vmatmul.bf16.vlgmr.msra.gmra.mxu0 %v10202_v12 }
 0x21d   :  { %5076 = vmatpush.bf16.msrb.mxu1 %v8360_v40  ;;  %v8455_v40 = vld [vmem:[#allocation9 + $0x680] sm:$0xf] }
 0x21f   :  { %5016 = vmatpush.bf16.msra.mxu3 %v7640_v49  ;;  %5089 = vmatpush.bf16.msrb.mxu2 %v8488_v62  ;;  %v9512_v49 = vld [vmem:[#allocation9 + $0x68c] sm:$0xf0] }
 0x220   :  { %v8456_v0 = vor.u32 %v9512_v49, %v8455_v40  ;;  %v9326_v49 = vld [vmem:[#allocation9 + $0xc4] sm:$0xf] }
 0x221   :  { %5077 = vmatpush.bf16.msrb.mxu1 %v8344_v32  ;;  %v8167_v32 = vld [vmem:[#allocation9 + $0x440] sm:$0xf]  ;;  %v3217_v35 = vpop.f32.mrf.mxu2 }
 0x222   :  { %v8168_v48 = vor.u32 %v9440_v33, %v8167_v32  ;;  %v9556_v35 = vld [vmem:[#allocation9 + $0x7ec] sm:$0xf0] }
 0x223   :  { %5017 = vmatpush.bf16.msra.mxu3 %v7624_v52  ;;  %5090 = vmatpush.bf16.msrb.mxu2 %v8472_v59  ;;  %v3151_v52 = vadd.f32 %v10178_v46, %v10062_v41  ;;  %v9436_v41 = vld [vmem:[#allocation9 + $0x42c] sm:$0xf0]  ;;  %v8423_v46 = vld [vmem:[#allocation9 + $0x640] sm:$0xf] }
 0x224   :  { %v8424_v57 = vor.u32 %v9504_v18, %v8423_v46  ;;  %v7689_v46 = vld [vmem:[#allocation9 + $0x90] sm:$0xf0] }
 0x225   :  { %5078 = vmatpush.bf16.msrb.mxu1 %v8328_v43  ;;  %v3164_v39 = vadd.f32 %v10192_v61, %v3151_v52  ;;  %v3436_v43 = vadd.f32 %v3420_v24, %v3138_v54  ;;  %v7820_v24 = vor.u32 %v9350_v19, %v7817_v22  ;;  %v7993_v54 = vld [vmem:[#allocation9 + $0x2f0] sm:$0xf0]  ;;  %v3421_v52 = vperm.slane %v10176_v42, 5  ;;  %v8599_v19 = vld [vmem:[#allocation9 + $0x7a0] sm:$0xf] }
 0x226   :  { %5018 = vmatmul.bf16.vlgmr.msra.gmra.mxu3 %v10211_v51  ;;  %v7996_v5 = vor.u32 %v9394_v29, %v7993_v54  ;;  %v9548_v22 = vld [vmem:[#allocation9 + $0x7ac] sm:$0xf0]  ;;  %v8377_v54 = vld [vmem:[#allocation9 + $0x5f0] sm:$0xf0] }
 0x227   :  { %5062 = vmatpush.bf16.msrb.mxu3 %v8248_v36  ;;  %5091 = vmatpush.bf16.msrb.mxu2 %v8456_v0  ;;  %v3176_v36 = vpop.f32.mrf.mxu3  ;;  %v3444_v62 = vmul.f32 0.2, %v3436_v43  ;;  %v10226_v40 = vpop.f32.mrf.mxu1 }
 0x228   :  { %v3177_v53 = vadd.f32 %v3176_v36, %v3164_v39 }
 0x229   :  { %5079 = vmatpush.bf16.msrb.mxu1 %v8312_v58  ;;  %v9354_v58 = vld [vmem:[#allocation9 + $0x1a4] sm:$0xf]  ;;  %v3452_v30 = vmax.f32 %v3436_v43, %v3444_v62  ;;  %v10228_v38 = vpop.f32.mrf.mxu0 }
 0x22a   :  { %v3190_v6 = vadd.f32 %v10207_v23, %v3177_v53  ;;  %v7836_v17 = vor.u32 %v9354_v58, %v7833_v55  ;;  %v9496_v23 = vld [vmem:[#allocation9 + $0x60c] sm:$0xf0]  ;;  %v7708_v53 = vor.u32 %v9322_v34, %v7705_v2 }
 0x22b   :  { %5063 = vmatpush.bf16.msrb.mxu3 %v8232_v3  ;;  %v8151_v3 = vld [vmem:[#allocation9 + $0x420] sm:$0xf]  ;;  %5092 = vmatpush.bf16.msrb.mxu2 %v8440_v37  ;;  %v8392_v0 = vor.u32 %v9496_v23, %v8391_v28  ;;  %v9390_v37 = vld [vmem:[#allocation9 + $0x2c4] sm:$0xf]  ;;  %v8600_v28 = vor.u32 %v9548_v22, %v8599_v19  ;;  %v7945_v23 = vld [vmem:[#allocation9 + $0x290] sm:$0xf0] }
 0x22c   :  { %v8152_v61 = vor.u32 %v9436_v41, %v8151_v3  ;;  %v9318_v41 = vld [vmem:[#allocation9 + $0x84] sm:$0xf] }
 0x22d   :  { %5080 = vmatpush.bf16.msrb.mxu1 %v8296_v56  ;;  %v8408_v56 = vor.u32 %v9500_v11, %v8407_v14  ;;  %v9338_v14 = vld [vmem:[#allocation9 + $0x124] sm:$0xf]  ;;  %v7769_v11 = vld [vmem:[#allocation9 + $0x130] sm:$0xf0]  ;;  %v7692_v15 = vor.u32 %v9318_v41, %v7689_v46 }
 0x22e   :  { %v7913_v46 = vld [vmem:[#allocation9 + $0x250] sm:$0xf0]  ;;  %v9478_v22 = vld [vmem:[#allocation9 + $0x584] sm:$0xf] }
 0x22f   :  { %5064 = vmatpush.bf16.msrb.mxu3 %v8216_v7  ;;  %5093 = vmatpush.bf16.msrb.mxu2 %v8424_v57  ;;  %v9432_v7 = vld [vmem:[#allocation9 + $0x40c] sm:$0xf0]  ;;  %v3178_v63 = vpop.f32.mrf.mxu3  ;;  %v3243_v18 = vpop.f32.mrf.mxu1  ;;  %v8615_v57 = vld [vmem:[#allocation9 + $0x7c0] sm:$0xf] }
 0x230   :  { %v8136_v59 = vor.u32 %v9432_v7, %v8135_v1  ;;  %v7961_v7 = vld [vmem:[#allocation9 + $0x2b0] sm:$0xf0] }
 0x231   :  { %5081 = vmatpush.bf16.msrb.mxu1 %v8280_v9  ;;  %v7721_v9 = vld [vmem:[#allocation9 + $0xd0] sm:$0xf0] }
 0x232   :  { %v7724_v33 = vor.u32 %v9326_v49, %v7721_v9  ;;  %v9334_v49 = vld [vmem:[#allocation9 + $0x104] sm:$0xf]  ;;  %v7753_v9 = vld [vmem:[#allocation9 + $0x110] sm:$0xf0] }
 0x233   :  { %5065 = vmatpush.bf16.msrb.mxu3 %v8200_v60  ;;  %5094 = vmatpush.bf16.msrb.mxu2 %v8408_v56  ;;  %v3203_v60 = vadd.f32 %v10209_v45, %v3190_v6  ;;  %v10230_v45 = vpack.c.bf16 %v3452_v30, %v3452_v30  ;;  %v10235_v55 = vpop.f32.mrf.mxu2  ;;  %v9386_v6 = vld [vmem:[#allocation9 + $0x2a4] sm:$0xf] }
 0x234   :  { %v7964_v63 = vor.u32 %v9386_v6, %v7961_v7  ;;  %v9314_v56 = vld [vmem:[#allocation9 + $0x64] sm:$0xf]  ;;  %v8551_v6 = vld [vmem:[#allocation9 + $0x740] sm:$0xf]  ;;  %v9536_v7 = vld [vmem:[#allocation9 + $0x74c] sm:$0xf0] }
 0x235   :  { %5082 = vmatpush.bf16.msrb.mxu1 %v8264_v4  ;;  %v3216_v32 = vadd.f32 %v10216_v16, %v3203_v60  ;;  %v8631_v4 = vld [vmem:[#allocation9 + $0x7e0] sm:$0xf]  ;;  %v7785_v16 = vld [vmem:[#allocation9 + $0x150] sm:$0xf0]  ;;  %v9382_v30 = vld [vmem:[#allocation9 + $0x284] sm:$0xf] }
 0x236   :  { %v8632_v43 = vor.u32 %v9556_v35, %v8631_v4  ;;  %v7788_v62 = vor.u32 %v9342_v44, %v7785_v16  ;;  %v7929_v4 = vld [vmem:[#allocation9 + $0x270] sm:$0xf0]  ;;  %v8567_v16 = vld [vmem:[#allocation9 + $0x760] sm:$0xf] }
 0x237   :  { %5066 = vmatpush.bf16.msrb.mxu3 %v8184_v50  ;;  %v9346_v50 = vld [vmem:[#allocation9 + $0x164] sm:$0xf]  ;;  %5095 = vmatpush.bf16.msrb.mxu2 %v8392_v0  ;;  %v3228_v36 = vpop.f32.mrf.mxu3  ;;  %v7641_v44 = vld [vmem:[#allocation9 + $0x30] sm:$0xf0] }
 0x238   :  { %v3229_v39 = vadd.f32 %v3228_v36, %v3216_v32  ;;  %5101 = vmatpush.bf16.msrb.mxu0 %v8632_v43  ;;  %v9490_v0 = vld [vmem:[#allocation9 + $0x5e4] sm:$0xf]  ;;  %v9544_v32 = vld [vmem:[#allocation9 + $0x78c] sm:$0xf0]  ;;  %v8361_v43 = vld [vmem:[#allocation9 + $0x5d0] sm:$0xf0] }
 0x239   :  { %5127 = vmatpush.bf16.msra.mxu1 %v7868_v21  ;;  %v7804_v21 = vor.u32 %v9346_v50, %v7801_v25  ;;  %v9310_v50 = vld [vmem:[#allocation9 + $0x44] sm:$0xf]  ;;  %v7657_v25 = vld [vmem:[#allocation9 + $0x50] sm:$0xf0]  ;;  %v8380_v35 = vor.u32 %v9490_v0, %v8377_v54 }
 0x23a   :  { %v3437_v3 = vadd.f32 %v3421_v52, %v3229_v39  ;;  %v9378_v52 = vld [vmem:[#allocation9 + $0x264] sm:$0xf] }
 0x23b   :  { %5067 = vmatpush.bf16.msrb.mxu3 %v8168_v48  ;;  %5140 = vmatpush.bf16.msra.mxu2 %v7996_v5  ;;  %v7977_v48 = vld [vmem:[#allocation9 + $0x2d0] sm:$0xf0]  ;;  %v8583_v5 = vld [vmem:[#allocation9 + $0x780] sm:$0xf]  ;;  %v3282_v2 = vpop.f32.mrf.mxu2  ;;  %v7932_v39 = vor.u32 %v9378_v52, %v7929_v4  ;;  %v9454_v0 = vld [vmem:[#allocation9 + $0x4c4] sm:$0xf] }
 0x23c   :  { %v7980_v47 = vor.u32 %v9390_v37, %v7977_v48  ;;  %v3445_v58 = vmul.f32 0.2, %v3437_v3  ;;  %v8584_v36 = vor.u32 %v9544_v32, %v8583_v5  ;;  %v9486_v37 = vld [vmem:[#allocation9 + $0x5c4] sm:$0xf]  ;;  %v8313_v52 = vld [vmem:[#allocation9 + $0x570] sm:$0xf0] }
 0x23d   :  { %5128 = vmatpush.bf16.msra.mxu1 %v7852_v31  ;;  %v9552_v31 = vld [vmem:[#allocation9 + $0x7cc] sm:$0xf0]  ;;  %v9306_v48 = vld [vmem:[#allocation9 + $0x24] sm:$0xf]  ;;  %v8364_v18 = vor.u32 %v9486_v37, %v8361_v43  ;;  %v8519_v2 = vld [vmem:[#allocation9 + $0x700] sm:$0xf] }
 0x23e   :  { %v8616_v1 = vor.u32 %v9552_v31, %v8615_v57  ;;  %v3453_v13 = vmax.f32 %v3437_v3, %v3445_v58  ;;  %v9374_v3 = vld [vmem:[#allocation9 + $0x244] sm:$0xf]  ;;  %v7644_v58 = vor.u32 %v9306_v48, %v7641_v44  ;;  %v8217_v37 = vld [vmem:[#allocation9 + $0x4b0] sm:$0xf0] }
 0x23f   :  { %5068 = vmatpush.bf16.msrb.mxu3 %v8152_v61  ;;  %5141 = vmatpush.bf16.msra.mxu2 %v7980_v47  ;;  %v3269_v61 = vpop.f32.mrf.mxu0  ;;  %v9540_v47 = vld [vmem:[#allocation9 + $0x76c] sm:$0xf0]  ;;  %v9482_v57 = vld [vmem:[#allocation9 + $0x5a4] sm:$0xf]  ;;  %v7916_v31 = vor.u32 %v9374_v3, %v7913_v46  ;;  %v8121_v48 = vld [vmem:[#allocation9 + $0x3f0] sm:$0xf0]  ;;  %v3242_v46 = vadd.f32 %v10226_v40, %v10066_v10 }
 0x240   :  { %5102 = vmatpush.bf16.msrb.mxu0 %v8616_v1  ;;  %v10237_v60 = vpack.c.bf16 %v3453_v13, %v3453_v13  ;;  %v8568_v41 = vor.u32 %v9540_v47, %v8567_v16  ;;  %v9302_v61 = vld [vmem:[#allocation9 + $0x4] sm:$0xf]  ;;  %v7625_v1 = vld [vmem:[#allocation9 + $0x10] sm:$0xf0] }
 0x241   :  { %5129 = vmatpush.bf16.msra.mxu1 %v7836_v17  ;;  %v7673_v17 = vld [vmem:[#allocation9 + $0x70] sm:$0xf0]  ;;  %v7628_v19 = vor.u32 %v9302_v61, %v7625_v1  ;;  %v9474_v32 = vld [vmem:[#allocation9 + $0x564] sm:$0xf] }
 0x242   :  { %5083 = vmatmul.bf16.vlgmr.msrb.gmra.mxu1 %v10237_v60  ;;  %v7676_v29 = vor.u32 %v9314_v56, %v7673_v17  ;;  %v8249_v13 = vld [vmem:[#allocation9 + $0x4f0] sm:$0xf0]  ;;  %v9426_v43 = vld [vmem:[#allocation9 + $0x3e4] sm:$0xf] }
 0x243   :  { %5069 = vmatpush.bf16.msrb.mxu3 %v8136_v59  ;;  %v3230_v59 = vpop.f32.mrf.mxu3  ;;  %5142 = vmatpush.bf16.msra.mxu2 %v7964_v63  ;;  %v9458_v63 = vld [vmem:[#allocation9 + $0x4e4] sm:$0xf]  ;;  %v7897_v56 = vld [vmem:[#allocation9 + $0x230] sm:$0xf0]  ;;  %v8124_v47 = vor.u32 %v9426_v43, %v8121_v48  ;;  %v3422_v43 = vperm.slane %v10176_v42, 6 }
 0x244   :  { %5103 = vmatpush.bf16.msrb.mxu0 %v8600_v28  ;;  %v8535_v28 = vld [vmem:[#allocation9 + $0x720] sm:$0xf]  ;;  %v9470_v44 = vld [vmem:[#allocation9 + $0x544] sm:$0xf]  ;;  %v8297_v16 = vld [vmem:[#allocation9 + $0x550] sm:$0xf0] }
 0x245   :  { %5130 = vmatpush.bf16.msra.mxu1 %v7820_v24  ;;  %v7948_v24 = vor.u32 %v9382_v30, %v7945_v23  ;;  %v8329_v30 = vld [vmem:[#allocation9 + $0x590] sm:$0xf0]  ;;  %v9532_v23 = vld [vmem:[#allocation9 + $0x72c] sm:$0xf0]  ;;  %v8300_v61 = vor.u32 %v9470_v44, %v8297_v16  ;;  %v9418_v10 = vld [vmem:[#allocation9 + $0x3a4] sm:$0xf] }
 0x246   :  { %5070 = vmatmul.bf16.vlgmr.msrb.gmra.mxu3 %v10230_v45  ;;  %v8536_v54 = vor.u32 %v9532_v23, %v8535_v28  ;;  %v8089_v40 = vld [vmem:[#allocation9 + $0x3b0] sm:$0xf0]  ;;  %v9438_v28 = vld [vmem:[#allocation9 + $0x444] sm:$0xf]  ;;  %v7839_v44 = vld [vmem:[#allocation9 + $0x1a8] sm:$0xf] }
 0x247   :  { %5114 = vmatpush.bf16.msra.mxu3 %v7740_v8  ;;  %v7772_v8 = vor.u32 %v9338_v14, %v7769_v11  ;;  %5143 = vmatpush.bf16.msra.mxu2 %v7948_v24  ;;  %v10240_v34 = vpop.f32.mrf.mxu0  ;;  %v9370_v14 = vld [vmem:[#allocation9 + $0x224] sm:$0xf]  ;;  %v8233_v24 = vld [vmem:[#allocation9 + $0x4d0] sm:$0xf0]  ;;  %v9357_v16 = vld [vmem:[#allocation9 + $0x1b4] sm:$0xf0] }
 0x248   :  { %5104 = vmatpush.bf16.msrb.mxu0 %v8584_v36  ;;  %v7900_v59 = vor.u32 %v9370_v14, %v7897_v56  ;;  %v9528_v36 = vld [vmem:[#allocation9 + $0x70c] sm:$0xf0]  ;;  %v8281_v14 = vld [vmem:[#allocation9 + $0x530] sm:$0xf0]  ;;  %v7840_v42 = vor.u32 %v9357_v16, %v7839_v44  ;;  %v9341_v44 = vld [vmem:[#allocation9 + $0x134] sm:$0xf0] }
 0x249   :  { %5131 = vmatpush.bf16.msra.mxu1 %v7804_v21  ;;  %v7660_v21 = vor.u32 %v9310_v50, %v7657_v25  ;;  %v7881_v50 = vld [vmem:[#allocation9 + $0x210] sm:$0xf0]  ;;  %v8332_v25 = vor.u32 %v9478_v22, %v8329_v30 }
 0x24a   :  { %v8265_v22 = vld [vmem:[#allocation9 + $0x510] sm:$0xf0] }
 0x24b   :  { %5115 = vmatpush.bf16.msra.mxu3 %v7724_v33  ;;  %v7756_v33 = vor.u32 %v9334_v49, %v7753_v9  ;;  %5144 = vmatpush.bf16.msra.mxu2 %v7932_v39  ;;  %v9366_v49 = vld [vmem:[#allocation9 + $0x204] sm:$0xf]  ;;  %v10244_v9 = vpop.f32.mrf.mxu1  ;;  %v8520_v39 = vor.u32 %v9528_v36, %v8519_v2  ;;  %v8169_v23 = vld [vmem:[#allocation9 + $0x450] sm:$0xf0] }
 0x24c   :  { %5105 = vmatpush.bf16.msrb.mxu0 %v8568_v41  ;;  %v7884_v5 = vor.u32 %v9366_v49, %v7881_v50  ;;  %v9446_v41 = vld [vmem:[#allocation9 + $0x484] sm:$0xf]  ;;  %v8153_v2 = vld [vmem:[#allocation9 + $0x430] sm:$0xf0] }
 0x24d   :  { %5132 = vmatpush.bf16.msra.mxu1 %v7788_v62  ;;  %v8345_v62 = vld [vmem:[#allocation9 + $0x5b0] sm:$0xf0]  ;;  %v9414_v49 = vld [vmem:[#allocation9 + $0x384] sm:$0xf] }
 0x24e   :  { %v8348_v17 = vor.u32 %v9482_v57, %v8345_v62  ;;  %v9410_v36 = vld [vmem:[#allocation9 + $0x364] sm:$0xf] }
 0x24f   :  { %5116 = vmatpush.bf16.msra.mxu3 %v7708_v53  ;;  %v10242_v53 = vpop.f32.mrf.mxu3  ;;  %5145 = vmatpush.bf16.msra.mxu2 %v7916_v31  ;;  %v3321_v11 = vpop.f32.mrf.mxu0  ;;  %v9422_v31 = vld [vmem:[#allocation9 + $0x3c4] sm:$0xf] }
 0x251   :  { %5133 = vmatpush.bf16.msra.mxu1 %v7772_v8  ;;  %v8252_v8 = vor.u32 %v9458_v63, %v8249_v13  ;;  %v9442_v63 = vld [vmem:[#allocation9 + $0x464] sm:$0xf]  ;;  %v8185_v13 = vld [vmem:[#allocation9 + $0x470] sm:$0xf0] }
 0x252   :  { %v8188_v30 = vor.u32 %v9442_v63, %v8185_v13  ;;  %v9402_v63 = vld [vmem:[#allocation9 + $0x324] sm:$0xf]  ;;  %v8025_v13 = vld [vmem:[#allocation9 + $0x330] sm:$0xf0] }
 0x253   :  { %5117 = vmatpush.bf16.msra.mxu3 %v7692_v15  ;;  %v8552_v15 = vor.u32 %v9536_v7, %v8551_v6  ;;  %5146 = vmatpush.bf16.msra.mxu2 %v7900_v59  ;;  %v3295_v57 = vpop.f32.mrf.mxu1  ;;  %v10252_v62 = vpop.f32.mrf.mxu2  ;;  %v3255_v6 = vadd.f32 %v10242_v53, %v3242_v46  ;;  %v9466_v7 = vld [vmem:[#allocation9 + $0x524] sm:$0xf]  ;;  %v7871_v53 = vld [vmem:[#allocation9 + $0x1e8] sm:$0xf]  ;;  %v8041_v46 = vld [vmem:[#allocation9 + $0x350] sm:$0xf0] }
 0x254   :  { %v8284_v56 = vor.u32 %v9466_v7, %v8281_v14  ;;  %v9333_v57 = vld [vmem:[#allocation9 + $0xf4] sm:$0xf0]  ;;  %v9522_v7 = vld [vmem:[#allocation9 + $0x6e4] sm:$0xf]  ;;  %v8505_v14 = vld [vmem:[#allocation9 + $0x6f0] sm:$0xf0] }
 0x255   :  { %5134 = vmatpush.bf16.msra.mxu1 %v7756_v33  ;;  %5106 = vmatpush.bf16.msrb.mxu0 %v8552_v15  ;;  %v8236_v33 = vor.u32 %v9454_v0, %v8233_v24  ;;  %v3268_v59 = vadd.f32 %v10228_v38, %v3255_v6  ;;  %v8073_v0 = vld [vmem:[#allocation9 + $0x390] sm:$0xf0]  ;;  %v8172_v38 = vor.u32 %v9438_v28, %v8169_v23  ;;  %v9353_v6 = vld [vmem:[#allocation9 + $0x194] sm:$0xf0] }
 0x257   :  { %5118 = vmatpush.bf16.msra.mxu3 %v7676_v29  ;;  %v3256_v29 = vpop.f32.mrf.mxu3  ;;  %v10247_v4 = vpop.f32.mrf.mxu0  ;;  %5147 = vmatpush.bf16.msra.mxu2 %v7884_v5  ;;  %v3281_v50 = vadd.f32 %v10235_v55, %v3268_v59  ;;  %v7855_v5 = vld [vmem:[#allocation9 + $0x1c8] sm:$0xf] }
 0x258   :  { %5135 = vmatmul.bf16.vlgmr.msra.gmra.mxu1 %v10198_v27 }
 0x259   :  { %5179 = vmatpush.bf16.msrb.mxu1 %v8380_v35  ;;  %5107 = vmatpush.bf16.msrb.mxu0 %v8536_v54  ;;  %v9450_v35 = vld [vmem:[#allocation9 + $0x4a4] sm:$0xf]  ;;  %v8076_v54 = vor.u32 %v9414_v49, %v8073_v0  ;;  %v8489_v49 = vld [vmem:[#allocation9 + $0x6d0] sm:$0xf0] }
 0x25a   :  { %v8220_v3 = vor.u32 %v9450_v35, %v8217_v37  ;;  %v8057_v35 = vld [vmem:[#allocation9 + $0x370] sm:$0xf0]  ;;  %v9398_v0 = vld [vmem:[#allocation9 + $0x304] sm:$0xf] }
 0x25b   :  { %5119 = vmatpush.bf16.msra.mxu3 %v7660_v21  ;;  %v8316_v21 = vor.u32 %v9474_v32, %v8313_v52  ;;  %v3334_v29 = vpop.f32.mrf.mxu2  ;;  %v9361_v32 = vld [vmem:[#allocation9 + $0x1d4] sm:$0xf0]  ;;  %v9434_v52 = vld [vmem:[#allocation9 + $0x424] sm:$0xf] }
 0x25c   :  { %v7856_v55 = vor.u32 %v9361_v32, %v7855_v5  ;;  %v8156_v48 = vor.u32 %v9434_v52, %v8153_v2  ;;  %v7711_v29 = vld [vmem:[#allocation9 + $0xa8] sm:$0xf]  ;;  %v9345_v52 = vld [vmem:[#allocation9 + $0x154] sm:$0xf0]  ;;  %v9514_v2 = vld [vmem:[#allocation9 + $0x6a4] sm:$0xf] }
 0x25d   :  { %5180 = vmatpush.bf16.msrb.mxu1 %v8364_v18  ;;  %5108 = vmatpush.bf16.msrb.mxu0 %v8520_v39  ;;  %v8201_v18 = vld [vmem:[#allocation9 + $0x490] sm:$0xf0]  ;;  %v8060_v39 = vor.u32 %v9410_v36, %v8057_v35  ;;  %v7791_v32 = vld [vmem:[#allocation9 + $0x148] sm:$0xf] }
 0x25e   :  { %v8204_v11 = vor.u32 %v9446_v41, %v8201_v18  ;;  %v9406_v41 = vld [vmem:[#allocation9 + $0x344] sm:$0xf]  ;;  %v7743_v18 = vld [vmem:[#allocation9 + $0xe8] sm:$0xf]  ;;  %v8473_v36 = vld [vmem:[#allocation9 + $0x6b0] sm:$0xf0] }
 0x25f   :  { %5120 = vmatpush.bf16.msra.mxu3 %v7644_v58  ;;  %v8105_v58 = vld [vmem:[#allocation9 + $0x3d0] sm:$0xf0]  ;;  %v3347_v15 = vpop.f32.mrf.mxu0 }
 0x260   :  { %v8108_v1 = vor.u32 %v9422_v31, %v8105_v58  ;;  %v3306_v37 = vpop.f32.mrf.mxu3  ;;  %v8044_v31 = vor.u32 %v9406_v41, %v8041_v46  ;;  %v9317_v41 = vld [vmem:[#allocation9 + $0x74] sm:$0xf0] }
 0x261   :  { %5181 = vmatpush.bf16.msrb.mxu1 %v8348_v17  ;;  %5153 = vmatpush.bf16.msra.mxu0 %v8124_v47  ;;  %v8092_v17 = vor.u32 %v9418_v10, %v8089_v40  ;;  %v9430_v47 = vld [vmem:[#allocation9 + $0x404] sm:$0xf]  ;;  %v7727_v40 = vld [vmem:[#allocation9 + $0xc8] sm:$0xf] }
 0x263   :  { %5121 = vmatpush.bf16.msra.mxu3 %v7628_v19  ;;  %v9462_v19 = vld [vmem:[#allocation9 + $0x504] sm:$0xf] }
 0x264   :  { %v8268_v24 = vor.u32 %v9462_v19, %v8265_v22  ;;  %v8508_v22 = vor.u32 %v9522_v7, %v8505_v14  ;;  %v8383_v7 = vld [vmem:[#allocation9 + $0x5e8] sm:$0xf]  ;;  %v9493_v14 = vld [vmem:[#allocation9 + $0x5f4] sm:$0xf0] }
 0x265   :  { %5182 = vmatpush.bf16.msrb.mxu1 %v8332_v25  ;;  %5154 = vmatpush.bf16.msra.mxu0 %v8108_v1 }
 0x266   :  { %5122 = vmatmul.bf16.vlgmr.msra.gmra.mxu3 %v10211_v51 }
 0x267   :  { %5166 = vmatpush.bf16.msrb.mxu3 %v8252_v8  ;;  %v9365_v8 = vld [vmem:[#allocation9 + $0x1f4] sm:$0xf0] }
 0x268   :  { %v7872_v25 = vor.u32 %v9365_v8, %v7871_v53  ;;  %v3308_v10 = vpop.f32.mrf.mxu3  ;;  %v9349_v53 = vld [vmem:[#allocation9 + $0x174] sm:$0xf0]  ;;  %v9518_v8 = vld [vmem:[#allocation9 + $0x6c4] sm:$0xf] }
 0x269   :  { %5183 = vmatpush.bf16.msrb.mxu1 %v8316_v21  ;;  %5155 = vmatpush.bf16.msra.mxu0 %v8092_v17  ;;  %v8028_v17 = vor.u32 %v9402_v63, %v8025_v13  ;;  %v8492_v5 = vor.u32 %v9518_v8, %v8489_v49  ;;  %v9313_v63 = vld [vmem:[#allocation9 + $0x54] sm:$0xf0] }
 0x26a   :  { %v9309_v8 = vld [vmem:[#allocation9 + $0x34] sm:$0xf0] }
 0x26b   :  { %5167 = vmatpush.bf16.msrb.mxu3 %v8236_v33  ;;  %v3294_v33 = vadd.f32 %v10244_v9, %v3281_v50  ;;  %v8137_v9 = vld [vmem:[#allocation9 + $0x410] sm:$0xf0] }
 0x26c   :  { %v8140_v1 = vor.u32 %v9430_v47, %v8137_v9  ;;  %v9510_v47 = vld [vmem:[#allocation9 + $0x684] sm:$0xf]  ;;  %v7679_v9 = vld [vmem:[#allocation9 + $0x68] sm:$0xf] }
 0x26d   :  { %5184 = vmatpush.bf16.msrb.mxu1 %v8300_v61  ;;  %5156 = vmatpush.bf16.msra.mxu0 %v8076_v54  ;;  %v3307_v21 = vadd.f32 %v3306_v37, %v3294_v33  ;;  %v7823_v61 = vld [vmem:[#allocation9 + $0x188] sm:$0xf]  ;;  %v9325_v54 = vld [vmem:[#allocation9 + $0xb4] sm:$0xf0] }
 0x26e   :  { %v7824_v19 = vor.u32 %v9353_v6, %v7823_v61  ;;  %v7712_v33 = vor.u32 %v9325_v54, %v7711_v29  ;;  %v7695_v37 = vld [vmem:[#allocation9 + $0x88] sm:$0xf]  ;;  %v9506_v61 = vld [vmem:[#allocation9 + $0x664] sm:$0xf]  ;;  %v8441_v6 = vld [vmem:[#allocation9 + $0x670] sm:$0xf0] }
 0x26f   :  { %5168 = vmatpush.bf16.msrb.mxu3 %v8220_v3  ;;  %v3320_v3 = vadd.f32 %v10240_v34, %v3307_v21  ;;  %v7744_v34 = vor.u32 %v9333_v57, %v7743_v18  ;;  %v7792_v21 = vor.u32 %v9345_v52, %v7791_v32  ;;  %v3333_v57 = vadd.f32 %v10252_v62, %v10072_v20  ;;  %v8409_v54 = vld [vmem:[#allocation9 + $0x630] sm:$0xf0]  ;;  %v7631_v32 = vld [vmem:[#allocation9 + $0x8] sm:$0xf]  ;;  %v9305_v52 = vld [vmem:[#allocation9 + $0x14] sm:$0xf0] }
 0x270   :  { %v8444_v20 = vor.u32 %v9506_v61, %v8441_v6  ;;  %v8384_v62 = vor.u32 %v9493_v14, %v8383_v7  ;;  %v9554_v6 = vld [vmem:[#allocation9 + $0x7e4] sm:$0xf]  ;;  %v8633_v7 = vld [vmem:[#allocation9 + $0x7f0] sm:$0xf0] }
 0x271   :  { %5185 = vmatpush.bf16.msrb.mxu1 %v8284_v56  ;;  %5157 = vmatpush.bf16.msra.mxu0 %v8060_v39  ;;  %v3438_v58 = vadd.f32 %v3422_v43, %v3320_v3  ;;  %v10261_v15 = vpop.f32.mrf.mxu1  ;;  %v9329_v56 = vld [vmem:[#allocation9 + $0xd4] sm:$0xf0]  ;;  %v8457_v3 = vld [vmem:[#allocation9 + $0x690] sm:$0xf0] }
 0x272   :  { %v7728_v23 = vor.u32 %v9329_v56, %v7727_v40  ;;  %v9321_v39 = vld [vmem:[#allocation9 + $0x94] sm:$0xf0]  ;;  %v3346_v40 = vadd.f32 %v10247_v4, %v3333_v57  ;;  %v9502_v56 = vld [vmem:[#allocation9 + $0x644] sm:$0xf] }
 0x273   :  { %5169 = vmatpush.bf16.msrb.mxu3 %v8204_v11  ;;  %v3446_v11 = vmul.f32 0.2, %v3438_v58  ;;  %v7696_v16 = vor.u32 %v9321_v39, %v7695_v37  ;;  %v9457_v57 = vld [vmem:[#allocation9 + $0x4d4] sm:$0xf0] }
 0x275   :  { %5186 = vmatpush.bf16.msrb.mxu1 %v8268_v24  ;;  %5158 = vmatpush.bf16.msra.mxu0 %v8044_v31  ;;  %v3454_v59 = vmax.f32 %v3438_v58, %v3446_v11  ;;  %v8009_v24 = vld [vmem:[#allocation9 + $0x310] sm:$0xf0]  ;;  %v8460_v31 = vor.u32 %v9510_v47, %v8457_v3  ;;  %v7759_v58 = vld [vmem:[#allocation9 + $0x108] sm:$0xf] }
 0x277   :  { %5170 = vmatpush.bf16.msrb.mxu3 %v8188_v30  ;;  %v7807_v30 = vld [vmem:[#allocation9 + $0x168] sm:$0xf]  ;;  %v10263_v28 = vpack.c.bf16 %v3454_v59, %v3454_v59  ;;  %v8425_v59 = vld [vmem:[#allocation9 + $0x650] sm:$0xf0] }
 0x278   :  { %5187 = vmatmul.bf16.vlgmr.msrb.gmra.mxu1 %v10237_v60  ;;  %v8428_v4 = vor.u32 %v9502_v56, %v8425_v59 }
 0x279   :  { %5231 = vmatpush.bf16.msra.mxu1 %v7872_v25  ;;  %5159 = vmatpush.bf16.msra.mxu0 %v8028_v17  ;;  %v10265_v50 = vpop.f32.mrf.mxu0  ;;  %v8012_v25 = vor.u32 %v9398_v0, %v8009_v24  ;;  %v3360_v35 = vpop.f32.mrf.mxu1  ;;  %v9498_v24 = vld [vmem:[#allocation9 + $0x624] sm:$0xf] }
 0x27a   :  { %5096 = vmatmul.bf16.vlgmr.msrb.gmra.mxu2 %v10263_v28  ;;  %v9643_v35 = vld [vmem:[#allocation8] sm:$0xff]  ;;  %v8412_v39 = vor.u32 %v9498_v24, %v8409_v54 }
 0x27b   :  { %5171 = vmatpush.bf16.msrb.mxu3 %v8172_v38  ;;  %v7808_v38 = vor.u32 %v9349_v53, %v7807_v30  ;;  %5192 = vmatpush.bf16.msrb.mxu2 %v8508_v22  ;;  %v9489_v22 = vld [vmem:[#allocation9 + $0x5d4] sm:$0xf0]  ;;  %v3359_v30 = vadd.f32 %v10261_v15, %v3346_v40  ;;  %v7647_v53 = vld [vmem:[#allocation9 + $0x28] sm:$0xf]  ;;  %v3423_v37 = vperm.slane %v9643_v35, 7 }
 0x27c   :  { %v7648_v29 = vor.u32 %v9309_v8, %v7647_v53  ;;  %v8223_v40 = vld [vmem:[#allocation9 + $0x4a8] sm:$0xf]  ;;  %v9449_v24 = vld [vmem:[#allocation9 + $0x494] sm:$0xf0] }
 0x27d   :  { %5232 = vmatpush.bf16.msra.mxu1 %v7856_v55  ;;  %5160 = vmatpush.bf16.msra.mxu0 %v8012_v25  ;;  %v3384_v43 = vpop.f32.mrf.mxu2  ;;  %v8476_v55 = vor.u32 %v9514_v2, %v8473_v36  ;;  %v8351_v25 = vld [vmem:[#allocation9 + $0x5a8] sm:$0xf]  ;;  %v9461_v2 = vld [vmem:[#allocation9 + $0x4f4] sm:$0xf0] }
 0x27e   :  { %v9385_v35 = vld [vmem:[#allocation9 + $0x294] sm:$0xf0] }
 0x27f   :  { %5172 = vmatpush.bf16.msrb.mxu3 %v8156_v48  ;;  %5193 = vmatpush.bf16.msrb.mxu2 %v8492_v5  ;;  %v7775_v48 = vld [vmem:[#allocation9 + $0x128] sm:$0xf] }
 0x280   :  { %v7776_v18 = vor.u32 %v9341_v44, %v7775_v48  ;;  %v7632_v48 = vor.u32 %v9305_v52, %v7631_v32  ;;  %v8393_v44 = vld [vmem:[#allocation9 + $0x610] sm:$0xf0]  ;;  %v9546_v32 = vld [vmem:[#allocation9 + $0x7a4] sm:$0xf] }
 0x281   :  { %5233 = vmatpush.bf16.msra.mxu1 %v7840_v42  ;;  %v3399_v46 = vpop.f32.mrf.mxu0  ;;  %v9337_v42 = vld [vmem:[#allocation9 + $0x114] sm:$0xf0]  ;;  %v3410_v11 = vpop.f32.mrf.mxu1 }
 0x282   :  { %v7760_v13 = vor.u32 %v9337_v42, %v7759_v58  ;;  %v8319_v42 = vld [vmem:[#allocation9 + $0x568] sm:$0xf] }
 0x283   :  { %5173 = vmatpush.bf16.msrb.mxu3 %v8140_v1  ;;  %5194 = vmatpush.bf16.msrb.mxu2 %v8476_v55  ;;  %v7680_v1 = vor.u32 %v9317_v41, %v7679_v9  ;;  %v9494_v55 = vld [vmem:[#allocation9 + $0x604] sm:$0xf]  ;;  %v7999_v9 = vld [vmem:[#allocation9 + $0x2e8] sm:$0xf]  ;;  %v9397_v41 = vld [vmem:[#allocation9 + $0x2f4] sm:$0xf0] }
 0x284   :  { %v8000_v61 = vor.u32 %v9397_v41, %v7999_v9  ;;  %v8585_v9 = vld [vmem:[#allocation9 + $0x790] sm:$0xf0] }
 0x285   :  { %5234 = vmatpush.bf16.msra.mxu1 %v7824_v19  ;;  %v3386_v10 = vpop.f32.mrf.mxu2  ;;  %v8367_v19 = vld [vmem:[#allocation9 + $0x5c8] sm:$0xf] }
 0x286   :  { %5174 = vmatmul.bf16.vlgmr.msrb.gmra.mxu3 %v10230_v45  ;;  %v8368_v0 = vor.u32 %v9489_v22, %v8367_v19  ;;  %v8303_v19 = vld [vmem:[#allocation9 + $0x548] sm:$0xf]  ;;  %v9473_v22 = vld [vmem:[#allocation9 + $0x554] sm:$0xf0] }
 0x287   :  { %5218 = vmatpush.bf16.msra.mxu3 %v7744_v34  ;;  %v7663_v34 = vld [vmem:[#allocation9 + $0x48] sm:$0xf]  ;;  %5195 = vmatpush.bf16.msrb.mxu2 %v8460_v31  ;;  %v8396_v31 = vor.u32 %v9494_v55, %v8393_v44  ;;  %v9465_v44 = vld [vmem:[#allocation9 + $0x514] sm:$0xf0] }
 0x288   :  { %v7664_v17 = vor.u32 %v9313_v63, %v7663_v34  ;;  %v7983_v63 = vld [vmem:[#allocation9 + $0x2c8] sm:$0xf] }
 0x289   :  { %5235 = vmatpush.bf16.msra.mxu1 %v7808_v38  ;;  %v9485_v38 = vld [vmem:[#allocation9 + $0x5b4] sm:$0xf0]  ;;  %v3412_v15 = vpop.f32.mrf.mxu1 }
 0x28a   :  { %5148 = vmatmul.bf16.vlgmr.msra.gmra.mxu2 %v10200_v26  ;;  %v9469_v15 = vld [vmem:[#allocation9 + $0x534] sm:$0xf0] }
 0x28b   :  { %5219 = vmatpush.bf16.msra.mxu3 %v7728_v23  ;;  %v3371_v23 = vpop.f32.mrf.mxu3  ;;  %5196 = vmatpush.bf16.msrb.mxu2 %v8444_v20  ;;  %v9453_v20 = vld [vmem:[#allocation9 + $0x4b4] sm:$0xf0] }
 0x28c   :  { %v3372_v49 = vadd.f32 %v3371_v23, %v3359_v30  ;;  %v9550_v30 = vld [vmem:[#allocation9 + $0x7c4] sm:$0xf]  ;;  %v8224_v8 = vor.u32 %v9453_v20, %v8223_v40  ;;  %v8617_v23 = vld [vmem:[#allocation9 + $0x7d0] sm:$0xf0]  ;;  %v7919_v40 = vld [vmem:[#allocation9 + $0x248] sm:$0xf] }
 0x28d   :  { %5236 = vmatpush.bf16.msra.mxu1 %v7792_v21  ;;  %v8352_v21 = vor.u32 %v9485_v38, %v8351_v25  ;;  %v8620_v25 = vor.u32 %v9550_v30, %v8617_v23  ;;  %v9377_v20 = vld [vmem:[#allocation9 + $0x254] sm:$0xf0]  ;;  %v9534_v23 = vld [vmem:[#allocation9 + $0x744] sm:$0xf] }
 0x28e   :  { %v3385_v5 = vadd.f32 %v3384_v43, %v3372_v49  ;;  %v8335_v43 = vld [vmem:[#allocation9 + $0x588] sm:$0xf] }
 0x28f   :  { %5220 = vmatpush.bf16.msra.mxu3 %v7712_v33  ;;  %v8255_v33 = vld [vmem:[#allocation9 + $0x4e8] sm:$0xf]  ;;  %5197 = vmatpush.bf16.msrb.mxu2 %v8428_v4  ;;  %v9389_v4 = vld [vmem:[#allocation9 + $0x2b4] sm:$0xf0] }
 0x290   :  { %v3398_v36 = vadd.f32 %v10265_v50, %v3385_v5  ;;  %v8256_v3 = vor.u32 %v9461_v2, %v8255_v33  ;;  %v7967_v49 = vld [vmem:[#allocation9 + $0x2a8] sm:$0xf]  ;;  %v8601_v2 = vld [vmem:[#allocation9 + $0x7b0] sm:$0xf0] }
 0x291   :  { %5237 = vmatpush.bf16.msra.mxu1 %v7776_v18  ;;  %v8239_v18 = vld [vmem:[#allocation9 + $0x4c8] sm:$0xf]  ;;  %v7968_v38 = vor.u32 %v9389_v4, %v7967_v49  ;;  %v8553_v49 = vld [vmem:[#allocation9 + $0x750] sm:$0xf0] }
 0x292   :  { %v3411_v47 = vadd.f32 %v3410_v11, %v3398_v36  ;;  %v8240_v11 = vor.u32 %v9457_v57, %v8239_v18  ;;  %v8287_v5 = vld [vmem:[#allocation9 + $0x528] sm:$0xf]  ;;  %v9381_v18 = vld [vmem:[#allocation9 + $0x274] sm:$0xf0]  ;;  %v9363_v57 = vld [vmem:[#allocation9 + $0x1ec] sm:$0xf] }
 0x293   :  { %5221 = vmatpush.bf16.msra.mxu3 %v7696_v16  ;;  %v9481_v16 = vld [vmem:[#allocation9 + $0x594] sm:$0xf0]  ;;  %v3373_v46 = vpop.f32.mrf.mxu3  ;;  %5198 = vmatpush.bf16.msrb.mxu2 %v8412_v39  ;;  %v7951_v36 = vld [vmem:[#allocation9 + $0x288] sm:$0xf]  ;;  %v8288_v55 = vor.u32 %v9469_v15, %v8287_v5  ;;  %v7841_v5 = vld [vmem:[#allocation9 + $0x1b8] sm:$0xf0] }
 0x294   :  { %v3439_v50 = vadd.f32 %v3423_v37, %v3411_v47  ;;  %v8336_v58 = vor.u32 %v9481_v16, %v8335_v43  ;;  %v8191_v39 = vld [vmem:[#allocation9 + $0x468] sm:$0xf]  ;;  %v8604_v43 = vor.u32 %v9546_v32, %v8601_v2  ;;  %v7952_v16 = vor.u32 %v9385_v35, %v7951_v36  ;;  %v10287_v47 = vld [vmem:[#allocation11] sm:$0xf]  ;;  %v9433_v32 = vld [vmem:[#allocation9 + $0x414] sm:$0xf0] }
 0x295   :  { %5238 = vmatpush.bf16.msra.mxu1 %v7760_v13  ;;  %v10276_v34 = vpop.f32.mrf.mxu1  ;;  %v9393_v13 = vld [vmem:[#allocation9 + $0x2d4] sm:$0xf0]  ;;  %v7935_v46 = vld [vmem:[#allocation9 + $0x268] sm:$0xf]  ;;  %v9530_v35 = vld [vmem:[#allocation9 + $0x724] sm:$0xf] }
 0x296   :  { %v3447_v14 = vmul.f32 0.2, %v3439_v50  ;;  %v7984_v59 = vor.u32 %v9393_v13, %v7983_v63  ;;  %v8143_v15 = vld [vmem:[#allocation9 + $0x408] sm:$0xf] }
 0x297   :  { %5222 = vmatpush.bf16.msra.mxu3 %v7680_v1  ;;  %v9477_v1 = vld [vmem:[#allocation9 + $0x574] sm:$0xf0]  ;;  %5199 = vmatpush.bf16.msrb.mxu2 %v8396_v31  ;;  %v8175_v31 = vld [vmem:[#allocation9 + $0x448] sm:$0xf] }
 0x298   :  { %5239 = vmatmul.bf16.vlgmr.msra.gmra.mxu1 %v10198_v27  ;;  %v8320_v56 = vor.u32 %v9477_v1, %v8319_v42 }
 0x299   :  { %5283 = vmatpush.bf16.msrb.mxu1 %v8384_v62  ;;  %v10278_v10 = vpop.f32.mrf.mxu0  ;;  %v3455_v62 = vmax.f32 %v3439_v50, %v3447_v14  ;;  %v7873_v50 = vld [vmem:[#allocation9 + $0x1f8] sm:$0xf0]  ;;  %v9538_v14 = vld [vmem:[#allocation9 + $0x764] sm:$0xf] }
 0x29a   :  { %5200 = vmatmul.bf16.vlgmr.msrb.gmra.mxu2 %v10263_v28  ;;  %v7876_v63 = vor.u32 %v9363_v57, %v7873_v50  ;;  %v9327_v57 = vld [vmem:[#allocation9 + $0xcc] sm:$0xf]  ;;  %v7729_v50 = vld [vmem:[#allocation9 + $0xd8] sm:$0xf0] }
 0x29b   :  { %5223 = vmatpush.bf16.msra.mxu3 %v7664_v17  ;;  %5244 = vmatpush.bf16.msra.mxu2 %v8000_v61  ;;  %v8636_v17 = vor.u32 %v9554_v6, %v8633_v7  ;;  %v10281_v53 = vpack.c.bf16 %v3455_v62, %v3455_v62  ;;  %v3722_v61 = vperm.slane %v10287_v47, 0  ;;  %v7936_v7 = vor.u32 %v9381_v18, %v7935_v46  ;;  %v9359_v62 = vld [vmem:[#allocation9 + $0x1cc] sm:$0xf] }
 0x29d   :  { %5284 = vmatpush.bf16.msrb.mxu1 %v8368_v0  ;;  %v8207_v0 = vld [vmem:[#allocation9 + $0x488] sm:$0xf]  ;;  %5109 = vmatmul.bf16.vlgmr.msrb.gmra.mxu0 %v10281_v53  ;;  %v10285_v54 = vpop.f32.mrf.mxu2  ;;  %v5034_v52 = vpop.f32.mrf.mxu1 }
 0x29e   :  { %5205 = vmatpush.bf16.msrb.mxu0 %v8636_v17  ;;  %v8208_v33 = vor.u32 %v9449_v24, %v8207_v0  ;;  %v7857_v17 = vld [vmem:[#allocation9 + $0x1d8] sm:$0xf0]  ;;  %v9331_v52 = vld [vmem:[#allocation9 + $0xec] sm:$0xf] }
 0x29f   :  { %5224 = vmatpush.bf16.msra.mxu3 %v7648_v29  ;;  %v8304_v29 = vor.u32 %v9473_v22, %v8303_v19  ;;  %5245 = vmatpush.bf16.msra.mxu2 %v7984_v59  ;;  %v8159_v59 = vld [vmem:[#allocation9 + $0x428] sm:$0xf]  ;;  %v9437_v19 = vld [vmem:[#allocation9 + $0x434] sm:$0xf0]  ;;  %v7860_v0 = vor.u32 %v9359_v62, %v7857_v17  ;;  %v9343_v17 = vld [vmem:[#allocation9 + $0x14c] sm:$0xf] }
 0x2a0   :  { %v8160_v24 = vor.u32 %v9437_v19, %v8159_v59  ;;  %v7793_v19 = vld [vmem:[#allocation9 + $0x158] sm:$0xf0] }
 0x2a1   :  { %5285 = vmatpush.bf16.msrb.mxu1 %v8352_v21  ;;  %v5060_v37 = vpop.f32.mrf.mxu0  ;;  %v9445_v21 = vld [vmem:[#allocation9 + $0x474] sm:$0xf0] }
 0x2a2   :  { %5206 = vmatpush.bf16.msrb.mxu0 %v8620_v25  ;;  %v8192_v41 = vor.u32 %v9445_v21, %v8191_v39  ;;  %v9373_v25 = vld [vmem:[#allocation9 + $0x234] sm:$0xf0]  ;;  %v8537_v37 = vld [vmem:[#allocation9 + $0x730] sm:$0xf0]  ;;  %v8144_v21 = vor.u32 %v9433_v32, %v8143_v15  ;;  %v8095_v15 = vld [vmem:[#allocation9 + $0x3a8] sm:$0xf] }
 0x2a3   :  { %5225 = vmatpush.bf16.msra.mxu3 %v7632_v48  ;;  %v8271_v48 = vld [vmem:[#allocation9 + $0x508] sm:$0xf]  ;;  %5246 = vmatpush.bf16.msra.mxu2 %v7968_v38  ;;  %v9355_v38 = vld [vmem:[#allocation9 + $0x1ac] sm:$0xf]  ;;  %v8540_v46 = vor.u32 %v9530_v35, %v8537_v37  ;;  %v9421_v32 = vld [vmem:[#allocation9 + $0x3b4] sm:$0xf0] }
 0x2a4   :  { %v8272_v42 = vor.u32 %v9465_v44, %v8271_v48  ;;  %v7844_v39 = vor.u32 %v9355_v38, %v7841_v5  ;;  %v9369_v48 = vld [vmem:[#allocation9 + $0x214] sm:$0xf0]  ;;  %v9351_v44 = vld [vmem:[#allocation9 + $0x18c] sm:$0xf]  ;;  %v7777_v5 = vld [vmem:[#allocation9 + $0x138] sm:$0xf0]  ;;  %v8096_v37 = vor.u32 %v9421_v32, %v8095_v15 }
 0x2a5   :  { %5286 = vmatpush.bf16.msrb.mxu1 %v8336_v58  ;;  %v9441_v58 = vld [vmem:[#allocation9 + $0x454] sm:$0xf0]  ;;  %v5047_v1 = vpop.f32.mrf.mxu2  ;;  %v8031_v15 = vld [vmem:[#allocation9 + $0x328] sm:$0xf] }
 0x2a6   :  { %5226 = vmatmul.bf16.vlgmr.msra.gmra.mxu3 %v10211_v51  ;;  %5207 = vmatpush.bf16.msrb.mxu0 %v8604_v43  ;;  %v8176_v13 = vor.u32 %v9441_v58, %v8175_v31  ;;  %v9347_v1 = vld [vmem:[#allocation9 + $0x16c] sm:$0xf]  ;;  %v9405_v32 = vld [vmem:[#allocation9 + $0x334] sm:$0xf0] }
 0x2a7   :  { %5270 = vmatpush.bf16.msrb.mxu3 %v8256_v3  ;;  %v9542_v3 = vld [vmem:[#allocation9 + $0x784] sm:$0xf]  ;;  %5247 = vmatpush.bf16.msra.mxu2 %v7952_v16 }
 0x2a8   :  { %v8588_v6 = vor.u32 %v9542_v3, %v8585_v9  ;;  %v7825_v9 = vld [vmem:[#allocation9 + $0x198] sm:$0xf0] }
 0x2a9   :  { %5287 = vmatpush.bf16.msrb.mxu1 %v8320_v56  ;;  %v5019_v56 = vpop.f32.mrf.mxu3  ;;  %v7828_v31 = vor.u32 %v9351_v44, %v7825_v9  ;;  %v9417_v44 = vld [vmem:[#allocation9 + $0x394] sm:$0xf0] }
 0x2aa   :  { %v5020_v22 = vadd.f32 %v5019_v56, %v3722_v61  ;;  %5208 = vmatpush.bf16.msrb.mxu0 %v8588_v6  ;;  %v8521_v61 = vld [vmem:[#allocation9 + $0x710] sm:$0xf0]  ;;  %v8127_v6 = vld [vmem:[#allocation9 + $0x3e8] sm:$0xf]  ;;  %v9509_v9 = vld [vmem:[#allocation9 + $0x674] sm:$0xf0] }
 0x2ab   :  { %5271 = vmatpush.bf16.msrb.mxu3 %v8240_v11  ;;  %v8569_v11 = vld [vmem:[#allocation9 + $0x770] sm:$0xf0]  ;;  %5248 = vmatpush.bf16.msra.mxu2 %v7936_v7  ;;  %v9429_v7 = vld [vmem:[#allocation9 + $0x3f4] sm:$0xf0] }
 0x2ac   :  { %v8572_v30 = vor.u32 %v9538_v14, %v8569_v11  ;;  %v5033_v4 = vadd.f32 %v10276_v34, %v5020_v22  ;;  %v8556_v34 = vor.u32 %v9534_v23, %v8553_v49  ;;  %v7732_v14 = vor.u32 %v9327_v57, %v7729_v50  ;;  %v8495_v11 = vld [vmem:[#allocation9 + $0x6c8] sm:$0xf]  ;;  %v9517_v49 = vld [vmem:[#allocation9 + $0x6b4] sm:$0xf0] }
 0x2ad   :  { %5288 = vmatpush.bf16.msrb.mxu1 %v8304_v29  ;;  %v7903_v29 = vld [vmem:[#allocation9 + $0x228] sm:$0xf]  ;;  %5161 = vmatmul.bf16.vlgmr.msra.gmra.mxu0 %v10202_v12  ;;  %v8128_v56 = vor.u32 %v9429_v7, %v8127_v6  ;;  %v9505_v7 = vld [vmem:[#allocation9 + $0x654] sm:$0xf0] }
 0x2ae   :  { %v5046_v2 = vadd.f32 %v10285_v54, %v5033_v4  ;;  %5209 = vmatpush.bf16.msrb.mxu0 %v8572_v30  ;;  %v7904_v36 = vor.u32 %v9373_v25, %v7903_v29  ;;  %v8511_v54 = vld [vmem:[#allocation9 + $0x6e8] sm:$0xf]  ;;  %v9425_v30 = vld [vmem:[#allocation9 + $0x3d4] sm:$0xf0]  ;;  %v9319_v4 = vld [vmem:[#allocation9 + $0x8c] sm:$0xf] }
 0x2af   :  { %5272 = vmatpush.bf16.msrb.mxu3 %v8224_v8  ;;  %v7920_v8 = vor.u32 %v9377_v20, %v7919_v40  ;;  %v9323_v40 = vld [vmem:[#allocation9 + $0xac] sm:$0xf]  ;;  %v7713_v20 = vld [vmem:[#allocation9 + $0xb8] sm:$0xf0]  ;;  %v8111_v22 = vld [vmem:[#allocation9 + $0x3c8] sm:$0xf] }
 0x2b0   :  { %v10295_v43 = vadd.f32 %v10278_v10, %v5046_v2  ;;  %v7809_v10 = vld [vmem:[#allocation9 + $0x178] sm:$0xf0]  ;;  %v8479_v23 = vld [vmem:[#allocation9 + $0x6a8] sm:$0xf]  ;;  %v8112_v29 = vor.u32 %v9425_v30, %v8111_v22  ;;  %v9339_v25 = vld [vmem:[#allocation9 + $0x12c] sm:$0xf] }
 0x2b1   :  { %5289 = vmatpush.bf16.msrb.mxu1 %v8288_v55  ;;  %5249 = vmatpush.bf16.msra.mxu2 %v7920_v8  ;;  %v7887_v55 = vld [vmem:[#allocation9 + $0x208] sm:$0xf]  ;;  %v5021_v16 = vpop.f32.mrf.mxu3  ;;  %v7812_v62 = vor.u32 %v9347_v1, %v7809_v10  ;;  %v7716_v8 = vor.u32 %v9323_v40, %v7713_v20  ;;  %v8480_v38 = vor.u32 %v9517_v49, %v8479_v23  ;;  %v9513_v2 = vld [vmem:[#allocation9 + $0x694] sm:$0xf0]  ;;  %v7649_v40 = vld [vmem:[#allocation9 + $0x38] sm:$0xf0] }
 0x2b2   :  { %5210 = vmatpush.bf16.msrb.mxu0 %v8556_v34  ;;  %v7888_v18 = vor.u32 %v9369_v48, %v7887_v55  ;;  %v9315_v34 = vld [vmem:[#allocation9 + $0x6c] sm:$0xf]  ;;  %v7780_v35 = vor.u32 %v9339_v25, %v7777_v5  ;;  %v8079_v48 = vld [vmem:[#allocation9 + $0x388] sm:$0xf]  ;;  %v8353_v49 = vld [vmem:[#allocation9 + $0x5b8] sm:$0xf0] }
 0x2b3   :  { %5273 = vmatpush.bf16.msrb.mxu3 %v8208_v33  ;;  %v7745_v33 = vld [vmem:[#allocation9 + $0xf8] sm:$0xf0]  ;;  %v8447_v16 = vld [vmem:[#allocation9 + $0x668] sm:$0xf]  ;;  %v8080_v50 = vor.u32 %v9417_v44, %v8079_v48  ;;  %v9483_v23 = vld [vmem:[#allocation9 + $0x5ac] sm:$0xf] }
 0x2b4   :  { %v7748_v3 = vor.u32 %v9331_v52, %v7745_v33  ;;  %v8463_v33 = vld [vmem:[#allocation9 + $0x688] sm:$0xf]  ;;  %v8257_v25 = vld [vmem:[#allocation9 + $0x4f8] sm:$0xf0]  ;;  %v8356_v5 = vor.u32 %v9483_v23, %v8353_v49 }
 0x2b5   :  { %5290 = vmatpush.bf16.msrb.mxu1 %v8272_v42  ;;  %5250 = vmatpush.bf16.msra.mxu2 %v7904_v36  ;;  %v9526_v42 = vld [vmem:[#allocation9 + $0x704] sm:$0xf]  ;;  %v7681_v36 = vld [vmem:[#allocation9 + $0x78] sm:$0xf0]  ;;  %v8464_v55 = vor.u32 %v9513_v2, %v8463_v33  ;;  %v8431_v1 = vld [vmem:[#allocation9 + $0x648] sm:$0xf] }
 0x2b6   :  { %5211 = vmatpush.bf16.msrb.mxu0 %v8540_v46  ;;  %v9311_v46 = vld [vmem:[#allocation9 + $0x4c] sm:$0xf]  ;;  %v8241_v48 = vld [vmem:[#allocation9 + $0x4d8] sm:$0xf0]  ;;  %v8607_v49 = vld [vmem:[#allocation9 + $0x7a8] sm:$0xf] }
 0x2b7   :  { %5274 = vmatpush.bf16.msrb.mxu3 %v8192_v41  ;;  %v9525_v41 = vld [vmem:[#allocation9 + $0x6f4] sm:$0xf0]  ;;  %v8289_v23 = vld [vmem:[#allocation9 + $0x538] sm:$0xf0] }
 0x2b8   :  { %5291 = vmatmul.bf16.vlgmr.msrb.gmra.mxu1 %v10237_v60  ;;  %v8512_v58 = vor.u32 %v9525_v41, %v8511_v54  ;;  %v9491_v54 = vld [vmem:[#allocation9 + $0x5ec] sm:$0xf]  ;;  %v8385_v41 = vld [vmem:[#allocation9 + $0x5f8] sm:$0xf0] }
 0x2b9   :  { %5335 = vmatpush.bf16.msra.mxu1 %v7876_v63  ;;  %v9521_v63 = vld [vmem:[#allocation9 + $0x6d4] sm:$0xf0]  ;;  %5251 = vmatpush.bf16.msra.mxu2 %v7888_v18  ;;  %v7665_v18 = vld [vmem:[#allocation9 + $0x58] sm:$0xf0] }
 0x2ba   :  { %v8496_v59 = vor.u32 %v9521_v63, %v8495_v11  ;;  %v7668_v6 = vor.u32 %v9311_v46, %v7665_v18  ;;  %v8369_v11 = vld [vmem:[#allocation9 + $0x5d8] sm:$0xf0] }
 0x2bb   :  { %5275 = vmatpush.bf16.msrb.mxu3 %v8176_v13  ;;  %v8524_v13 = vor.u32 %v9526_v42, %v8521_v61  ;;  %v8063_v42 = vld [vmem:[#allocation9 + $0x368] sm:$0xf]  ;;  %v9413_v61 = vld [vmem:[#allocation9 + $0x374] sm:$0xf0]  ;;  %v8321_v18 = vld [vmem:[#allocation9 + $0x578] sm:$0xf0] }
 0x2bc   :  { %5252 = vmatmul.bf16.vlgmr.msra.gmra.mxu2 %v10200_v26  ;;  %v8064_v20 = vor.u32 %v9413_v61, %v8063_v42  ;;  %v7985_v42 = vld [vmem:[#allocation9 + $0x2d8] sm:$0xf0] }
 0x2bd   :  { %5336 = vmatpush.bf16.msra.mxu1 %v7860_v0  ;;  %5296 = vmatpush.bf16.msrb.mxu2 %v8512_v58  ;;  %v7697_v0 = vld [vmem:[#allocation9 + $0x98] sm:$0xf0]  ;;  %v8388_v58 = vor.u32 %v9491_v54, %v8385_v41  ;;  %v9475_v54 = vld [vmem:[#allocation9 + $0x56c] sm:$0xf] }
 0x2be   :  { %5212 = vmatpush.bf16.msrb.mxu0 %v8524_v13  ;;  %v7700_v52 = vor.u32 %v9319_v4, %v7697_v0  ;;  %v9307_v13 = vld [vmem:[#allocation9 + $0x2c] sm:$0xf]  ;;  %v7633_v0 = vld [vmem:[#allocation9 + $0x18] sm:$0xf0] }
 0x2bf   :  { %5276 = vmatpush.bf16.msrb.mxu3 %v8160_v24  ;;  %v7796_v24 = vor.u32 %v9343_v17, %v7793_v19  ;;  %v8047_v17 = vld [vmem:[#allocation9 + $0x348] sm:$0xf]  ;;  %v5084_v22 = vpop.f32.mrf.mxu1  ;;  %v7652_v30 = vor.u32 %v9307_v13, %v7649_v40  ;;  %v9303_v4 = vld [vmem:[#allocation9 + $0xc] sm:$0xf]  ;;  %v9553_v40 = vld [vmem:[#allocation9 + $0x7d4] sm:$0xf0] }
 0x2c0   :  { %v8415_v19 = vld [vmem:[#allocation9 + $0x628] sm:$0xf]  ;;  %v7636_v2 = vor.u32 %v9303_v4, %v7633_v0  ;;  %v9549_v4 = vld [vmem:[#allocation9 + $0x7b4] sm:$0xf0] }
 0x2c1   :  { %5337 = vmatpush.bf16.msra.mxu1 %v7844_v39  ;;  %5297 = vmatpush.bf16.msrb.mxu2 %v8496_v59  ;;  %v9335_v39 = vld [vmem:[#allocation9 + $0x10c] sm:$0xf]  ;;  %v9409_v59 = vld [vmem:[#allocation9 + $0x354] sm:$0xf0]  ;;  %v8623_v13 = vld [vmem:[#allocation9 + $0x7c8] sm:$0xf] }
 0x2c2   :  { %5257 = vmatpush.bf16.msra.mxu0 %v8128_v56 }
 0x2c3   :  { %5277 = vmatpush.bf16.msrb.mxu3 %v8144_v21  ;;  %5213 = vmatmul.bf16.vlgmr.msrb.gmra.mxu0 %v10281_v53  ;;  %v7761_v21 = vld [vmem:[#allocation9 + $0x118] sm:$0xf0] }
 0x2c4   :  { %v7764_v57 = vor.u32 %v9335_v39, %v7761_v21  ;;  %v8001_v39 = vld [vmem:[#allocation9 + $0x2f8] sm:$0xf0]  ;;  %v8032_v21 = vor.u32 %v9405_v32, %v8031_v15  ;;  %v8608_v15 = vor.u32 %v9549_v4, %v8607_v49  ;;  %v9463_v32 = vld [vmem:[#allocation9 + $0x50c] sm:$0xf] }
 0x2c5   :  { %5338 = vmatpush.bf16.msra.mxu1 %v7828_v31  ;;  %5298 = vmatpush.bf16.msrb.mxu2 %v8480_v38  ;;  %v8448_v31 = vor.u32 %v9509_v9, %v8447_v16  ;;  %v9401_v9 = vld [vmem:[#allocation9 + $0x314] sm:$0xf0]  ;;  %v9571_v49 = vld [vmem:[#allocation12 + $0x64] sm:$0xf0] }
 0x2c6   :  { %5278 = vmatmul.bf16.vlgmr.msrb.gmra.mxu3 %v10230_v45  ;;  %5258 = vmatpush.bf16.msra.mxu0 %v8112_v29  ;;  %v9459_v29 = vld [vmem:[#allocation9 + $0x4ec] sm:$0xf] }
 0x2c7   :  { %5322 = vmatpush.bf16.msra.mxu3 %v7748_v3  ;;  %v7684_v3 = vor.u32 %v9315_v34, %v7681_v36  ;;  %v9497_v34 = vld [vmem:[#allocation9 + $0x614] sm:$0xf0]  ;;  %v8337_v36 = vld [vmem:[#allocation9 + $0x598] sm:$0xf0]  ;;  %v5086_v41 = vpop.f32.mrf.mxu1 }
 0x2c9   :  { %5339 = vmatpush.bf16.msra.mxu1 %v7812_v62  ;;  %5299 = vmatpush.bf16.msrb.mxu2 %v8464_v55  ;;  %v5071_v10 = vpop.f32.mrf.mxu3  ;;  %v8432_v62 = vor.u32 %v9505_v7, %v8431_v1  ;;  %v9455_v55 = vld [vmem:[#allocation9 + $0x4cc] sm:$0xf] }
 0x2ca   :  { %5259 = vmatpush.bf16.msra.mxu0 %v8096_v37  ;;  %v5072_v63 = vadd.f32 %v5071_v10, %v10295_v43  ;;  %v9395_v37 = vld [vmem:[#allocation9 + $0x2ec] sm:$0xf]  ;;  %v8225_v10 = vld [vmem:[#allocation9 + $0x4b8] sm:$0xf0] }
 0x2cb   :  { %5323 = vmatpush.bf16.msra.mxu3 %v7732_v14  ;;  %v9487_v14 = vld [vmem:[#allocation9 + $0x5cc] sm:$0xf]  ;;  %v8004_v46 = vor.u32 %v9395_v37, %v8001_v39  ;;  %v3723_v37 = vperm.slane %v10287_v47, 1 }
 0x2cc   :  { %v8372_v56 = vor.u32 %v9487_v14, %v8369_v11  ;;  %v10302_v43 = vadd.f32 %v5084_v22, %v5072_v63  ;;  %v9451_v1 = vld [vmem:[#allocation9 + $0x4ac] sm:$0xf]  ;;  %v8305_v63 = vld [vmem:[#allocation9 + $0x558] sm:$0xf0]  ;;  %v8624_v22 = vor.u32 %v9553_v40, %v8623_v13  ;;  %v8703_v13 = vld [vmem:[#allocation12 + $0x70] sm:$0xf] }
 0x2cd   :  { %5340 = vmatpush.bf16.msra.mxu1 %v7796_v24  ;;  %5300 = vmatpush.bf16.msrb.mxu2 %v8448_v31  ;;  %v8048_v24 = vor.u32 %v9409_v59, %v8047_v17  ;;  %v8244_v31 = vor.u32 %v9455_v55, %v8241_v48  ;;  %v9471_v14 = vld [vmem:[#allocation9 + $0x54c] sm:$0xf]  ;;  %v8209_v59 = vld [vmem:[#allocation9 + $0x498] sm:$0xf0] }
 0x2ce   :  { %5260 = vmatpush.bf16.msra.mxu0 %v8080_v50  ;;  %v9557_v50 = vld [vmem:[#allocation9 + $0x7f4] sm:$0xf0]  ;;  %v9447_v17 = vld [vmem:[#allocation9 + $0x48c] sm:$0xf]  ;;  %v9573_v40 = vld [vmem:[#allocation12 + $0x74] sm:$0xf0] }
 0x2cf   :  { %5324 = vmatpush.bf16.msra.mxu3 %v7716_v8  ;;  %v9501_v8 = vld [vmem:[#allocation9 + $0x634] sm:$0xf0]  ;;  %v8212_v0 = vor.u32 %v9447_v17, %v8209_v59  ;;  %v9439_v39 = vld [vmem:[#allocation9 + $0x44c] sm:$0xf] }
 0x2d0   :  { %v8416_v38 = vor.u32 %v9501_v8, %v8415_v19  ;;  %v8308_v19 = vor.u32 %v9471_v14, %v8305_v63  ;;  %v9431_v14 = vld [vmem:[#allocation9 + $0x40c] sm:$0xf] }
 0x2d1   :  { %5341 = vmatpush.bf16.msra.mxu1 %v7780_v35  ;;  %5301 = vmatpush.bf16.msrb.mxu2 %v8432_v62  ;;  %v5073_v33 = vpop.f32.mrf.mxu3  ;;  %v8260_v35 = vor.u32 %v9459_v29, %v8257_v25  ;;  %v9387_v62 = vld [vmem:[#allocation9 + $0x2ac] sm:$0xf]  ;;  %v7953_v29 = vld [vmem:[#allocation9 + $0x298] sm:$0xf0] }
 0x2d2   :  { %5261 = vmatpush.bf16.msra.mxu0 %v8064_v20  ;;  %v8228_v20 = vor.u32 %v9451_v1, %v8225_v10  ;;  %v9443_v25 = vld [vmem:[#allocation9 + $0x46c] sm:$0xf]  ;;  %v8273_v33 = vld [vmem:[#allocation9 + $0x518] sm:$0xf0] }
 0x2d3   :  { %5325 = vmatpush.bf16.msra.mxu3 %v7700_v52  ;;  %v8399_v52 = vld [vmem:[#allocation9 + $0x608] sm:$0xf]  ;;  %v8276_v55 = vor.u32 %v9463_v32, %v8273_v33  ;;  %v8497_v32 = vld [vmem:[#allocation9 + $0x6d8] sm:$0xf0] }
 0x2d4   :  { %v8400_v44 = vor.u32 %v9497_v34, %v8399_v52  ;;  %v9545_v34 = vld [vmem:[#allocation9 + $0x794] sm:$0xf0] }
 0x2d5   :  { %5342 = vmatpush.bf16.msra.mxu1 %v7764_v57  ;;  %5302 = vmatpush.bf16.msrb.mxu2 %v8416_v38  ;;  %v8639_v57 = vld [vmem:[#allocation9 + $0x7e8] sm:$0xf]  ;;  %v8193_v38 = vld [vmem:[#allocation9 + $0x478] sm:$0xf0] }
 0x2d6   :  { %5262 = vmatpush.bf16.msra.mxu0 %v8048_v24  ;;  %v8640_v7 = vor.u32 %v9557_v50, %v8639_v57  ;;  %v9383_v24 = vld [vmem:[#allocation9 + $0x28c] sm:$0xf] }
 0x2d7   :  { %5326 = vmatpush.bf16.msra.mxu3 %v7684_v3  ;;  %v8015_v3 = vld [vmem:[#allocation9 + $0x308] sm:$0xf]  ;;  %v7956_v52 = vor.u32 %v9383_v24, %v7953_v29  ;;  %v9435_v50 = vld [vmem:[#allocation9 + $0x42c] sm:$0xf]  ;;  %v9529_v24 = vld [vmem:[#allocation9 + $0x714] sm:$0xf0] }
 0x2d8   :  { %5343 = vmatmul.bf16.vlgmr.msra.gmra.mxu1 %v10198_v27  ;;  %v9479_v27 = vld [vmem:[#allocation9 + $0x58c] sm:$0xf]  ;;  %v8016_v61 = vor.u32 %v9401_v9, %v8015_v3  ;;  %v8575_v3 = vld [vmem:[#allocation9 + $0x768] sm:$0xf]  ;;  %v9541_v9 = vld [vmem:[#allocation9 + $0x774] sm:$0xf0] }
 0x2d9   :  { %5387 = vmatpush.bf16.msrb.mxu1 %v8388_v58  ;;  %v8340_v16 = vor.u32 %v9479_v27, %v8337_v36  ;;  %v9391_v58 = vld [vmem:[#allocation9 + $0x2cc] sm:$0xf]  ;;  %5303 = vmatpush.bf16.msrb.mxu2 %v8400_v44  ;;  %v8196_v27 = vor.u32 %v9443_v25, %v8193_v38  ;;  %v8576_v47 = vor.u32 %v9541_v9, %v8575_v3  ;;  %v8129_v38 = vld [vmem:[#allocation9 + $0x3f8] sm:$0xf0] }
 0x2da   :  { %5263 = vmatpush.bf16.msra.mxu0 %v8032_v21  ;;  %v7988_v11 = vor.u32 %v9391_v58, %v7985_v42  ;;  %v9379_v36 = vld [vmem:[#allocation9 + $0x26c] sm:$0xf]  ;;  %v8177_v21 = vld [vmem:[#allocation9 + $0x458] sm:$0xf0]  ;;  %v8559_v42 = vld [vmem:[#allocation9 + $0x748] sm:$0xf] }
 0x2db   :  { %5327 = vmatpush.bf16.msra.mxu3 %v7668_v6  ;;  %v8324_v6 = vor.u32 %v9475_v54, %v8321_v18  ;;  %v8180_v41 = vor.u32 %v9439_v39, %v8177_v21  ;;  %v7921_v18 = vld [vmem:[#allocation9 + $0x258] sm:$0xf0]  ;;  %v9427_v25 = vld [vmem:[#allocation9 + $0x3ec] sm:$0xf] }
 0x2dc   :  { %5304 = vmatmul.bf16.vlgmr.msrb.gmra.mxu2 %v10263_v28  ;;  %v9515_v39 = vld [vmem:[#allocation9 + $0x6ac] sm:$0xf]  ;;  %v8481_v21 = vld [vmem:[#allocation9 + $0x6b8] sm:$0xf0] }
 0x2dd   :  { %5388 = vmatpush.bf16.msrb.mxu1 %v8372_v56  ;;  %5348 = vmatpush.bf16.msra.mxu2 %v8004_v46  ;;  %v7969_v56 = vld [vmem:[#allocation9 + $0x2b8] sm:$0xf0]  ;;  %v9375_v46 = vld [vmem:[#allocation9 + $0x24c] sm:$0xf]  ;;  %v8484_v9 = vor.u32 %v9515_v39, %v8481_v21  ;;  %v9572_v39 = vld [vmem:[#allocation12 + $0x74] sm:$0xf] }
 0x2de   :  { %5264 = vmatpush.bf16.msra.mxu0 %v8016_v61  ;;  %v7972_v8 = vor.u32 %v9387_v62, %v7969_v56  ;;  %v7924_v58 = vor.u32 %v9375_v46, %v7921_v18  ;;  %v9537_v61 = vld [vmem:[#allocation9 + $0x754] sm:$0xf0]  ;;  %v8543_v62 = vld [vmem:[#allocation9 + $0x728] sm:$0xf]  ;;  %v9419_v3 = vld [vmem:[#allocation9 + $0x3ac] sm:$0xf] }
 0x2df   :  { %5328 = vmatpush.bf16.msra.mxu3 %v7652_v30  ;;  %v9467_v30 = vld [vmem:[#allocation9 + $0x52c] sm:$0xf]  ;;  %v8560_v63 = vor.u32 %v9537_v61, %v8559_v42  ;;  %v9533_v56 = vld [vmem:[#allocation9 + $0x734] sm:$0xf0]  ;;  %v8705_v21 = vld [vmem:[#allocation12 + $0x78] sm:$0xf0] }
 0x2e0   :  { %v9511_v18 = vld [vmem:[#allocation9 + $0x68c] sm:$0xf] }
 0x2e1   :  { %5389 = vmatpush.bf16.msrb.mxu1 %v8356_v5  ;;  %5349 = vmatpush.bf16.msra.mxu2 %v7988_v11  ;;  %v8292_v5 = vor.u32 %v9467_v30, %v8289_v23  ;;  %v8145_v11 = vld [vmem:[#allocation9 + $0x418] sm:$0xf0]  ;;  %v9523_v30 = vld [vmem:[#allocation9 + $0x6ec] sm:$0xf]  ;;  %v8695_v23 = vld [vmem:[#allocation12 + $0x60] sm:$0xf] }
 0x2e2   :  { %5309 = vmatpush.bf16.msrb.mxu0 %v8640_v7  ;;  %v7905_v7 = vld [vmem:[#allocation9 + $0x238] sm:$0xf0]  ;;  %v8148_v59 = vor.u32 %v9431_v14, %v8145_v11  ;;  %v9415_v42 = vld [vmem:[#allocation9 + $0x38c] sm:$0xf] }
 0x2e3   :  { %5329 = vmatpush.bf16.msra.mxu3 %v7636_v2  ;;  %5265 = vmatmul.bf16.vlgmr.msra.gmra.mxu0 %v10202_v12  ;;  %v8591_v2 = vld [vmem:[#allocation9 + $0x788] sm:$0xf]  ;;  %v9507_v14 = vld [vmem:[#allocation9 + $0x66c] sm:$0xf]  ;;  %v8449_v11 = vld [vmem:[#allocation9 + $0x678] sm:$0xf0] }
 0x2e4   :  { %v8592_v48 = vor.u32 %v9545_v34, %v8591_v2  ;;  %v8687_v2 = vld [vmem:[#allocation12 + $0x50] sm:$0xf]  ;;  %v9569_v34 = vld [vmem:[#allocation12 + $0x54] sm:$0xf0] }
 0x2e5   :  { %5390 = vmatpush.bf16.msrb.mxu1 %v8340_v16  ;;  %5350 = vmatpush.bf16.msra.mxu2 %v7972_v8  ;;  %v8704_v8 = vor.u32 %v9573_v40, %v8703_v13  ;;  %v8663_v40 = vld [vmem:[#allocation12 + $0x20] sm:$0xf] }
 0x2e6   :  { %5330 = vmatmul.bf16.vlgmr.msra.gmra.mxu3 %v10211_v51  ;;  %v5136_v51 = vpop.f32.mrf.mxu1  ;;  %5310 = vmatpush.bf16.msrb.mxu0 %v8624_v22  ;;  %v7889_v22 = vld [vmem:[#allocation9 + $0x218] sm:$0xf0] }
 0x2e7   :  { %5374 = vmatpush.bf16.msrb.mxu3 %v8260_v35  ;;  %v7937_v35 = vld [vmem:[#allocation9 + $0x278] sm:$0xf0] }
 0x2e8   :  { %v7940_v16 = vor.u32 %v9379_v36, %v7937_v35  ;;  %v9423_v35 = vld [vmem:[#allocation9 + $0x3cc] sm:$0xf] }
 0x2e9   :  { %5391 = vmatpush.bf16.msrb.mxu1 %v8324_v6  ;;  %5351 = vmatpush.bf16.msra.mxu2 %v7956_v52  ;;  %v5123_v54 = vpop.f32.mrf.mxu3  ;;  %v9371_v6 = vld [vmem:[#allocation9 + $0x22c] sm:$0xf]  ;;  %v8696_v52 = vor.u32 %v9571_v49, %v8695_v23 }
 0x2ea   :  { %5311 = vmatpush.bf16.msrb.mxu0 %v8608_v15  ;;  %v5124_v57 = vadd.f32 %v5123_v54, %v3723_v37  ;;  %v9519_v15 = vld [vmem:[#allocation9 + $0x6cc] sm:$0xf]  ;;  %v8113_v37 = vld [vmem:[#allocation9 + $0x3d8] sm:$0xf0]  ;;  %v8767_v54 = vld [vmem:[#allocation12 + $0xf0] sm:$0xf] }
 0x2eb   :  { %5375 = vmatpush.bf16.msrb.mxu3 %v8244_v31  ;;  %v8161_v31 = vld [vmem:[#allocation9 + $0x438] sm:$0xf0]  ;;  %v8500_v36 = vor.u32 %v9519_v15, %v8497_v32  ;;  %v8743_v15 = vld [vmem:[#allocation12 + $0xc0] sm:$0xf]  ;;  %v9583_v32 = vld [vmem:[#allocation12 + $0xc4] sm:$0xf0] }
 0x2ec   :  { %v10308_v1 = vadd.f32 %v5136_v51, %v5124_v57  ;;  %v8164_v10 = vor.u32 %v9435_v50, %v8161_v31  ;;  %v8513_v51 = vld [vmem:[#allocation9 + $0x6f8] sm:$0xf0] }
 0x2ed   :  { %5392 = vmatpush.bf16.msrb.mxu1 %v8308_v19  ;;  %5352 = vmatpush.bf16.msra.mxu2 %v7940_v16  ;;  %v9367_v19 = vld [vmem:[#allocation9 + $0x20c] sm:$0xf]  ;;  %v8516_v29 = vor.u32 %v9523_v30, %v8513_v51  ;;  %v8116_v16 = vor.u32 %v9423_v35, %v8113_v37  ;;  %v8465_v57 = vld [vmem:[#allocation9 + $0x698] sm:$0xf0] }
 0x2ee   :  { %v5138_v44 = vpop.f32.mrf.mxu1  ;;  %5312 = vmatpush.bf16.msrb.mxu0 %v8592_v48  ;;  %v7892_v4 = vor.u32 %v9367_v19, %v7889_v22  ;;  %v8679_v48 = vld [vmem:[#allocation12 + $0x40] sm:$0xf]  ;;  %v8468_v61 = vor.u32 %v9511_v18, %v8465_v57  ;;  %v8751_v19 = vld [vmem:[#allocation12 + $0xd0] sm:$0xf]  ;;  %v9585_v22 = vld [vmem:[#allocation12 + $0xd4] sm:$0xf0]  ;;  %v8708_v18 = vor.u32 %v9572_v39, %v8705_v21 }
 0x2ef   :  { %5376 = vmatpush.bf16.msrb.mxu3 %v8228_v20  ;;  %v7908_v20 = vor.u32 %v9371_v6, %v7905_v7  ;;  %v9567_v44 = vld [vmem:[#allocation12 + $0x44] sm:$0xf0]  ;;  %v8759_v6 = vld [vmem:[#allocation12 + $0xe0] sm:$0xf]  ;;  %v8752_v23 = vor.u32 %v9585_v22, %v8751_v19  ;;  %v8625_v19 = vld [vmem:[#allocation9 + $0x7d8] sm:$0xf0] }
 0x2f0   :  { %v8680_v50 = vor.u32 %v9567_v44, %v8679_v48  ;;  %v9587_v7 = vld [vmem:[#allocation12 + $0xe4] sm:$0xf0]  ;;  %v8033_v48 = vld [vmem:[#allocation9 + $0x338] sm:$0xf0]  ;;  %v8735_v44 = vld [vmem:[#allocation12 + $0xb0] sm:$0xf] }
 0x2f1   :  { %5393 = vmatpush.bf16.msrb.mxu1 %v8292_v5  ;;  %5353 = vmatpush.bf16.msra.mxu2 %v7924_v58  ;;  %v5125_v17 = vpop.f32.mrf.mxu3  ;;  %v8760_v13 = vor.u32 %v9587_v7, %v8759_v6  ;;  %v9503_v51 = vld [vmem:[#allocation9 + $0x64c] sm:$0xf]  ;;  %v8641_v6 = vld [vmem:[#allocation9 + $0x7f8] sm:$0xf0] }
 0x2f2   :  { %5313 = vmatpush.bf16.msrb.mxu0 %v8576_v47  ;;  %v9565_v47 = vld [vmem:[#allocation12 + $0x34] sm:$0xf0]  ;;  %v8452_v17 = vor.u32 %v9507_v14, %v8449_v11  ;;  %v9403_v37 = vld [vmem:[#allocation9 + $0x32c] sm:$0xf] }
 0x2f3   :  { %5377 = vmatpush.bf16.msrb.mxu3 %v8212_v0  ;;  %v8527_v0 = vld [vmem:[#allocation9 + $0x708] sm:$0xf]  ;;  %v8036_v57 = vor.u32 %v9403_v37, %v8033_v48  ;;  %v9543_v37 = vld [vmem:[#allocation9 + $0x78c] sm:$0xf]  ;;  %v8593_v39 = vld [vmem:[#allocation9 + $0x798] sm:$0xf0] }
 0x2f4   :  { %v8528_v33 = vor.u32 %v9529_v24, %v8527_v0  ;;  %v9561_v0 = vld [vmem:[#allocation12 + $0x14] sm:$0xf0]  ;;  %v9562_v48 = vld [vmem:[#allocation12 + $0x24] sm:$0xf] }
 0x2f5   :  { %5394 = vmatpush.bf16.msrb.mxu1 %v8276_v55  ;;  %5354 = vmatpush.bf16.msra.mxu2 %v7908_v20  ;;  %v8688_v55 = vor.u32 %v9569_v34, %v8687_v2  ;;  %v9563_v20 = vld [vmem:[#allocation12 + $0x24] sm:$0xf0]  ;;  %v8744_v34 = vor.u32 %v9583_v32, %v8743_v15  ;;  %v8769_v15 = vld [vmem:[#allocation12 + $0xf8] sm:$0xf0] }
 0x2f6   :  { %5314 = vmatpush.bf16.msrb.mxu0 %v8560_v63  ;;  %v10311_v5 = vpop.f32.mrf.mxu1 }
 0x2f7   :  { %5378 = vmatpush.bf16.msrb.mxu3 %v8196_v27  ;;  %v8132_v27 = vor.u32 %v9427_v25, %v8129_v38  ;;  %v8049_v38 = vld [vmem:[#allocation9 + $0x358] sm:$0xf0] }
 0x2f8   :  { %5395 = vmatmul.bf16.vlgmr.msrb.gmra.mxu1 %v10237_v60  ;;  %v8544_v60 = vor.u32 %v9533_v56, %v8543_v62  ;;  %v9411_v56 = vld [vmem:[#allocation9 + $0x36c] sm:$0xf] }
 0x2f9   :  { %5355 = vmatpush.bf16.msra.mxu2 %v7892_v4  ;;  %v8655_v4 = vld [vmem:[#allocation12 + $0x10] sm:$0xf] }
 0x2fa   :  { %5315 = vmatpush.bf16.msrb.mxu0 %v8544_v60  ;;  %v8664_v60 = vor.u32 %v9563_v20, %v8663_v40  ;;  %v8656_v2 = vor.u32 %v9561_v0, %v8655_v4  ;;  %v8689_v40 = vld [vmem:[#allocation12 + $0x58] sm:$0xf0]  ;;  %v9547_v4 = vld [vmem:[#allocation9 + $0x7ac] sm:$0xf]  ;;  %v8711_v0 = vld [vmem:[#allocation12 + $0x80] sm:$0xf] }
 0x2fb   :  { %5379 = vmatpush.bf16.msrb.mxu3 %v8180_v41  ;;  %v9589_v41 = vld [vmem:[#allocation12 + $0xf4] sm:$0xf0] }
 0x2fc   :  { %5356 = vmatmul.bf16.vlgmr.msra.gmra.mxu2 %v10200_v26  ;;  %v8768_v31 = vor.u32 %v9589_v41, %v8767_v54  ;;  %v8671_v26 = vld [vmem:[#allocation12 + $0x30] sm:$0xf] }
 0x2fd   :  { %5400 = vmatpush.bf16.msrb.mxu2 %v8516_v29  ;;  %v8672_v63 = vor.u32 %v9565_v47, %v8671_v26  ;;  %v10316_v30 = vpop.f32.mrf.mxu2  ;;  %v9407_v29 = vld [vmem:[#allocation9 + $0x34c] sm:$0xf]  ;;  %v8697_v26 = vld [vmem:[#allocation12 + $0x68] sm:$0xf0] }
 0x2fe   :  { %5316 = vmatpush.bf16.msrb.mxu0 %v8528_v33  ;;  %v5190_v46 = vpop.f32.mrf.mxu1  ;;  %5841 = vmatpush.bf16.msra.mxu1 %v8768_v31  ;;  %v8417_v33 = vld [vmem:[#allocation9 + $0x638] sm:$0xf0]  ;;  %v8052_v35 = vor.u32 %v9407_v29, %v8049_v38  ;;  %v9570_v31 = vld [vmem:[#allocation12 + $0x64] sm:$0xf]  ;;  %v9588_v38 = vld [vmem:[#allocation12 + $0xf4] sm:$0xf] }
 0x2ff   :  { %5380 = vmatpush.bf16.msrb.mxu3 %v8164_v10  ;;  %v8081_v10 = vld [vmem:[#allocation9 + $0x398] sm:$0xf0]  ;;  %v8700_v11 = vor.u32 %v9570_v31, %v8697_v26 }
 0x300   :  { %v8084_v62 = vor.u32 %v9415_v42, %v8081_v10  ;;  %v8727_v42 = vld [vmem:[#allocation12 + $0xa0] sm:$0xf]  ;;  %v9555_v10 = vld [vmem:[#allocation9 + $0x7ec] sm:$0xf]  ;;  %v8609_v29 = vld [vmem:[#allocation9 + $0x7b8] sm:$0xf0] }
 0x301   :  { %5401 = vmatpush.bf16.msrb.mxu2 %v8500_v36  ;;  %5317 = vmatmul.bf16.vlgmr.msrb.gmra.mxu0 %v10281_v53  ;;  %v9559_v36 = vld [vmem:[#allocation12 + $0x4] sm:$0xf0]  ;;  %v8644_v20 = vor.u32 %v9555_v10, %v8641_v6 }
 0x302   :  { %5361 = vmatpush.bf16.msra.mxu0 %v8132_v27  ;;  %5842 = vmatpush.bf16.msra.mxu1 %v8760_v13  ;;  %v8647_v27 = vld [vmem:[#allocation12] sm:$0xf]  ;;  %v9568_v13 = vld [vmem:[#allocation12 + $0x54] sm:$0xf] }
 0x303   :  { %5381 = vmatpush.bf16.msrb.mxu3 %v8148_v59  ;;  %v8065_v59 = vld [vmem:[#allocation9 + $0x378] sm:$0xf0]  ;;  %v8648_v54 = vor.u32 %v9559_v36, %v8647_v27  ;;  %v8673_v27 = vld [vmem:[#allocation12 + $0x38] sm:$0xf0]  ;;  %v8612_v36 = vor.u32 %v9547_v4, %v8609_v29  ;;  %v9527_v29 = vld [vmem:[#allocation9 + $0x70c] sm:$0xf] }
 0x304   :  { %v8068_v24 = vor.u32 %v9411_v56, %v8065_v59  ;;  %v9577_v56 = vld [vmem:[#allocation12 + $0x94] sm:$0xf0]  ;;  %v9551_v59 = vld [vmem:[#allocation9 + $0x7cc] sm:$0xf] }
 0x305   :  { %5402 = vmatpush.bf16.msrb.mxu2 %v8484_v9  ;;  %v9495_v9 = vld [vmem:[#allocation9 + $0x60c] sm:$0xf] }
 0x306   :  { %5382 = vmatmul.bf16.vlgmr.msrb.gmra.mxu3 %v10230_v45  ;;  %v8097_v45 = vld [vmem:[#allocation9 + $0x3b8] sm:$0xf0]  ;;  %5362 = vmatpush.bf16.msra.mxu0 %v8116_v16 }
 0x307   :  { %5828 = vmatpush.bf16.msra.mxu3 %v8704_v8  ;;  %v8100_v58 = vor.u32 %v9419_v3, %v8097_v45  ;;  %v8433_v8 = vld [vmem:[#allocation9 + $0x658] sm:$0xf0]  ;;  %5843 = vmatpush.bf16.msra.mxu1 %v8752_v23  ;;  %v5099_v3 = vpop.f32.mrf.mxu2  ;;  %v8628_v23 = vor.u32 %v9551_v59, %v8625_v19  ;;  %v8649_v59 = vld [vmem:[#allocation12 + $0x8] sm:$0xf0] }
 0x308   :  { %v8436_v25 = vor.u32 %v9503_v51, %v8433_v8  ;;  %v9581_v16 = vld [vmem:[#allocation12 + $0xb4] sm:$0xf0]  ;;  %v8692_v51 = vor.u32 %v9568_v13, %v8689_v40  ;;  %v9566_v8 = vld [vmem:[#allocation12 + $0x44] sm:$0xf]  ;;  %v10328_v3 = vld [vmem:[#allocation11] sm:$0xf] }
 0x309   :  { %5403 = vmatpush.bf16.msrb.mxu2 %v8468_v61  ;;  %v10318_v49 = vpop.f32.mrf.mxu3  ;;  %v8401_v45 = vld [vmem:[#allocation9 + $0x618] sm:$0xf0]  ;;  %v8736_v41 = vor.u32 %v9581_v16, %v8735_v44  ;;  %v9579_v61 = vld [vmem:[#allocation12 + $0xa4] sm:$0xf0]  ;;  %v8665_v44 = vld [vmem:[#allocation12 + $0x28] sm:$0xf0] }
 0x30a   :  { %5363 = vmatpush.bf16.msra.mxu0 %v8100_v58  ;;  %v8404_v47 = vor.u32 %v9495_v9, %v8401_v45  ;;  %v8017_v58 = vld [vmem:[#allocation9 + $0x318] sm:$0xf0]  ;;  %v8728_v7 = vor.u32 %v9579_v61, %v8727_v42  ;;  %v3724_v9 = vperm.slane %v10328_v3, 2  ;;  %v8596_v45 = vor.u32 %v9543_v37, %v8593_v39  ;;  %v9535_v61 = vld [vmem:[#allocation9 + $0x74c] sm:$0xf] }
 0x30b   :  { %5829 = vmatpush.bf16.msra.mxu3 %v8696_v52  ;;  %v9499_v52 = vld [vmem:[#allocation9 + $0x62c] sm:$0xf]  ;;  %5844 = vmatpush.bf16.msra.mxu1 %v8744_v34  ;;  %v9564_v34 = vld [vmem:[#allocation12 + $0x34] sm:$0xf] }
 0x30d   :  { %5404 = vmatpush.bf16.msrb.mxu2 %v8452_v17 }
 0x30e   :  { %5364 = vmatpush.bf16.msra.mxu0 %v8084_v62  ;;  %v8719_v62 = vld [vmem:[#allocation12 + $0x90] sm:$0xf] }
 0x30f   :  { %5830 = vmatpush.bf16.msra.mxu3 %v8688_v55  ;;  %v8420_v55 = vor.u32 %v9499_v52, %v8417_v33  ;;  %5845 = vmatpush.bf16.msra.mxu1 %v8736_v41  ;;  %v10322_v17 = vpop.f32.mrf.mxu2  ;;  %v8720_v22 = vor.u32 %v9577_v56, %v8719_v62  ;;  %v8772_v33 = vor.u32 %v9588_v38, %v8769_v15  ;;  %v9558_v56 = vld [vmem:[#allocation12 + $0x4] sm:$0xf]  ;;  %v8529_v38 = vld [vmem:[#allocation9 + $0x718] sm:$0xf0] }
 0x310   :  { %v8652_v4 = vor.u32 %v9558_v56, %v8649_v59  ;;  %v9578_v15 = vld [vmem:[#allocation12 + $0xa4] sm:$0xf]  ;;  %v8783_v56 = vld [vmem:[#allocation12 + $0x110] sm:$0xf]  ;;  %v9593_v59 = vld [vmem:[#allocation12 + $0x114] sm:$0xf0] }
 0x311   :  { %5405 = vmatpush.bf16.msrb.mxu2 %v8436_v25  ;;  %v5177_v46 = vpop.f32.mrf.mxu3 }
 0x312   :  { %5365 = vmatpush.bf16.msra.mxu0 %v8068_v24  ;;  %v9575_v24 = vld [vmem:[#allocation12 + $0x84] sm:$0xf0]  ;;  %v8577_v46 = vld [vmem:[#allocation9 + $0x778] sm:$0xf0] }
 0x313   :  { %5831 = vmatpush.bf16.msra.mxu3 %v8680_v50  ;;  %v9399_v50 = vld [vmem:[#allocation9 + $0x30c] sm:$0xf]  ;;  %5846 = vmatpush.bf16.msra.mxu1 %v8728_v7  ;;  %v8712_v25 = vor.u32 %v9575_v24, %v8711_v0  ;;  %v8561_v7 = vld [vmem:[#allocation9 + $0x758] sm:$0xf0] }
 0x315   :  { %5406 = vmatpush.bf16.msrb.mxu2 %v8420_v55  ;;  %v10320_v14 = vpop.f32.mrf.mxu1  ;;  %v8676_v55 = vor.u32 %v9564_v34, %v8673_v27 }
 0x316   :  { %5366 = vmatpush.bf16.msra.mxu0 %v8052_v35 }
 0x317   :  { %5832 = vmatpush.bf16.msra.mxu3 %v8672_v63  ;;  %v8020_v63 = vor.u32 %v9399_v50, %v8017_v58  ;;  %5847 = vmatpush.bf16.msra.mxu1 %v8720_v22  ;;  %v5151_v35 = vpop.f32.mrf.mxu2  ;;  %v8668_v50 = vor.u32 %v9562_v48, %v8665_v44  ;;  %v8564_v22 = vor.u32 %v9535_v61, %v8561_v7  ;;  %v9574_v48 = vld [vmem:[#allocation12 + $0x84] sm:$0xf]  ;;  %v9597_v61 = vld [vmem:[#allocation12 + $0x134] sm:$0xf0] }
 0x319   :  { %5407 = vmatpush.bf16.msrb.mxu2 %v8404_v47  ;;  %v8657_v47 = vld [vmem:[#allocation12 + $0x18] sm:$0xf0] }
 0x31a   :  { %5367 = vmatpush.bf16.msra.mxu0 %v8036_v57  ;;  %v5110_v16 = vpop.f32.mrf.mxu0  ;;  %v8753_v57 = vld [vmem:[#allocation12 + $0xd8] sm:$0xf0] }
 0x31b   :  { %5833 = vmatpush.bf16.msra.mxu3 %v8664_v60  ;;  %v8681_v60 = vld [vmem:[#allocation12 + $0x48] sm:$0xf0]  ;;  %5848 = vmatpush.bf16.msra.mxu1 %v8712_v25 }
 0x31c   :  { %5408 = vmatmul.bf16.vlgmr.msrb.gmra.mxu2 %v10263_v28  ;;  %v8684_v52 = vor.u32 %v9566_v8, %v8681_v60  ;;  %v9586_v28 = vld [vmem:[#allocation12 + $0xe4] sm:$0xf]  ;;  %v8545_v8 = vld [vmem:[#allocation9 + $0x738] sm:$0xf0]  ;;  %v9580_v60 = vld [vmem:[#allocation12 + $0xb4] sm:$0xf] }
 0x31d   :  { %v5242_v32 = vpop.f32.mrf.mxu1 }
 0x31e   :  { %5368 = vmatpush.bf16.msra.mxu0 %v8020_v63  ;;  %v8745_v63 = vld [vmem:[#allocation12 + $0xc8] sm:$0xf0] }
 0x31f   :  { %5834 = vmatpush.bf16.msra.mxu3 %v8656_v2  ;;  %v8761_v2 = vld [vmem:[#allocation12 + $0xe8] sm:$0xf0]  ;;  %5893 = vmatpush.bf16.msrb.mxu1 %v8772_v33  ;;  %v10331_v6 = vpop.f32.mrf.mxu2  ;;  %v9576_v33 = vld [vmem:[#allocation12 + $0x94] sm:$0xf] }
 0x320   :  { %v8764_v21 = vor.u32 %v9586_v28, %v8761_v2  ;;  %v8729_v32 = vld [vmem:[#allocation12 + $0xa8] sm:$0xf0]  ;;  %v8721_v28 = vld [vmem:[#allocation12 + $0x98] sm:$0xf0]  ;;  %v5150_v2 = vadd.f32 %v10322_v17, %v10308_v1 }
 0x321   :  { %5369 = vmatmul.bf16.vlgmr.msra.gmra.mxu0 %v10202_v12  ;;  %v5098_v12 = vadd.f32 %v10316_v30, %v10302_v43  ;;  %v9560_v30 = vld [vmem:[#allocation12 + $0x14] sm:$0xf]  ;;  %v8724_v37 = vor.u32 %v9576_v33, %v8721_v28 }
 0x322   :  { %5413 = vmatpush.bf16.msrb.mxu0 %v8644_v20  ;;  %v8660_v13 = vor.u32 %v9560_v30, %v8657_v47  ;;  %v5112_v19 = vpop.f32.mrf.mxu0 }
 0x323   :  { %5835 = vmatpush.bf16.msra.mxu3 %v8648_v54  ;;  %v9539_v54 = vld [vmem:[#allocation9 + $0x76c] sm:$0xf]  ;;  %v5111_v41 = vadd.f32 %v5110_v16, %v5098_v12  ;;  %5894 = vmatpush.bf16.msrb.mxu1 %v8764_v21  ;;  %v9605_v12 = vld [vmem:[#allocation12 + $0x174] sm:$0xf0]  ;;  %v8713_v16 = vld [vmem:[#allocation12 + $0x88] sm:$0xf0]  ;;  %v8784_v19 = vor.u32 %v9593_v59, %v8783_v56 }
 0x324   :  { %v8580_v42 = vor.u32 %v9539_v54, %v8577_v46  ;;  %v8716_v17 = vor.u32 %v9574_v48, %v8713_v16  ;;  %v9603_v54 = vld [vmem:[#allocation12 + $0x164] sm:$0xf0] }
 0x325   :  { %v5426_v26 = vmul.f32 0.2, %v5111_v41 }
 0x326   :  { %5414 = vmatpush.bf16.msrb.mxu0 %v8628_v23  ;;  %v8737_v23 = vld [vmem:[#allocation12 + $0xb8] sm:$0xf0] }
 0x327   :  { %5880 = vmatpush.bf16.msrb.mxu3 %v8708_v18  ;;  %v9584_v18 = vld [vmem:[#allocation12 + $0xd4] sm:$0xf]  ;;  %v5430_v10 = vmax.f32 %v5111_v41, %v5426_v26  ;;  %v8740_v0 = vor.u32 %v9580_v60, %v8737_v23  ;;  %v5203_v25 = vpop.f32.mrf.mxu2  ;;  %v8815_v41 = vld [vmem:[#allocation12 + $0x150] sm:$0xf]  ;;  %v8807_v26 = vld [vmem:[#allocation12 + $0x140] sm:$0xf] }
 0x328   :  { %v8756_v31 = vor.u32 %v9584_v18, %v8753_v57  ;;  %v9604_v23 = vld [vmem:[#allocation12 + $0x174] sm:$0xf] }
 0x329   :  { %v5227_v43 = vpop.f32.mrf.mxu3  ;;  %v5434_v62 = vpack.c.bf16 %v5430_v10, %v5430_v10 }
 0x32a   :  { %5415 = vmatpush.bf16.msrb.mxu0 %v8612_v36  ;;  %v5228_v58 = vadd.f32 %v5227_v43, %v3724_v9  ;;  %5895 = vmatpush.bf16.msrb.mxu1 %v8756_v31  ;;  %v5162_v27 = vpop.f32.mrf.mxu0  ;;  %v8532_v36 = vor.u32 %v9527_v29, %v8529_v38  ;;  %v9600_v38 = vld [vmem:[#allocation12 + $0x154] sm:$0xf] }
 0x32b   :  { %5881 = vmatpush.bf16.msrb.mxu3 %v8700_v11  ;;  %v9582_v11 = vld [vmem:[#allocation12 + $0xc4] sm:$0xf]  ;;  %v5163_v35 = vadd.f32 %v5162_v27, %v5150_v2 }
 0x32c   :  { %v10334_v40 = vadd.f32 %v10320_v14, %v5228_v58  ;;  %v8748_v20 = vor.u32 %v9582_v11, %v8745_v63  ;;  %5836 = vmatmul.bf16.vlgmr.msra.gmra.mxu3 %v5434_v62 }
 0x32d   :  { %v5176_v39 = vadd.f32 %v10318_v49, %v5163_v35  ;;  %v8809_v35 = vld [vmem:[#allocation12 + $0x148] sm:$0xf0] }
 0x32e   :  { %5416 = vmatpush.bf16.msrb.mxu0 %v8596_v45  ;;  %5896 = vmatpush.bf16.msrb.mxu1 %v8748_v20  ;;  %v8823_v45 = vld [vmem:[#allocation12 + $0x160] sm:$0xf] }
 0x32f   :  { %5882 = vmatpush.bf16.msrb.mxu3 %v8692_v51  ;;  %v9531_v51 = vld [vmem:[#allocation9 + $0x72c] sm:$0xf]  ;;  %v5189_v21 = vadd.f32 %v10311_v5, %v5176_v39  ;;  %v8824_v49 = vor.u32 %v9603_v54, %v8823_v45  ;;  %v9601_v5 = vld [vmem:[#allocation12 + $0x154] sm:$0xf0]  ;;  %v9592_v54 = vld [vmem:[#allocation12 + $0x114] sm:$0xf] }
 0x330   :  { %v8548_v14 = vor.u32 %v9531_v51, %v8545_v8  ;;  %v8816_v46 = vor.u32 %v9601_v5, %v8815_v41  ;;  %v8775_v51 = vld [vmem:[#allocation12 + $0x100] sm:$0xf]  ;;  %v9591_v8 = vld [vmem:[#allocation12 + $0x104] sm:$0xf0]  ;;  %v8895_v41 = vld [vmem:[#allocation12 + $0x1f0] sm:$0xf] }
 0x331   :  { %v5229_v24 = vpop.f32.mrf.mxu3  ;;  %v5202_v18 = vadd.f32 %v10331_v6, %v5189_v21  ;;  %v8791_v6 = vld [vmem:[#allocation12 + $0x120] sm:$0xf]  ;;  %v8776_v60 = vor.u32 %v9591_v8, %v8775_v51  ;;  %v9621_v5 = vld [vmem:[#allocation12 + $0x1f4] sm:$0xf0] }
 0x332   :  { %5417 = vmatpush.bf16.msrb.mxu0 %v8580_v42  ;;  %5897 = vmatpush.bf16.msrb.mxu1 %v8740_v0  ;;  %v5164_v9 = vpop.f32.mrf.mxu0  ;;  %v8799_v42 = vld [vmem:[#allocation12 + $0x130] sm:$0xf]  ;;  %v9602_v0 = vld [vmem:[#allocation12 + $0x164] sm:$0xf] }
 0x333   :  { %5883 = vmatpush.bf16.msrb.mxu3 %v8684_v52  ;;  %v8732_v52 = vor.u32 %v9578_v15, %v8729_v32  ;;  %v8800_v10 = vor.u32 %v9597_v61, %v8799_v42  ;;  %v8817_v15 = vld [vmem:[#allocation12 + $0x158] sm:$0xf0]  ;;  %v3725_v32 = vperm.slane %v10328_v3, 3  ;;  %v9617_v42 = vld [vmem:[#allocation12 + $0x1d4] sm:$0xf0] }
 0x334   :  { %v8801_v3 = vld [vmem:[#allocation12 + $0x138] sm:$0xf0] }
 0x335   :  { %v10338_v34 = vpop.f32.mrf.mxu1 }
 0x336   :  { %5418 = vmatpush.bf16.msrb.mxu0 %v8564_v22  ;;  %5898 = vmatpush.bf16.msrb.mxu1 %v8732_v52  ;;  %v8820_v52 = vor.u32 %v9600_v38, %v8817_v15  ;;  %v8839_v15 = vld [vmem:[#allocation12 + $0x180] sm:$0xf] }
 0x337   :  { %5884 = vmatpush.bf16.msrb.mxu3 %v8676_v55  ;;  %v8831_v55 = vld [vmem:[#allocation12 + $0x170] sm:$0xf] }
 0x338   :  { %v8832_v44 = vor.u32 %v9605_v12, %v8831_v55 }
 0x33a   :  { %5419 = vmatpush.bf16.msrb.mxu0 %v8548_v14  ;;  %5899 = vmatpush.bf16.msrb.mxu1 %v8724_v37  ;;  %v8825_v14 = vld [vmem:[#allocation12 + $0x168] sm:$0xf0] }
 0x33b   :  { %5885 = vmatpush.bf16.msrb.mxu3 %v8668_v50  ;;  %5854 = vmatpush.bf16.msra.mxu2 %v8832_v44  ;;  %v8828_v25 = vor.u32 %v9602_v0, %v8825_v14  ;;  %v9596_v44 = vld [vmem:[#allocation12 + $0x134] sm:$0xf]  ;;  %v9611_v0 = vld [vmem:[#allocation12 + $0x1a4] sm:$0xf0]  ;;  %v8847_v14 = vld [vmem:[#allocation12 + $0x190] sm:$0xf] }
 0x33c   :  { %v8804_v16 = vor.u32 %v9596_v44, %v8801_v3  ;;  %v9614_v3 = vld [vmem:[#allocation12 + $0x1c4] sm:$0xf] }
 0x33d   :  { %v5294_v1 = vpop.f32.mrf.mxu1 }
 0x33e   :  { %5420 = vmatpush.bf16.msrb.mxu0 %v8532_v36  ;;  %5900 = vmatpush.bf16.msrb.mxu1 %v8716_v17  ;;  %v9598_v36 = vld [vmem:[#allocation12 + $0x144] sm:$0xf]  ;;  %v8793_v17 = vld [vmem:[#allocation12 + $0x128] sm:$0xf0] }
 0x33f   :  { %5886 = vmatpush.bf16.msrb.mxu3 %v8660_v13  ;;  %5855 = vmatpush.bf16.msra.mxu2 %v8824_v49  ;;  %v5253_v43 = vpop.f32.mrf.mxu2  ;;  %v9595_v13 = vld [vmem:[#allocation12 + $0x124] sm:$0xf0]  ;;  %v8812_v39 = vor.u32 %v9598_v36, %v8809_v35  ;;  %v8785_v49 = vld [vmem:[#allocation12 + $0x118] sm:$0xf0]  ;;  %v8889_v36 = vld [vmem:[#allocation12 + $0x1e8] sm:$0xf0] }
 0x340   :  { %v5214_v57 = vpop.f32.mrf.mxu0  ;;  %v5254_v33 = vadd.f32 %v5253_v43, %v10334_v40  ;;  %v9594_v40 = vld [vmem:[#allocation12 + $0x124] sm:$0xf]  ;;  %v8887_v43 = vld [vmem:[#allocation12 + $0x1e0] sm:$0xf] }
 0x341   :  { %5421 = vmatmul.bf16.vlgmr.msrb.gmra.mxu0 %v10281_v53  ;;  %v5215_v50 = vadd.f32 %v5214_v57, %v5202_v18  ;;  %v9599_v53 = vld [vmem:[#allocation12 + $0x144] sm:$0xf0]  ;;  %v8796_v45 = vor.u32 %v9594_v40, %v8793_v17  ;;  %v8896_v18 = vor.u32 %v9621_v5, %v8895_v41  ;;  %v8788_v57 = vor.u32 %v9592_v54, %v8785_v49  ;;  %v8865_v54 = vld [vmem:[#allocation12 + $0x1b8] sm:$0xf0]  ;;  %v9610_v41 = vld [vmem:[#allocation12 + $0x1a4] sm:$0xf] }
 0x342   :  { %v8808_v30 = vor.u32 %v9599_v53, %v8807_v26  ;;  %v8857_v5 = vld [vmem:[#allocation12 + $0x1a8] sm:$0xf0] }
 0x343   :  { %5887 = vmatpush.bf16.msrb.mxu3 %v8652_v4  ;;  %5856 = vmatpush.bf16.msra.mxu2 %v8816_v46  ;;  %v5427_v47 = vmul.f32 0.2, %v5215_v50  ;;  %v8833_v4 = vld [vmem:[#allocation12 + $0x178] sm:$0xf0] }
 0x344   :  { %v8836_v24 = vor.u32 %v9604_v23, %v8833_v4  ;;  %5867 = vmatpush.bf16.msra.mxu0 %v8896_v18  ;;  %v8855_v4 = vld [vmem:[#allocation12 + $0x1a0] sm:$0xf]  ;;  %v8860_v18 = vor.u32 %v9610_v41, %v8857_v5 }
 0x345   :  { %v5431_v58 = vmax.f32 %v5215_v50, %v5427_v47 }
 0x346   :  { %5888 = vmatmul.bf16.vlgmr.msrb.gmra.mxu3 %v5434_v62  ;;  %v8792_v62 = vor.u32 %v9595_v13, %v8791_v6  ;;  %v8871_v6 = vld [vmem:[#allocation12 + $0x1c0] sm:$0xf]  ;;  %v9615_v13 = vld [vmem:[#allocation12 + $0x1c4] sm:$0xf0] }
 0x347   :  { %5857 = vmatpush.bf16.msra.mxu2 %v8808_v30  ;;  %v5435_v7 = vpack.c.bf16 %v5431_v58, %v5431_v58  ;;  %v5255_v20 = vpop.f32.mrf.mxu2  ;;  %v9619_v30 = vld [vmem:[#allocation12 + $0x1e4] sm:$0xf0]  ;;  %v8879_v58 = vld [vmem:[#allocation12 + $0x1d0] sm:$0xf] }
 0x348   :  { %v5216_v11 = vpop.f32.mrf.mxu0  ;;  %v8888_v47 = vor.u32 %v9619_v30, %v8887_v43  ;;  %v8880_v61 = vor.u32 %v9617_v42, %v8879_v58  ;;  %v8872_v20 = vor.u32 %v9615_v13, %v8871_v6  ;;  %v5502_v6 = vld [vmem:[#allocation14] sm:$0x3] }
 0x349   :  { %v5279_v31 = vpop.f32.mrf.mxu3  ;;  %5849 = vmatmul.bf16.vlgmr.msra.gmra.mxu1 %v5435_v7  ;;  %v5504_v13 = vperm.slane %v5502_v6, 0 }
 0x34a   :  { %5868 = vmatpush.bf16.msra.mxu0 %v8888_v47 }
 0x34b   :  { %5858 = vmatpush.bf16.msra.mxu2 %v8800_v10 }
 0x34e   :  { %5869 = vmatpush.bf16.msra.mxu0 %v8880_v61 }
 0x34f   :  { %5859 = vmatpush.bf16.msra.mxu2 %v8792_v62 }
 0x351   :  { %v5281_v63 = vpop.f32.mrf.mxu3 }
 0x352   :  { %5870 = vmatpush.bf16.msra.mxu0 %v8872_v20 }
 0x353   :  { %5860 = vmatpush.bf16.msra.mxu2 %v8784_v19  ;;  %v8863_v19 = vld [vmem:[#allocation12 + $0x1b0] sm:$0xf] }
 0x355   :  { %v5344_v22 = vpop.f32.mrf.mxu1 }
 0x357   :  { %5861 = vmatpush.bf16.msra.mxu2 %v8776_v60 }
 0x359   :  { %5901 = vmatmul.bf16.vlgmr.msrb.gmra.mxu1 %v5435_v7 }
 0x35b   :  { %5906 = vmatpush.bf16.msrb.mxu2 %v8836_v24  ;;  %v8856_v24 = vor.u32 %v9611_v0, %v8855_v4  ;;  %v5950_v4 = vld [vmem:[#allocation2] sm:$0x1]  ;;  %v9887_v0 = vmov 0  }
 0x35c   :  { %9638 = vset.pattern.permute.xlu0 %v9887_v0 }
 0x35d   :  { %v5346_v29 = vpop.f32.mrf.mxu1  ;;  %5953 = vperm.xlu0 %9638, %v5950_v4  }
 0x35e   :  { %v9609_v29 = vld [vmem:[#allocation12 + $0x194] sm:$0xf0] }
 0x35f   :  { %5907 = vmatpush.bf16.msrb.mxu2 %v8828_v25  ;;  %v5305_v55 = vpop.f32.mrf.mxu2  ;;  %v8848_v38 = vor.u32 %v9609_v29, %v8847_v14 }
 0x360   :  { %v5266_v28 = vpop.f32.mrf.mxu0 }
 0x361   :  { %v5267_v2 = vadd.f32 %v5266_v28, %v5254_v33  ;;  %v9620_v33 = vld [vmem:[#allocation12 + $0x1f4] sm:$0xf]  ;;  %v8897_v28 = vld [vmem:[#allocation12 + $0x1f8] sm:$0xf0] }
 0x363   :  { %5908 = vmatpush.bf16.msrb.mxu2 %v8820_v52  ;;  %v5280_v21 = vadd.f32 %v5279_v31, %v5267_v2  ;;  %v8777_v31 = vld [vmem:[#allocation12 + $0x108] sm:$0xf0]  ;;  %v8900_v2 = vor.u32 %v9620_v33, %v8897_v28 }
 0x365   :  { %v5293_v48 = vadd.f32 %v10338_v34, %v5280_v21  ;;  %v9590_v34 = vld [vmem:[#allocation12 + $0x104] sm:$0xf] }
 0x366   :  { %v8780_v26 = vor.u32 %v9590_v34, %v8777_v31  ;;  %v8849_v34 = vld [vmem:[#allocation12 + $0x198] sm:$0xf0] }
 0x367   :  { %5909 = vmatpush.bf16.msrb.mxu2 %v8812_v39  ;;  %v5307_v46 = vpop.f32.mrf.mxu2  ;;  %v5306_v10 = vadd.f32 %v5305_v55, %v5293_v48  ;;  %v8881_v39 = vld [vmem:[#allocation12 + $0x1d8] sm:$0xf0] }
 0x368   :  { %v5268_v1 = vpop.f32.mrf.mxu0 }
 0x369   :  { %v5331_v27 = vpop.f32.mrf.mxu3 }
 0x36a   :  { %v5332_v37 = vadd.f32 %v5331_v27, %v3725_v32  ;;  %v9607_v32 = vld [vmem:[#allocation12 + $0x184] sm:$0xf0]  ;;  %v9618_v27 = vld [vmem:[#allocation12 + $0x1e4] sm:$0xf] }
 0x36b   :  { %5910 = vmatpush.bf16.msrb.mxu2 %v8804_v16  ;;  %v8840_v52 = vor.u32 %v9607_v32, %v8839_v15  ;;  %v8892_v35 = vor.u32 %v9618_v27, %v8889_v36  ;;  %v8873_v16 = vld [vmem:[#allocation12 + $0x1c8] sm:$0xf0] }
 0x36c   :  { %v10346_v12 = vadd.f32 %v5344_v22, %v5332_v37  ;;  %v9613_v22 = vld [vmem:[#allocation12 + $0x1b4] sm:$0xf0]  ;;  %v9616_v37 = vld [vmem:[#allocation12 + $0x1d4] sm:$0xf]  ;;  %v8876_v1 = vor.u32 %v9614_v3, %v8873_v16 }
 0x36d   :  { %v8864_v51 = vor.u32 %v9613_v22, %v8863_v19  ;;  %v8884_v21 = vor.u32 %v9616_v37, %v8881_v39  ;;  %v5505_v22 = vperm.slane %v5502_v6, 1 }
 0x36f   :  { %5911 = vmatpush.bf16.msrb.mxu2 %v8796_v45  ;;  %5871 = vmatpush.bf16.msra.mxu0 %v8864_v51  ;;  %v9612_v45 = vld [vmem:[#allocation12 + $0x1b4] sm:$0xf] }
 0x370   :  { %v8868_v49 = vor.u32 %v9612_v45, %v8865_v54 }
 0x371   :  { %v5333_v9 = vpop.f32.mrf.mxu3 }
 0x373   :  { %5912 = vmatpush.bf16.msrb.mxu2 %v8788_v57  ;;  %5872 = vmatpush.bf16.msra.mxu0 %v8856_v24  ;;  %v9608_v57 = vld [vmem:[#allocation12 + $0x194] sm:$0xf] }
 0x374   :  { %v8852_v31 = vor.u32 %v9608_v57, %v8849_v34  ;;  %v5978_v34 = vlaneseq }
 0x375   :  { %v10349_v50 = vpop.f32.mrf.mxu1 }
 0x377   :  { %5913 = vmatpush.bf16.msrb.mxu2 %v8780_v26  ;;  %5873 = vmatpush.bf16.msra.mxu0 %v8848_v38  ;;  %v9606_v26 = vld [vmem:[#allocation12 + $0x184] sm:$0xf] }
 0x37b   :  { %5874 = vmatpush.bf16.msra.mxu0 %v8840_v52  ;;  %v5936_v52 = vld [vmem:[#allocation15] sm:$0x3] }
 0x37c   :  { %v5937_v28 = vunpack.c.l.bf16 %v5936_v52 }
 0x37d   :  { %v5398_v53 = vpop.f32.mrf.mxu1 }
 0x37e   :  { %v5318_v7 = vpop.f32.mrf.mxu0  ;;  %v8841_v53 = vld [vmem:[#allocation12 + $0x188] sm:$0xf0]  ;;  %v5939_v36 = vperm.slane %v5937_v28, 0 }
 0x37f   :  { %v5319_v63 = vadd.f32 %v5318_v7, %v5306_v10  ;;  %v5357_v56 = vpop.f32.mrf.mxu2  ;;  %5919 = vmatpush.bf16.msrb.mxu0 %v8900_v2  ;;  %v8844_v43 = vor.u32 %v9606_v26, %v8841_v53 }
 0x380   :  { %v5358_v55 = vadd.f32 %v5357_v56, %v10346_v12 }
 0x381   :  { %v5428_v62 = vmul.f32 0.2, %v5319_v63 }
 0x383   :  { %v5432_v59 = vmax.f32 %v5319_v63, %v5428_v62  ;;  %5920 = vmatpush.bf16.msrb.mxu0 %v8892_v35  ;;  %v5940_v35 = vperm.slane %v5937_v28, 2 }
 0x385   :  { %v5436_v8 = vpack.c.bf16 %v5432_v59, %v5432_v59 }
 0x386   :  { %v5320_v60 = vpop.f32.mrf.mxu0 }
 0x387   :  { %5862 = vmatmul.bf16.vlgmr.msra.gmra.mxu2 %v5436_v8  ;;  %v5359_v25 = vpop.f32.mrf.mxu2  ;;  %5921 = vmatpush.bf16.msrb.mxu0 %v8884_v21 }
 0x389   :  { %v5383_v11 = vpop.f32.mrf.mxu3 }
 0x38b   :  { %5922 = vmatpush.bf16.msrb.mxu0 %v8876_v1 }
 0x38f   :  { %5923 = vmatpush.bf16.msrb.mxu0 %v8868_v49 }
 0x391   :  { %v5385_v23 = vpop.f32.mrf.mxu3 }
 0x393   :  { %5924 = vmatpush.bf16.msrb.mxu0 %v8860_v18 }
 0x397   :  { %5914 = vmatmul.bf16.vlgmr.msrb.gmra.mxu2 %v5436_v8  ;;  %5925 = vmatpush.bf16.msrb.mxu0 %v8852_v31 }
 0x39b   :  { %5926 = vmatpush.bf16.msrb.mxu0 %v8844_v43 }
 0x39e   :  { %v5370_v48 = vpop.f32.mrf.mxu0 }
 0x39f   :  { %v5371_v44 = vadd.f32 %v5370_v48, %v5358_v55  ;;  %v5409_v17 = vpop.f32.mrf.mxu2  ;;  %v5943_v48 = vperm.slane %v5939_v36, 0 }
 0x3a1   :  { %v5384_v40 = vadd.f32 %v5383_v11, %v5371_v44  ;;  %v5944_v44 = vperm.slane %v5940_v35, 0 }
 0x3a3   :  { %v5397_v9 = vadd.f32 %v10349_v50, %v5384_v40 }
 0x3a5   :  { %v5410_v50 = vadd.f32 %v5409_v17, %v5397_v9 }
 0x3a6   :  { %v5372_v46 = vpop.f32.mrf.mxu0 }
 0x3a7   :  { %v5411_v12 = vpop.f32.mrf.mxu2 }
 0x3af   :  { %v5837_v30 = vpop.f32.mrf.mxu3 }
 0x3b0   :  { %v5838_v62 = vadd.f32 %v5837_v30, %v5504_v13  ;;  %v5979_v30 = vand.u32 127, %v5978_v34 }
 0x3b7   :  { %v5839_v58 = vpop.f32.mrf.mxu3 }
 0x3be   :  { %v5422_v47 = vpop.f32.mrf.mxu0 }
 0x3bf   :  { %v5423_v42 = vadd.f32 %v5422_v47, %v5410_v50 }
 0x3c1   :  { %v5429_v61 = vmul.f32 0.2, %v5423_v42 }
 0x3c3   :  { %v5433_v10 = vmax.f32 %v5423_v42, %v5429_v61 }
 0x3c5   :  { %v5437_v7 = vpack.c.bf16 %v5433_v10, %v5433_v10 }
 0x3c6   :  { %v5424_v11 = vpop.f32.mrf.mxu0  ;;  %v5850_v56 = vpop.f32.mrf.mxu1 }
 0x3c7   :  { %5875 = vmatmul.bf16.vlgmr.msra.gmra.mxu0 %v5437_v7  ;;  %v5851_v59 = vadd.f32 %v5850_v56, %v5838_v62 }
 0x3c9   :  { %v5889_v63 = vpop.f32.mrf.mxu3 }
 0x3ca   :  { %v5890_v51 = vadd.f32 %v5889_v63, %v5505_v22 }
 0x3ce   :  { %v5852_v19 = vpop.f32.mrf.mxu1 }
 0x3cf   :  { %v5954_v9 = vpop.permute.xlu0 %5953 }
 0x3d0   :  { %v5956_v45 = vperm.slane %v5954_v9, 0 }
 0x3d1   :  { %v5891_v20 = vpop.f32.mrf.mxu3 }
 0x3d6   :  { %v5902_v8 = vpop.f32.mrf.mxu1 }
 0x3d7   :  { %5927 = vmatmul.bf16.vlgmr.msrb.gmra.mxu0 %v5437_v7  ;;  %v5903_v60 = vadd.f32 %v5902_v8, %v5890_v51 }
 0x3de   :  { %v5904_v23 = vpop.f32.mrf.mxu1 }
 0x40a   :  { %v5863_v24 = vpop.f32.mrf.mxu2 }
 0x40b   :  { %v5864_v14 = vadd.f32 %v5863_v24, %v5851_v59 }
 0x412   :  { %v5865_v29 = vpop.f32.mrf.mxu2 }
 0x41a   :  { %v5915_v25 = vpop.f32.mrf.mxu2 }
 0x41b   :  { %v5916_v2 = vadd.f32 %v5915_v25, %v5903_v60 }
 0x422   :  { %v5917_v38 = vpop.f32.mrf.mxu2 }
 0x444   :  { %v5876_v15 = vpop.f32.mrf.mxu0 }
 0x445   :  { %v5877_v33 = vadd.f32 %v5876_v15, %v5864_v14 }
 0x447   :  { %v5932_v27 = vmul.f32 0.2, %v5877_v33 }
 0x449   :  { %v5934_v21 = vmax.f32 %v5877_v33, %v5932_v27 }
 0x44b   :  { %v5945_v16 = vmul.f32 %v5943_v48, %v5934_v21 }
 0x44c   :  { %v5878_v32 = vpop.f32.mrf.mxu0 }
 0x454   :  { %v5928_v37 = vpop.f32.mrf.mxu0 }
 0x455   :  { %v5929_v39 = vadd.f32 %v5928_v37, %v5916_v2 }
 0x457   :  { %v5933_v55 = vmul.f32 0.2, %v5929_v39 }
 0x459   :  { %v5935_v3 = vmax.f32 %v5929_v39, %v5933_v55 }
 0x45b   :  { %v5946_v1 = vmul.f32 %v5944_v44, %v5935_v3 }
 0x45c   :  { %v5930_v40 = vpop.f32.mrf.mxu0 }
 0x45d   :  { %v5947_v17 = vadd.f32 %v5946_v1, %v5945_v16 }
 0x45f   :  { %5948 = vadd.xlane.f32.xlu0 %v5947_v17 }
 0x4d2   :  { %v5949_v54 = vpop.xlane.xlu0 %5948 }
 0x4d3   :  { %v5957_v49 = vadd.f32 %v5956_v45, %v5949_v54 }
 0x4d5   :  { %v8901_v41 = vmul.f32 -1.442695, %v5957_v49 }
 0x4d7   :  { %9639 = vpow2.f32 %v8901_v41 }
 0x4dd   :  { %v9640_v5 = vpop.eup %9639 }
 0x4de   :  { %v5961_v46 = vadd.f32 1.0, %v9640_v5 }
 0x4e0   :  { %9641 = vrcp.f32 %v5961_v46  ;;  %v5973_v31 = vand.u32 2147483648, %v5961_v46  ;;  %v5971_v53 = vand.u32 2147483647, %v5961_v46  ;;  %vm5967_vm2 = vweird.f32 %v5961_v46 }
 0x4e2   :  { %v5974_v50 = vor.u32 1.1754944e-38, %v5973_v31  ;;  %vm5972_vm4 = vcmp.eq.f32.partialorder %v5971_v53, 8.507059e+37 }
 0x4e6   :  { %v9642_v18 = vpop.eup %9641 }
 0x4e7   :  { %v5963_v12 = vmul.f32 %v9642_v18, %v5961_v46  ;;  %vm5968_vm1 = vweird.f32 %v9642_v18 }
 0x4e8   :  { %vm5969_vm3 = vmor %vm5967_vm2, %vm5968_vm1 }
 0x4e9   :  { %v5964_v57 = vsub.f32 1.0, %v5963_v12 }
 0x4eb   :  { %v5965_v26 = vmul.f32 %v9642_v18, %v5964_v57 }
 0x4ed   :  { %v5966_v43 = vadd.f32 %v9642_v18, %v5965_v26 }
 0x4ef   :  { %v5970_v47 = vsel %vm5969_vm3, %v9642_v18, %v5966_v43 }
 0x4f0   :  { %v5975_v58 = vsel %vm5972_vm4, %v5974_v50, %v5970_v47 }
 0x4f1   :  { %v5980_v42 = vperm.slane %v5975_v58, %v5979_v30 }
 0x4f3   :  { %5983 = vst.msk [vmem:[#allocation17] sm:$0x1] %vm5982_vm5, %v5980_v42 }
 0x4f4   :  { %5994 = dma.vmem_to_hbm [thread:$0]  %s5990_s30, 16, %s5992_s13, [#allocation5]  }
 0x4f5   :  { %9871 = dma.done.wait [#allocation5], 16  }
 0x4f6   :  { %9872 = vsyncadd [#allocation5], 4294967280 }
 0x4f7   :  { %5999 = vsyncpa [#allocation4], 1 }
 0x4f8   :  { %6000 = vsyncpa [#allocation7], 1 }
 0x4f9   :  { %6001 = vsyncpa [#allocation10], 1 }
 0x4fa   :  { %6002 = vsyncpa [#allocation13], 1 }
 0x4fb   :  { %6003 = vsyncpa [#allocation16], 1 }
 0x4fc   :  { %6004 = vsyncpa [#allocation5], 1 }

</bundles_post_ra>
